<compile_context>
chip_gen: v5e
topology: v5e:2x2
jax: 0.10.0
libtpu: 0.0.40
codegen_flags: <defaults>
</compile_context>

<pallas_src>
import functools
import math

import jax
import jax.numpy as jnp
from jax.experimental import pallas as pl
from jax.experimental.pallas import tpu as pltpu


# ---------------------------------------------------------------------------
# helpers
# ---------------------------------------------------------------------------
def _block_spec(shape):
    nd = len(shape)
    return pl.BlockSpec(shape, lambda i, _nd=nd: (0,) * _nd)


def _cost_counts(N, nfeat, nhid, nout, num_clusters):
    flops = 0
    flops += 2 * N * nfeat * nhid + 2 * N * N * nhid          # conv1 + aggregation
    flops += 2 * N * nhid * nhid + 2 * N * N * nhid           # conv2 + aggregation
    flops += 2 * N * (nfeat + 2 * nhid) * nhid                # fc1 (concat)
    flops += 2 * N * nhid * nhid                               # fc2
    cur = N
    for size in num_clusters:
        flops += 2 * cur * nhid * size                         # assignment logits
        flops += 2 * N * cur * size                            # product update (upper bound)
        flops += 2 * size * cur * nhid                         # pooling
        flops += 2 * size * cur * cur + 2 * size * cur * size  # adjacency coarsening
        flops += 2 * size * size * nhid + 2 * size * nhid * nhid
        flops += 2 * N * size * nhid                           # extended latent
        cur = size
    L = len(num_clusters)
    flops += 2 * N * (L + 1) * nhid * 512 + 2 * N * 512 * nout # head
    transcendentals = N + sum(s * nhid for s in num_clusters)  # rsqrt + tanh
    return flops, transcendentals


# ---------------------------------------------------------------------------
# the single fused kernel
# ---------------------------------------------------------------------------
def _mgnn_kernel(*refs, num_clusters, use_norm):
    f32, bf = jnp.float32, jnp.bfloat16
    it = iter(refs)
    adj_ref = next(it); x_ref = next(it)
    c1w = next(it); c1b = next(it); c2w = next(it); c2b = next(it)
    bn1s = next(it); bn1b = next(it); bn2s = next(it); bn2b = next(it)
    f1w = next(it); f1b = next(it); f2w = next(it); f2b = next(it)
    levels = [[next(it) for _ in range(5)] for _ in num_clusters]   # gum, Wl, bl, We, be
    hw1 = next(it); hb1 = next(it); hw2 = next(it); hb2 = next(it)
    out_ref = next(it)

    adj = adj_ref[...]                       # (N, N) raw symmetric adjacency (no self loops)
    x = x_ref[...]                           # (N, nfeat)
    N = adj.shape[0]

    # ---- GCN normalization computed in VMEM (saves an N^2 HBM round trip) ----
    r_iota = jax.lax.broadcasted_iota(jnp.int32, (N, N), 0)
    c_iota = jax.lax.broadcasted_iota(jnp.int32, (N, N), 1)
    a_hat = adj + (r_iota == c_iota).astype(f32)                   # A + I
    deg = jnp.sum(a_hat, axis=1, keepdims=True)                    # (N, 1) row sums
    dinv = jnp.where(deg > 0.0, jax.lax.rsqrt(deg), 0.0)
    a_hat_b = a_hat.astype(bf)

    def agg(h):
        # D^-1/2 (A+I) D^-1/2 @ h. Symmetric adjacency => no transposed operand;
        # bf16 MXU inputs, f32 accumulation.
        return dinv * jnp.dot(a_hat_b, (dinv * h).astype(bf), preferred_element_type=f32)

    # ---- MPNN encoder (eval: dropout = identity, BN with fresh running stats) ----
    h = agg(jnp.dot(x.astype(bf), c1w[...], preferred_element_type=f32)) + c1b[...]
    h1 = jnp.maximum(h, 0.0) * bn1s[...] + bn1b[...]
    h = agg(jnp.dot(h1.astype(bf), c2w[...], preferred_element_type=f32)) + c2b[...]
    h2 = jnp.maximum(h, 0.0) * bn2s[...] + bn2b[...]

    # fc1(concat([x, h1, h2])): one K=(nfeat+2*nhid) matmul instead of 3 small-K matmuls.
    cat = jnp.concatenate([x, h1, h2], axis=1).astype(bf)
    f = jnp.maximum(jnp.dot(cat, f1w[...], preferred_element_type=f32) + f1b[...], 0.0)
    latent = jnp.maximum(
        jnp.dot(f.astype(bf), f2w[...], preferred_element_type=f32) + f2b[...], 0.0)   # (N, nhid)

    # ---- multi-resolution cluster levels, all fused / VMEM resident ----
    latents = [latent]
    cur_adj = adj
    product = None
    for lvl, size in enumerate(num_clusters):
        gum, wl, bl, we, be = levels[lvl]
        # assignment logits + gumbel noise (tau=1), hard one-hot along dim=1 (first max wins)
        y = (jnp.dot(latent.astype(bf), wl[...], preferred_element_type=f32)
             + bl[...] + gum[...])                                  # (cur, size)
        m = jnp.max(y, axis=1, keepdims=True)
        cols = jax.lax.broadcasted_iota(jnp.int32, y.shape, 1)
        first_idx = jnp.min(jnp.where(y >= m, cols, size), axis=1, keepdims=True)
        assign = (cols == first_idx).astype(f32)                    # (cur, size)
        assign_b = assign.astype(bf)

        if lvl == 0:
            product = assign                                        # (N, size)
        else:
            product = jnp.dot(product.astype(bf), assign_b, preferred_element_type=f32)

        # pooled features: assign^T @ latent, then F.normalize(dim=1)
        xp = jax.lax.dot_general(assign_b, latent.astype(bf), (((0,), (0,)), ((), ())),
                                 preferred_element_type=f32)        # (size, nhid)
        norm = jnp.sqrt(jnp.sum(xp * xp, axis=1, keepdims=True))
        xp = xp / jnp.maximum(norm, 1e-12)

        # coarsened adjacency: assign^T @ adj @ assign, normalized by its total sum
        t = jax.lax.dot_general(assign_b, cur_adj.astype(bf), (((0,), (0,)), ((), ())),
                                preferred_element_type=f32)         # (size, cur)
        adj_new = jnp.dot(t.astype(bf), assign_b, preferred_element_type=f32)   # (size, size)
        s = jnp.sum(jnp.sum(adj_new, axis=1, keepdims=True), axis=0, keepdims=True)
        adj_new = adj_new / jnp.maximum(s, 1e-12)

        # middle encoder: tanh((adj_new @ xp) @ We + be)
        latent = jnp.tanh(
            jnp.dot(jnp.dot(adj_new.astype(bf), xp.astype(bf),
                            preferred_element_type=f32).astype(bf),
                    we[...], preferred_element_type=f32) + be[...])
        latents.append(jnp.dot(product.astype(bf), latent.astype(bf),
                               preferred_element_type=f32))         # extended latent (N, nhid)
        cur_adj = adj_new

    # ---- prediction head: fc_1(concat(latents)) -> ReLU -> fc_2 -> ReLU ----
    if use_norm:
        normed = []
        for a in latents:
            sq = jnp.sum(jnp.sum(a * a, axis=1, keepdims=True), axis=0, keepdims=True)
            normed.append(a / jnp.sqrt(jnp.maximum(sq, 1e-24)))     # Frobenius norm
        latents = normed
    rep = jnp.concatenate(latents, axis=1).astype(bf)               # (N, (L+1)*nhid), one matmul
    hh = jnp.maximum(jnp.dot(rep, hw1[...], preferred_element_type=f32) + hb1[...], 0.0)
    out = jnp.maximum(jnp.dot(hh.astype(bf), hw2[...], preferred_element_type=f32)
                      + hb2[...], 0.0)
    out_ref[...] = out


# ---------------------------------------------------------------------------
# forward pass wrapper (everything hot runs inside the single pallas_call)
# ---------------------------------------------------------------------------
def mgnn_forward(params, adj_dense, x, gumbels, *, nfeat, nhid, nout,
                 num_clusters, use_norm, bn_eps=1e-5):
    f32, bf = jnp.float32, jnp.bfloat16
    N = x.shape[0]
    L = len(num_clusters)

    adj_dense = adj_dense.astype(f32)
    x = x.astype(f32)

    row = lambda v: jnp.asarray(v, f32).reshape(1, -1)
    wcast = lambda w: jnp.asarray(w, bf)                 # bf16 weights -> half the DMA, MXU-native

    # eval-mode BatchNorm with fresh running stats (mean=0, var=1)
    bn1s = row(params["bn1_gamma"]) / jnp.sqrt(1.0 + bn_eps)
    bn1b = row(params["bn1_beta"])
    bn2s = row(params["bn2_gamma"]) / jnp.sqrt(1.0 + bn_eps)
    bn2b = row(params["bn2_beta"])

    inputs = [adj_dense, x,
              wcast(params["conv1_W"]), row(params["conv1_b"]),
              wcast(params["conv2_W"]), row(params["conv2_b"]),
              bn1s, bn1b, bn2s, bn2b,
              wcast(params["enc_fc1_W"]), row(params["enc_fc1_b"]),
              wcast(params["enc_fc2_W"]), row(params["enc_fc2_b"])]
    for lvl in range(L):
        Wl, bl = params["mid_lin"][lvl]
        We, be = params["mid_enc"][lvl]
        inputs += [jnp.asarray(gumbels[lvl], f32), wcast(Wl), row(bl), wcast(We), row(be)]
    inputs += [wcast(params["fc1_W"]), row(params["fc1_b"]),
               wcast(params["fc2_W"]), row(params["fc2_b"])]

    kernel = functools.partial(_mgnn_kernel,
                               num_clusters=tuple(num_clusters), use_norm=use_norm)

    flops, transcend = _cost_counts(N, nfeat, nhid, nout, num_clusters)
    bytes_accessed = sum(int(a.size) * a.dtype.itemsize for a in inputs) + N * nout * 4

    out = pl.pallas_call(
        kernel,
        grid=(1,),
        in_specs=[_block_spec(a.shape) for a in inputs],
        out_specs=_block_spec((N, nout)),
        out_shape=jax.ShapeDtypeStruct((N, nout), f32),
        compiler_params=pltpu.CompilerParams(
            dimension_semantics=("arbitrary",),
            vmem_limit_bytes=48 * 1024 * 1024),
        cost_estimate=pl.CostEstimate(flops=flops, transcendentals=transcend,
                                      bytes_accessed=bytes_accessed),
    )(*inputs)
    return out.reshape(-1)                               # .squeeze().view(-1)


# ---------------------------------------------------------------------------
# Deterministic parameter init (shapes from MGNN.__init__; encoder nout == nhid)
# ---------------------------------------------------------------------------
def init_params(key, nfeat, nhid, nout, num_clusters):
    n_lin = 6 + 2 * len(num_clusters)
    keys = iter(jax.random.split(key, n_lin))

    def lin(k, fan_in, fan_out):
        kw, kb = jax.random.split(k)
        bound = 1.0 / math.sqrt(fan_in)
        W = jax.random.uniform(kw, (fan_in, fan_out), jnp.float32, -bound, bound)
        b = jax.random.uniform(kb, (fan_out,), jnp.float32, -bound, bound)
        return W, b

    C = (len(num_clusters) + 1) * nhid
    p = {}
    p["conv1_W"], p["conv1_b"] = lin(next(keys), nfeat, nhid)
    p["conv2_W"], p["conv2_b"] = lin(next(keys), nhid, nhid)
    p["bn1_gamma"], p["bn1_beta"] = jnp.ones((nhid,), jnp.float32), jnp.zeros((nhid,), jnp.float32)
    p["bn2_gamma"], p["bn2_beta"] = jnp.ones((nhid,), jnp.float32), jnp.zeros((nhid,), jnp.float32)
    p["enc_fc1_W"], p["enc_fc1_b"] = lin(next(keys), nfeat + 2 * nhid, nhid)
    p["enc_fc2_W"], p["enc_fc2_b"] = lin(next(keys), nhid, nhid)
    p["mid_lin"] = [lin(next(keys), nhid, s) for s in num_clusters]
    p["mid_enc"] = [lin(next(keys), nhid, nhid) for _ in num_clusters]
    p["fc1_W"], p["fc1_b"] = lin(next(keys), C, 512)
    p["fc2_W"], p["fc2_b"] = lin(next(keys), 512, nout)
    return p


# ---------------------------------------------------------------------------
if __name__ == "__main__":
    # Small, module-consistent config
    nfeat, nhid, nout = 4, 16, 1
    num_clusters = (10, 5)
    use_norm = False
    N = 64                                     # total graph nodes

    root = jax.random.PRNGKey(0)
    k_param, k_x, k_adj1, k_adj2, k_gum = jax.random.split(root, 5)

    params = init_params(k_param, nfeat, nhid, nout, num_clusters)

    # node features
    x = jax.random.normal(k_x, (N, nfeat), jnp.float32)

    # dense (sparse-equivalent) non-negative symmetric adjacency, zero diagonal
    mask = (jax.random.uniform(k_adj1, (N, N)) > 0.8).astype(jnp.float32)
    vals = jax.random.uniform(k_adj2, (N, N), jnp.float32, 0.1, 1.0)
    a = mask * vals
    adj_dense = (a + a.T) * 0.5
    adj_dense = adj_dense * (1.0 - jnp.eye(N, dtype=jnp.float32))

    # pre-sample gumbel noise for every level (tau=1, hard): shapes (cur_l, size_l)
    gkeys = jax.random.split(k_gum, len(num_clusters))
    gumbels, cur = [], N
    for lvl, size in enumerate(num_clusters):
        gumbels.append(jax.random.gumbel(gkeys[lvl], (cur, size), jnp.float32))
        cur = size
    gumbels = tuple(gumbels)

    fwd = jax.jit(functools.partial(
        mgnn_forward, nfeat=nfeat, nhid=nhid, nout=nout,
        num_clusters=num_clusters, use_norm=use_norm))

    out = jax.block_until_ready(fwd(params, adj_dense, x, gumbels))
    assert out.shape == (N * nout,), out.shape
    assert bool(jnp.all(jnp.isfinite(out)))
    print("KERNEL_OK")
</pallas_src>

<mosaic_0001>
module attributes {stable_mosaic.version = 11 : i64} {
  func.func @_mgnn_kernel(%arg0: i32, %arg1: memref<64x64xf32, #tpu.memory_space<vmem>>, %arg2: memref<64x4xf32, #tpu.memory_space<vmem>>, %arg3: memref<4x16xbf16, #tpu.memory_space<vmem>>, %arg4: memref<1x16xf32, #tpu.memory_space<vmem>>, %arg5: memref<16x16xbf16, #tpu.memory_space<vmem>>, %arg6: memref<1x16xf32, #tpu.memory_space<vmem>>, %arg7: memref<1x16xf32, #tpu.memory_space<vmem>>, %arg8: memref<1x16xf32, #tpu.memory_space<vmem>>, %arg9: memref<1x16xf32, #tpu.memory_space<vmem>>, %arg10: memref<1x16xf32, #tpu.memory_space<vmem>>, %arg11: memref<36x16xbf16, #tpu.memory_space<vmem>>, %arg12: memref<1x16xf32, #tpu.memory_space<vmem>>, %arg13: memref<16x16xbf16, #tpu.memory_space<vmem>>, %arg14: memref<1x16xf32, #tpu.memory_space<vmem>>, %arg15: memref<64x10xf32, #tpu.memory_space<vmem>>, %arg16: memref<16x10xbf16, #tpu.memory_space<vmem>>, %arg17: memref<1x10xf32, #tpu.memory_space<vmem>>, %arg18: memref<16x16xbf16, #tpu.memory_space<vmem>>, %arg19: memref<1x16xf32, #tpu.memory_space<vmem>>, %arg20: memref<10x5xf32, #tpu.memory_space<vmem>>, %arg21: memref<16x5xbf16, #tpu.memory_space<vmem>>, %arg22: memref<1x5xf32, #tpu.memory_space<vmem>>, %arg23: memref<16x16xbf16, #tpu.memory_space<vmem>>, %arg24: memref<1x16xf32, #tpu.memory_space<vmem>>, %arg25: memref<48x512xbf16, #tpu.memory_space<vmem>>, %arg26: memref<1x512xf32, #tpu.memory_space<vmem>>, %arg27: memref<512x1xbf16, #tpu.memory_space<vmem>>, %arg28: memref<1x1xf32, #tpu.memory_space<vmem>>, %arg29: memref<64x1xf32, #tpu.memory_space<vmem>>) attributes {dimension_semantics = [#tpu.dimension_semantics<arbitrary>], iteration_bounds = array<i64: 1>, scalar_prefetch = 0 : i64, scratch_operands = 0 : i64, tpu.core_type = #tpu.core_type<tc>, window_params = [{pipeline_mode = #tpu.pipeline_mode<synchronous>, transform_indices = @transform_0, window_bounds = array<i64: 64, 64>}, {pipeline_mode = #tpu.pipeline_mode<synchronous>, transform_indices = @transform_1, window_bounds = array<i64: 64, 4>}, {pipeline_mode = #tpu.pipeline_mode<synchronous>, transform_indices = @transform_2, window_bounds = array<i64: 4, 16>}, {pipeline_mode = #tpu.pipeline_mode<synchronous>, transform_indices = @transform_3, window_bounds = array<i64: 1, 16>}, {pipeline_mode = #tpu.pipeline_mode<synchronous>, transform_indices = @transform_4, window_bounds = array<i64: 16, 16>}, {pipeline_mode = #tpu.pipeline_mode<synchronous>, transform_indices = @transform_5, window_bounds = array<i64: 1, 16>}, {pipeline_mode = #tpu.pipeline_mode<synchronous>, transform_indices = @transform_6, window_bounds = array<i64: 1, 16>}, {pipeline_mode = #tpu.pipeline_mode<synchronous>, transform_indices = @transform_7, window_bounds = array<i64: 1, 16>}, {pipeline_mode = #tpu.pipeline_mode<synchronous>, transform_indices = @transform_8, window_bounds = array<i64: 1, 16>}, {pipeline_mode = #tpu.pipeline_mode<synchronous>, transform_indices = @transform_9, window_bounds = array<i64: 1, 16>}, {pipeline_mode = #tpu.pipeline_mode<synchronous>, transform_indices = @transform_10, window_bounds = array<i64: 36, 16>}, {pipeline_mode = #tpu.pipeline_mode<synchronous>, transform_indices = @transform_11, window_bounds = array<i64: 1, 16>}, {pipeline_mode = #tpu.pipeline_mode<synchronous>, transform_indices = @transform_12, window_bounds = array<i64: 16, 16>}, {pipeline_mode = #tpu.pipeline_mode<synchronous>, transform_indices = @transform_13, window_bounds = array<i64: 1, 16>}, {pipeline_mode = #tpu.pipeline_mode<synchronous>, transform_indices = @transform_14, window_bounds = array<i64: 64, 10>}, {pipeline_mode = #tpu.pipeline_mode<synchronous>, transform_indices = @transform_15, window_bounds = array<i64: 16, 10>}, {pipeline_mode = #tpu.pipeline_mode<synchronous>, transform_indices = @transform_16, window_bounds = array<i64: 1, 10>}, {pipeline_mode = #tpu.pipeline_mode<synchronous>, transform_indices = @transform_17, window_bounds = array<i64: 16, 16>}, {pipeline_mode = #tpu.pipeline_mode<synchronous>, transform_indices = @transform_18, window_bounds = array<i64: 1, 16>}, {pipeline_mode = #tpu.pipeline_mode<synchronous>, transform_indices = @transform_19, window_bounds = array<i64: 10, 5>}, {pipeline_mode = #tpu.pipeline_mode<synchronous>, transform_indices = @transform_20, window_bounds = array<i64: 16, 5>}, {pipeline_mode = #tpu.pipeline_mode<synchronous>, transform_indices = @transform_21, window_bounds = array<i64: 1, 5>}, {pipeline_mode = #tpu.pipeline_mode<synchronous>, transform_indices = @transform_22, window_bounds = array<i64: 16, 16>}, {pipeline_mode = #tpu.pipeline_mode<synchronous>, transform_indices = @transform_23, window_bounds = array<i64: 1, 16>}, {pipeline_mode = #tpu.pipeline_mode<synchronous>, transform_indices = @transform_24, window_bounds = array<i64: 48, 512>}, {pipeline_mode = #tpu.pipeline_mode<synchronous>, transform_indices = @transform_25, window_bounds = array<i64: 1, 512>}, {pipeline_mode = #tpu.pipeline_mode<synchronous>, transform_indices = @transform_26, window_bounds = array<i64: 512, 1>}, {pipeline_mode = #tpu.pipeline_mode<synchronous>, transform_indices = @transform_27, window_bounds = array<i64: 1, 1>}, {pipeline_mode = #tpu.pipeline_mode<synchronous>, transform_indices = @transform_28, window_bounds = array<i64: 64, 1>}]} {
    %c0 = arith.constant 0 : index
    %c0_0 = arith.constant 0 : index
    %0 = vector.load %arg1[%c0, %c0_0] : memref<64x64xf32, #tpu.memory_space<vmem>>, vector<64x64xf32>
    %c0_1 = arith.constant 0 : index
    %c0_2 = arith.constant 0 : index
    %1 = vector.load %arg2[%c0_1, %c0_2] : memref<64x4xf32, #tpu.memory_space<vmem>>, vector<64x4xf32>
    %2 = tpu.iota {dimensions = array<i32: 0>} : vector<64x64xi32>
    %3 = tpu.iota {dimensions = array<i32: 1>} : vector<64x64xi32>
    %4 = arith.cmpi eq, %2, %3 : vector<64x64xi32>
    %5 = arith.extui %4 : vector<64x64xi1> to vector<64x64xi32>
    %6 = arith.sitofp %5 : vector<64x64xi32> to vector<64x64xf32>
    %7 = arith.addf %0, %6 : vector<64x64xf32>
    %cst = arith.constant dense<0.000000e+00> : vector<64xf32>
    %8 = vector.multi_reduction <add>, %7, %cst [1] : vector<64x64xf32> to vector<64xf32>
    %9 = vector.shape_cast %8 : vector<64xf32> to vector<64x1xf32>
    %cst_3 = arith.constant 0.000000e+00 : f32
    %10 = vector.broadcast %cst_3 : f32 to vector<64x1xf32>
    %11 = arith.cmpf ogt, %9, %10 : vector<64x1xf32>
    %12 = math.rsqrt %9 : vector<64x1xf32>
    %cst_4 = arith.constant 0.000000e+00 : f32
    %13 = vector.broadcast %cst_4 : f32 to vector<64x1xf32>
    %14 = arith.select %11, %12, %13 : vector<64x1xi1>, vector<64x1xf32>
    %15 = arith.truncf %7 : vector<64x64xf32> to vector<64x64xbf16>
    %16 = arith.truncf %1 : vector<64x4xf32> to vector<64x4xbf16>
    %c0_5 = arith.constant 0 : index
    %c0_6 = arith.constant 0 : index
    %17 = vector.load %arg3[%c0_5, %c0_6] : memref<4x16xbf16, #tpu.memory_space<vmem>>, vector<4x16xbf16>
    %cst_7 = arith.constant dense<0.000000e+00> : vector<64x16xf32>
    %18 = tpu.matmul %16, %17, %cst_7 {dimension_numbers = #tpu.dot_dimension_numbers<[1], [0], [0], [1], [0, 0, 1, 1], [], []>} : vector<64x4xbf16>, vector<4x16xbf16>, vector<64x16xf32> -> vector<64x16xf32>
    %19 = vector.broadcast %14 : vector<64x1xf32> to vector<64x16xf32>
    %20 = arith.mulf %19, %18 : vector<64x16xf32>
    %21 = arith.truncf %20 : vector<64x16xf32> to vector<64x16xbf16>
    %cst_8 = arith.constant dense<0.000000e+00> : vector<64x16xf32>
    %22 = tpu.matmul %15, %21, %cst_8 {dimension_numbers = #tpu.dot_dimension_numbers<[1], [0], [0], [1], [0, 0, 1, 1], [], []>} : vector<64x64xbf16>, vector<64x16xbf16>, vector<64x16xf32> -> vector<64x16xf32>
    %23 = vector.broadcast %14 : vector<64x1xf32> to vector<64x16xf32>
    %24 = arith.mulf %23, %22 : vector<64x16xf32>
    %c0_9 = arith.constant 0 : index
    %c0_10 = arith.constant 0 : index
    %25 = vector.load %arg4[%c0_9, %c0_10] : memref<1x16xf32, #tpu.memory_space<vmem>>, vector<1x16xf32>
    %26 = vector.broadcast %25 : vector<1x16xf32> to vector<64x16xf32>
    %27 = arith.addf %24, %26 : vector<64x16xf32>
    %cst_11 = arith.constant 0.000000e+00 : f32
    %28 = vector.broadcast %cst_11 : f32 to vector<64x16xf32>
    %29 = arith.maximumf %27, %28 : vector<64x16xf32>
    %c0_12 = arith.constant 0 : index
    %c0_13 = arith.constant 0 : index
    %30 = vector.load %arg7[%c0_12, %c0_13] : memref<1x16xf32, #tpu.memory_space<vmem>>, vector<1x16xf32>
    %31 = vector.broadcast %30 : vector<1x16xf32> to vector<64x16xf32>
    %32 = arith.mulf %29, %31 : vector<64x16xf32>
    %c0_14 = arith.constant 0 : index
    %c0_15 = arith.constant 0 : index
    %33 = vector.load %arg8[%c0_14, %c0_15] : memref<1x16xf32, #tpu.memory_space<vmem>>, vector<1x16xf32>
    %34 = vector.broadcast %33 : vector<1x16xf32> to vector<64x16xf32>
    %35 = arith.addf %32, %34 : vector<64x16xf32>
    %36 = arith.truncf %35 : vector<64x16xf32> to vector<64x16xbf16>
    %c0_16 = arith.constant 0 : index
    %c0_17 = arith.constant 0 : index
    %37 = vector.load %arg5[%c0_16, %c0_17] : memref<16x16xbf16, #tpu.memory_space<vmem>>, vector<16x16xbf16>
    %cst_18 = arith.constant dense<0.000000e+00> : vector<64x16xf32>
    %38 = tpu.matmul %36, %37, %cst_18 {dimension_numbers = #tpu.dot_dimension_numbers<[1], [0], [0], [1], [0, 0, 1, 1], [], []>} : vector<64x16xbf16>, vector<16x16xbf16>, vector<64x16xf32> -> vector<64x16xf32>
    %39 = vector.broadcast %14 : vector<64x1xf32> to vector<64x16xf32>
    %40 = arith.mulf %39, %38 : vector<64x16xf32>
    %41 = arith.truncf %40 : vector<64x16xf32> to vector<64x16xbf16>
    %cst_19 = arith.constant dense<0.000000e+00> : vector<64x16xf32>
    %42 = tpu.matmul %15, %41, %cst_19 {dimension_numbers = #tpu.dot_dimension_numbers<[1], [0], [0], [1], [0, 0, 1, 1], [], []>} : vector<64x64xbf16>, vector<64x16xbf16>, vector<64x16xf32> -> vector<64x16xf32>
    %43 = vector.broadcast %14 : vector<64x1xf32> to vector<64x16xf32>
    %44 = arith.mulf %43, %42 : vector<64x16xf32>
    %c0_20 = arith.constant 0 : index
    %c0_21 = arith.constant 0 : index
    %45 = vector.load %arg6[%c0_20, %c0_21] : memref<1x16xf32, #tpu.memory_space<vmem>>, vector<1x16xf32>
    %46 = vector.broadcast %45 : vector<1x16xf32> to vector<64x16xf32>
    %47 = arith.addf %44, %46 : vector<64x16xf32>
    %cst_22 = arith.constant 0.000000e+00 : f32
    %48 = vector.broadcast %cst_22 : f32 to vector<64x16xf32>
    %49 = arith.maximumf %47, %48 : vector<64x16xf32>
    %c0_23 = arith.constant 0 : index
    %c0_24 = arith.constant 0 : index
    %50 = vector.load %arg9[%c0_23, %c0_24] : memref<1x16xf32, #tpu.memory_space<vmem>>, vector<1x16xf32>
    %51 = vector.broadcast %50 : vector<1x16xf32> to vector<64x16xf32>
    %52 = arith.mulf %49, %51 : vector<64x16xf32>
    %c0_25 = arith.constant 0 : index
    %c0_26 = arith.constant 0 : index
    %53 = vector.load %arg10[%c0_25, %c0_26] : memref<1x16xf32, #tpu.memory_space<vmem>>, vector<1x16xf32>
    %54 = vector.broadcast %53 : vector<1x16xf32> to vector<64x16xf32>
    %55 = arith.addf %52, %54 : vector<64x16xf32>
    %56 = tpu.concatenate %1, %35, %55 in 1 : vector<64x4xf32>, vector<64x16xf32>, vector<64x16xf32> -> vector<64x36xf32>
    %57 = arith.truncf %56 : vector<64x36xf32> to vector<64x36xbf16>
    %c0_27 = arith.constant 0 : index
    %c0_28 = arith.constant 0 : index
    %58 = vector.load %arg11[%c0_27, %c0_28] : memref<36x16xbf16, #tpu.memory_space<vmem>>, vector<36x16xbf16>
    %cst_29 = arith.constant dense<0.000000e+00> : vector<64x16xf32>
    %59 = tpu.matmul %57, %58, %cst_29 {dimension_numbers = #tpu.dot_dimension_numbers<[1], [0], [0], [1], [0, 0, 1, 1], [], []>} : vector<64x36xbf16>, vector<36x16xbf16>, vector<64x16xf32> -> vector<64x16xf32>
    %c0_30 = arith.constant 0 : index
    %c0_31 = arith.constant 0 : index
    %60 = vector.load %arg12[%c0_30, %c0_31] : memref<1x16xf32, #tpu.memory_space<vmem>>, vector<1x16xf32>
    %61 = vector.broadcast %60 : vector<1x16xf32> to vector<64x16xf32>
    %62 = arith.addf %59, %61 : vector<64x16xf32>
    %cst_32 = arith.constant 0.000000e+00 : f32
    %63 = vector.broadcast %cst_32 : f32 to vector<64x16xf32>
    %64 = arith.maximumf %62, %63 : vector<64x16xf32>
    %65 = arith.truncf %64 : vector<64x16xf32> to vector<64x16xbf16>
    %c0_33 = arith.constant 0 : index
    %c0_34 = arith.constant 0 : index
    %66 = vector.load %arg13[%c0_33, %c0_34] : memref<16x16xbf16, #tpu.memory_space<vmem>>, vector<16x16xbf16>
    %cst_35 = arith.constant dense<0.000000e+00> : vector<64x16xf32>
    %67 = tpu.matmul %65, %66, %cst_35 {dimension_numbers = #tpu.dot_dimension_numbers<[1], [0], [0], [1], [0, 0, 1, 1], [], []>} : vector<64x16xbf16>, vector<16x16xbf16>, vector<64x16xf32> -> vector<64x16xf32>
    %c0_36 = arith.constant 0 : index
    %c0_37 = arith.constant 0 : index
    %68 = vector.load %arg14[%c0_36, %c0_37] : memref<1x16xf32, #tpu.memory_space<vmem>>, vector<1x16xf32>
    %69 = vector.broadcast %68 : vector<1x16xf32> to vector<64x16xf32>
    %70 = arith.addf %67, %69 : vector<64x16xf32>
    %cst_38 = arith.constant 0.000000e+00 : f32
    %71 = vector.broadcast %cst_38 : f32 to vector<64x16xf32>
    %72 = arith.maximumf %70, %71 : vector<64x16xf32>
    %73 = arith.truncf %72 : vector<64x16xf32> to vector<64x16xbf16>
    %c0_39 = arith.constant 0 : index
    %c0_40 = arith.constant 0 : index
    %74 = vector.load %arg16[%c0_39, %c0_40] : memref<16x10xbf16, #tpu.memory_space<vmem>>, vector<16x10xbf16>
    %cst_41 = arith.constant dense<0.000000e+00> : vector<64x10xf32>
    %75 = tpu.matmul %73, %74, %cst_41 {dimension_numbers = #tpu.dot_dimension_numbers<[1], [0], [0], [1], [0, 0, 1, 1], [], []>} : vector<64x16xbf16>, vector<16x10xbf16>, vector<64x10xf32> -> vector<64x10xf32>
    %c0_42 = arith.constant 0 : index
    %c0_43 = arith.constant 0 : index
    %76 = vector.load %arg17[%c0_42, %c0_43] : memref<1x10xf32, #tpu.memory_space<vmem>>, vector<1x10xf32>
    %77 = vector.broadcast %76 : vector<1x10xf32> to vector<64x10xf32>
    %78 = arith.addf %75, %77 : vector<64x10xf32>
    %c0_44 = arith.constant 0 : index
    %c0_45 = arith.constant 0 : index
    %79 = vector.load %arg15[%c0_44, %c0_45] : memref<64x10xf32, #tpu.memory_space<vmem>>, vector<64x10xf32>
    %80 = arith.addf %78, %79 : vector<64x10xf32>
    %cst_46 = arith.constant dense<0xFF800000> : vector<64xf32>
    %81 = vector.multi_reduction <maximumf>, %80, %cst_46 [1] : vector<64x10xf32> to vector<64xf32>
    %82 = vector.shape_cast %81 : vector<64xf32> to vector<64x1xf32>
    %83 = tpu.iota {dimensions = array<i32: 1>} : vector<64x10xi32>
    %84 = vector.broadcast %82 : vector<64x1xf32> to vector<64x10xf32>
    %85 = arith.cmpf oge, %80, %84 : vector<64x10xf32>
    %c10_i32 = arith.constant 10 : i32
    %86 = vector.broadcast %c10_i32 : i32 to vector<64x10xi32>
    %87 = arith.select %85, %83, %86 : vector<64x10xi1>, vector<64x10xi32>
    %cst_47 = arith.constant dense<2147483647> : vector<64xi32>
    %88 = vector.multi_reduction <minsi>, %87, %cst_47 [1] : vector<64x10xi32> to vector<64xi32>
    %89 = vector.shape_cast %88 : vector<64xi32> to vector<64x1xi32>
    %90 = vector.broadcast %89 : vector<64x1xi32> to vector<64x10xi32>
    %91 = arith.cmpi eq, %83, %90 : vector<64x10xi32>
    %92 = arith.extui %91 : vector<64x10xi1> to vector<64x10xi32>
    %93 = arith.sitofp %92 : vector<64x10xi32> to vector<64x10xf32>
    %94 = arith.truncf %93 : vector<64x10xf32> to vector<64x10xbf16>
    %95 = arith.truncf %72 : vector<64x16xf32> to vector<64x16xbf16>
    %cst_48 = arith.constant dense<0.000000e+00> : vector<10x16xf32>
    %96 = tpu.matmul %94, %95, %cst_48 {dimension_numbers = #tpu.dot_dimension_numbers<[0], [0], [1], [1], [0, 1, 1, 1], [], []>} : vector<64x10xbf16>, vector<64x16xbf16>, vector<10x16xf32> -> vector<10x16xf32>
    %97 = arith.mulf %96, %96 : vector<10x16xf32>
    %cst_49 = arith.constant dense<0.000000e+00> : vector<10xf32>
    %98 = vector.multi_reduction <add>, %97, %cst_49 [1] : vector<10x16xf32> to vector<10xf32>
    %99 = vector.shape_cast %98 : vector<10xf32> to vector<10x1xf32>
    %100 = math.sqrt %99 : vector<10x1xf32>
    %cst_50 = arith.constant 9.99999996E-13 : f32
    %101 = vector.broadcast %cst_50 : f32 to vector<10x1xf32>
    %102 = arith.maximumf %100, %101 : vector<10x1xf32>
    %103 = vector.broadcast %102 : vector<10x1xf32> to vector<10x16xf32>
    %104 = arith.divf %96, %103 : vector<10x16xf32>
    %105 = arith.truncf %0 : vector<64x64xf32> to vector<64x64xbf16>
    %cst_51 = arith.constant dense<0.000000e+00> : vector<10x64xf32>
    %106 = tpu.matmul %94, %105, %cst_51 {dimension_numbers = #tpu.dot_dimension_numbers<[0], [0], [1], [1], [0, 1, 1, 1], [], []>} : vector<64x10xbf16>, vector<64x64xbf16>, vector<10x64xf32> -> vector<10x64xf32>
    %107 = arith.truncf %106 : vector<10x64xf32> to vector<10x64xbf16>
    %cst_52 = arith.constant dense<0.000000e+00> : vector<10x10xf32>
    %108 = tpu.matmul %107, %94, %cst_52 {dimension_numbers = #tpu.dot_dimension_numbers<[1], [0], [0], [1], [0, 0, 1, 1], [], []>} : vector<10x64xbf16>, vector<64x10xbf16>, vector<10x10xf32> -> vector<10x10xf32>
    %cst_53 = arith.constant dense<0.000000e+00> : vector<10xf32>
    %109 = vector.multi_reduction <add>, %108, %cst_53 [1] : vector<10x10xf32> to vector<10xf32>
    %110 = vector.shape_cast %109 : vector<10xf32> to vector<10x1xf32>
    %cst_54 = arith.constant dense<0.000000e+00> : vector<1xf32>
    %111 = vector.multi_reduction <add>, %110, %cst_54 [0] : vector<10x1xf32> to vector<1xf32>
    %112 = vector.shape_cast %111 : vector<1xf32> to vector<1x1xf32>
    %cst_55 = arith.constant 9.99999996E-13 : f32
    %113 = vector.broadcast %cst_55 : f32 to vector<1x1xf32>
    %114 = arith.maximumf %112, %113 : vector<1x1xf32>
    %115 = vector.broadcast %114 : vector<1x1xf32> to vector<10x10xf32>
    %116 = arith.divf %108, %115 : vector<10x10xf32>
    %117 = arith.truncf %116 : vector<10x10xf32> to vector<10x10xbf16>
    %118 = arith.truncf %104 : vector<10x16xf32> to vector<10x16xbf16>
    %cst_56 = arith.constant dense<0.000000e+00> : vector<10x16xf32>
    %119 = tpu.matmul %117, %118, %cst_56 {dimension_numbers = #tpu.dot_dimension_numbers<[1], [0], [0], [1], [0, 0, 1, 1], [], []>} : vector<10x10xbf16>, vector<10x16xbf16>, vector<10x16xf32> -> vector<10x16xf32>
    %120 = arith.truncf %119 : vector<10x16xf32> to vector<10x16xbf16>
    %c0_57 = arith.constant 0 : index
    %c0_58 = arith.constant 0 : index
    %121 = vector.load %arg18[%c0_57, %c0_58] : memref<16x16xbf16, #tpu.memory_space<vmem>>, vector<16x16xbf16>
    %cst_59 = arith.constant dense<0.000000e+00> : vector<10x16xf32>
    %122 = tpu.matmul %120, %121, %cst_59 {dimension_numbers = #tpu.dot_dimension_numbers<[1], [0], [0], [1], [0, 0, 1, 1], [], []>} : vector<10x16xbf16>, vector<16x16xbf16>, vector<10x16xf32> -> vector<10x16xf32>
    %c0_60 = arith.constant 0 : index
    %c0_61 = arith.constant 0 : index
    %123 = vector.load %arg19[%c0_60, %c0_61] : memref<1x16xf32, #tpu.memory_space<vmem>>, vector<1x16xf32>
    %124 = vector.broadcast %123 : vector<1x16xf32> to vector<10x16xf32>
    %125 = arith.addf %122, %124 : vector<10x16xf32>
    %126 = math.tanh %125 : vector<10x16xf32>
    %127 = arith.truncf %93 : vector<64x10xf32> to vector<64x10xbf16>
    %128 = arith.truncf %126 : vector<10x16xf32> to vector<10x16xbf16>
    %cst_62 = arith.constant dense<0.000000e+00> : vector<64x16xf32>
    %129 = tpu.matmul %127, %128, %cst_62 {dimension_numbers = #tpu.dot_dimension_numbers<[1], [0], [0], [1], [0, 0, 1, 1], [], []>} : vector<64x10xbf16>, vector<10x16xbf16>, vector<64x16xf32> -> vector<64x16xf32>
    %130 = arith.truncf %126 : vector<10x16xf32> to vector<10x16xbf16>
    %c0_63 = arith.constant 0 : index
    %c0_64 = arith.constant 0 : index
    %131 = vector.load %arg21[%c0_63, %c0_64] : memref<16x5xbf16, #tpu.memory_space<vmem>>, vector<16x5xbf16>
    %cst_65 = arith.constant dense<0.000000e+00> : vector<10x5xf32>
    %132 = tpu.matmul %130, %131, %cst_65 {dimension_numbers = #tpu.dot_dimension_numbers<[1], [0], [0], [1], [0, 0, 1, 1], [], []>} : vector<10x16xbf16>, vector<16x5xbf16>, vector<10x5xf32> -> vector<10x5xf32>
    %c0_66 = arith.constant 0 : index
    %c0_67 = arith.constant 0 : index
    %133 = vector.load %arg22[%c0_66, %c0_67] : memref<1x5xf32, #tpu.memory_space<vmem>>, vector<1x5xf32>
    %134 = vector.broadcast %133 : vector<1x5xf32> to vector<10x5xf32>
    %135 = arith.addf %132, %134 : vector<10x5xf32>
    %c0_68 = arith.constant 0 : index
    %c0_69 = arith.constant 0 : index
    %136 = vector.load %arg20[%c0_68, %c0_69] : memref<10x5xf32, #tpu.memory_space<vmem>>, vector<10x5xf32>
    %137 = arith.addf %135, %136 : vector<10x5xf32>
    %cst_70 = arith.constant dense<0xFF800000> : vector<10xf32>
    %138 = vector.multi_reduction <maximumf>, %137, %cst_70 [1] : vector<10x5xf32> to vector<10xf32>
    %139 = vector.shape_cast %138 : vector<10xf32> to vector<10x1xf32>
    %140 = tpu.iota {dimensions = array<i32: 1>} : vector<10x5xi32>
    %141 = vector.broadcast %139 : vector<10x1xf32> to vector<10x5xf32>
    %142 = arith.cmpf oge, %137, %141 : vector<10x5xf32>
    %c5_i32 = arith.constant 5 : i32
    %143 = vector.broadcast %c5_i32 : i32 to vector<10x5xi32>
    %144 = arith.select %142, %140, %143 : vector<10x5xi1>, vector<10x5xi32>
    %cst_71 = arith.constant dense<2147483647> : vector<10xi32>
    %145 = vector.multi_reduction <minsi>, %144, %cst_71 [1] : vector<10x5xi32> to vector<10xi32>
    %146 = vector.shape_cast %145 : vector<10xi32> to vector<10x1xi32>
    %147 = vector.broadcast %146 : vector<10x1xi32> to vector<10x5xi32>
    %148 = arith.cmpi eq, %140, %147 : vector<10x5xi32>
    %149 = arith.extui %148 : vector<10x5xi1> to vector<10x5xi32>
    %150 = arith.sitofp %149 : vector<10x5xi32> to vector<10x5xf32>
    %151 = arith.truncf %150 : vector<10x5xf32> to vector<10x5xbf16>
    %152 = arith.truncf %93 : vector<64x10xf32> to vector<64x10xbf16>
    %cst_72 = arith.constant dense<0.000000e+00> : vector<64x5xf32>
    %153 = tpu.matmul %152, %151, %cst_72 {dimension_numbers = #tpu.dot_dimension_numbers<[1], [0], [0], [1], [0, 0, 1, 1], [], []>} : vector<64x10xbf16>, vector<10x5xbf16>, vector<64x5xf32> -> vector<64x5xf32>
    %154 = arith.truncf %126 : vector<10x16xf32> to vector<10x16xbf16>
    %cst_73 = arith.constant dense<0.000000e+00> : vector<5x16xf32>
    %155 = tpu.matmul %151, %154, %cst_73 {dimension_numbers = #tpu.dot_dimension_numbers<[0], [0], [1], [1], [0, 1, 1, 1], [], []>} : vector<10x5xbf16>, vector<10x16xbf16>, vector<5x16xf32> -> vector<5x16xf32>
    %156 = arith.mulf %155, %155 : vector<5x16xf32>
    %cst_74 = arith.constant dense<0.000000e+00> : vector<5xf32>
    %157 = vector.multi_reduction <add>, %156, %cst_74 [1] : vector<5x16xf32> to vector<5xf32>
    %158 = vector.shape_cast %157 : vector<5xf32> to vector<5x1xf32>
    %159 = math.sqrt %158 : vector<5x1xf32>
    %cst_75 = arith.constant 9.99999996E-13 : f32
    %160 = vector.broadcast %cst_75 : f32 to vector<5x1xf32>
    %161 = arith.maximumf %159, %160 : vector<5x1xf32>
    %162 = vector.broadcast %161 : vector<5x1xf32> to vector<5x16xf32>
    %163 = arith.divf %155, %162 : vector<5x16xf32>
    %164 = arith.truncf %116 : vector<10x10xf32> to vector<10x10xbf16>
    %cst_76 = arith.constant dense<0.000000e+00> : vector<5x10xf32>
    %165 = tpu.matmul %151, %164, %cst_76 {dimension_numbers = #tpu.dot_dimension_numbers<[0], [0], [1], [1], [0, 1, 1, 1], [], []>} : vector<10x5xbf16>, vector<10x10xbf16>, vector<5x10xf32> -> vector<5x10xf32>
    %166 = arith.truncf %165 : vector<5x10xf32> to vector<5x10xbf16>
    %cst_77 = arith.constant dense<0.000000e+00> : vector<5x5xf32>
    %167 = tpu.matmul %166, %151, %cst_77 {dimension_numbers = #tpu.dot_dimension_numbers<[1], [0], [0], [1], [0, 0, 1, 1], [], []>} : vector<5x10xbf16>, vector<10x5xbf16>, vector<5x5xf32> -> vector<5x5xf32>
    %cst_78 = arith.constant dense<0.000000e+00> : vector<5xf32>
    %168 = vector.multi_reduction <add>, %167, %cst_78 [1] : vector<5x5xf32> to vector<5xf32>
    %169 = vector.shape_cast %168 : vector<5xf32> to vector<5x1xf32>
    %cst_79 = arith.constant dense<0.000000e+00> : vector<1xf32>
    %170 = vector.multi_reduction <add>, %169, %cst_79 [0] : vector<5x1xf32> to vector<1xf32>
    %171 = vector.shape_cast %170 : vector<1xf32> to vector<1x1xf32>
    %cst_80 = arith.constant 9.99999996E-13 : f32
    %172 = vector.broadcast %cst_80 : f32 to vector<1x1xf32>
    %173 = arith.maximumf %171, %172 : vector<1x1xf32>
    %174 = vector.broadcast %173 : vector<1x1xf32> to vector<5x5xf32>
    %175 = arith.divf %167, %174 : vector<5x5xf32>
    %176 = arith.truncf %175 : vector<5x5xf32> to vector<5x5xbf16>
    %177 = arith.truncf %163 : vector<5x16xf32> to vector<5x16xbf16>
    %cst_81 = arith.constant dense<0.000000e+00> : vector<5x16xf32>
    %178 = tpu.matmul %176, %177, %cst_81 {dimension_numbers = #tpu.dot_dimension_numbers<[1], [0], [0], [1], [0, 0, 1, 1], [], []>} : vector<5x5xbf16>, vector<5x16xbf16>, vector<5x16xf32> -> vector<5x16xf32>
    %179 = arith.truncf %178 : vector<5x16xf32> to vector<5x16xbf16>
    %c0_82 = arith.constant 0 : index
    %c0_83 = arith.constant 0 : index
    %180 = vector.load %arg23[%c0_82, %c0_83] : memref<16x16xbf16, #tpu.memory_space<vmem>>, vector<16x16xbf16>
    %cst_84 = arith.constant dense<0.000000e+00> : vector<5x16xf32>
    %181 = tpu.matmul %179, %180, %cst_84 {dimension_numbers = #tpu.dot_dimension_numbers<[1], [0], [0], [1], [0, 0, 1, 1], [], []>} : vector<5x16xbf16>, vector<16x16xbf16>, vector<5x16xf32> -> vector<5x16xf32>
    %c0_85 = arith.constant 0 : index
    %c0_86 = arith.constant 0 : index
    %182 = vector.load %arg24[%c0_85, %c0_86] : memref<1x16xf32, #tpu.memory_space<vmem>>, vector<1x16xf32>
    %183 = vector.broadcast %182 : vector<1x16xf32> to vector<5x16xf32>
    %184 = arith.addf %181, %183 : vector<5x16xf32>
    %185 = math.tanh %184 : vector<5x16xf32>
    %186 = arith.truncf %153 : vector<64x5xf32> to vector<64x5xbf16>
    %187 = arith.truncf %185 : vector<5x16xf32> to vector<5x16xbf16>
    %cst_87 = arith.constant dense<0.000000e+00> : vector<64x16xf32>
    %188 = tpu.matmul %186, %187, %cst_87 {dimension_numbers = #tpu.dot_dimension_numbers<[1], [0], [0], [1], [0, 0, 1, 1], [], []>} : vector<64x5xbf16>, vector<5x16xbf16>, vector<64x16xf32> -> vector<64x16xf32>
    %189 = tpu.concatenate %72, %129, %188 in 1 : vector<64x16xf32>, vector<64x16xf32>, vector<64x16xf32> -> vector<64x48xf32>
    %190 = arith.truncf %189 : vector<64x48xf32> to vector<64x48xbf16>
    %c0_88 = arith.constant 0 : index
    %c0_89 = arith.constant 0 : index
    %191 = vector.load %arg25[%c0_88, %c0_89] : memref<48x512xbf16, #tpu.memory_space<vmem>>, vector<48x512xbf16>
    %cst_90 = arith.constant dense<0.000000e+00> : vector<64x512xf32>
    %192 = tpu.matmul %190, %191, %cst_90 {dimension_numbers = #tpu.dot_dimension_numbers<[1], [0], [0], [1], [0, 0, 1, 1], [], []>} : vector<64x48xbf16>, vector<48x512xbf16>, vector<64x512xf32> -> vector<64x512xf32>
    %c0_91 = arith.constant 0 : index
    %c0_92 = arith.constant 0 : index
    %193 = vector.load %arg26[%c0_91, %c0_92] : memref<1x512xf32, #tpu.memory_space<vmem>>, vector<1x512xf32>
    %194 = vector.broadcast %193 : vector<1x512xf32> to vector<64x512xf32>
    %195 = arith.addf %192, %194 : vector<64x512xf32>
    %cst_93 = arith.constant 0.000000e+00 : f32
    %196 = vector.broadcast %cst_93 : f32 to vector<64x512xf32>
    %197 = arith.maximumf %195, %196 : vector<64x512xf32>
    %198 = arith.truncf %197 : vector<64x512xf32> to vector<64x512xbf16>
    %c0_94 = arith.constant 0 : index
    %c0_95 = arith.constant 0 : index
    %199 = vector.load %arg27[%c0_94, %c0_95] : memref<512x1xbf16, #tpu.memory_space<vmem>>, vector<512x1xbf16>
    %cst_96 = arith.constant dense<0.000000e+00> : vector<64x1xf32>
    %200 = tpu.matmul %198, %199, %cst_96 {dimension_numbers = #tpu.dot_dimension_numbers<[1], [0], [0], [1], [0, 0, 1, 1], [], []>} : vector<64x512xbf16>, vector<512x1xbf16>, vector<64x1xf32> -> vector<64x1xf32>
    %c0_97 = arith.constant 0 : index
    %c0_98 = arith.constant 0 : index
    %201 = vector.load %arg28[%c0_97, %c0_98] : memref<1x1xf32, #tpu.memory_space<vmem>>, vector<1x1xf32>
    %202 = vector.broadcast %201 : vector<1x1xf32> to vector<64x1xf32>
    %203 = arith.addf %200, %202 : vector<64x1xf32>
    %cst_99 = arith.constant 0.000000e+00 : f32
    %204 = vector.broadcast %cst_99 : f32 to vector<64x1xf32>
    %205 = arith.maximumf %203, %204 : vector<64x1xf32>
    %c0_100 = arith.constant 0 : index
    %c0_101 = arith.constant 0 : index
    %206 = vector.load %arg29[%c0_100, %c0_101] : memref<64x1xf32, #tpu.memory_space<vmem>>, vector<64x1xf32>
    tpu.vector_store %arg29[%c0_100, %c0_101], %205 {strides = array<i32>} : memref<64x1xf32, #tpu.memory_space<vmem>>, vector<64x1xf32>,
    return
  }
  func.func @transform_0(%arg0: i32) -> (i32, i32) {
    %c0_i32 = arith.constant 0 : i32
    %c0_i32_0 = arith.constant 0 : i32
    %c0_i32_1 = arith.constant 0 : i32
    return %c0_i32, %c0_i32_0 : i32, i32
  }
  func.func @transform_1(%arg0: i32) -> (i32, i32) {
    %c0_i32 = arith.constant 0 : i32
    %c0_i32_0 = arith.constant 0 : i32
    %c0_i32_1 = arith.constant 0 : i32
    return %c0_i32, %c0_i32_0 : i32, i32
  }
  func.func @transform_2(%arg0: i32) -> (i32, i32) {
    %c0_i32 = arith.constant 0 : i32
    %c0_i32_0 = arith.constant 0 : i32
    %c0_i32_1 = arith.constant 0 : i32
    return %c0_i32, %c0_i32_0 : i32, i32
  }
  func.func @transform_3(%arg0: i32) -> (i32, i32) {
    %c0_i32 = arith.constant 0 : i32
    %c0_i32_0 = arith.constant 0 : i32
    %c0_i32_1 = arith.constant 0 : i32
    return %c0_i32, %c0_i32_0 : i32, i32
  }
  func.func @transform_4(%arg0: i32) -> (i32, i32) {
    %c0_i32 = arith.constant 0 : i32
    %c0_i32_0 = arith.constant 0 : i32
    %c0_i32_1 = arith.constant 0 : i32
    return %c0_i32, %c0_i32_0 : i32, i32
  }
  func.func @transform_5(%arg0: i32) -> (i32, i32) {
    %c0_i32 = arith.constant 0 : i32
    %c0_i32_0 = arith.constant 0 : i32
    %c0_i32_1 = arith.constant 0 : i32
    return %c0_i32, %c0_i32_0 : i32, i32
  }
  func.func @transform_6(%arg0: i32) -> (i32, i32) {
    %c0_i32 = arith.constant 0 : i32
    %c0_i32_0 = arith.constant 0 : i32
    %c0_i32_1 = arith.constant 0 : i32
    return %c0_i32, %c0_i32_0 : i32, i32
  }
  func.func @transform_7(%arg0: i32) -> (i32, i32) {
    %c0_i32 = arith.constant 0 : i32
    %c0_i32_0 = arith.constant 0 : i32
    %c0_i32_1 = arith.constant 0 : i32
    return %c0_i32, %c0_i32_0 : i32, i32
  }
  func.func @transform_8(%arg0: i32) -> (i32, i32) {
    %c0_i32 = arith.constant 0 : i32
    %c0_i32_0 = arith.constant 0 : i32
    %c0_i32_1 = arith.constant 0 : i32
    return %c0_i32, %c0_i32_0 : i32, i32
  }
  func.func @transform_9(%arg0: i32) -> (i32, i32) {
    %c0_i32 = arith.constant 0 : i32
    %c0_i32_0 = arith.constant 0 : i32
    %c0_i32_1 = arith.constant 0 : i32
    return %c0_i32, %c0_i32_0 : i32, i32
  }
  func.func @transform_10(%arg0: i32) -> (i32, i32) {
    %c0_i32 = arith.constant 0 : i32
    %c0_i32_0 = arith.constant 0 : i32
    %c0_i32_1 = arith.constant 0 : i32
    return %c0_i32, %c0_i32_0 : i32, i32
  }
  func.func @transform_11(%arg0: i32) -> (i32, i32) {
    %c0_i32 = arith.constant 0 : i32
    %c0_i32_0 = arith.constant 0 : i32
    %c0_i32_1 = arith.constant 0 : i32
    return %c0_i32, %c0_i32_0 : i32, i32
  }
  func.func @transform_12(%arg0: i32) -> (i32, i32) {
    %c0_i32 = arith.constant 0 : i32
    %c0_i32_0 = arith.constant 0 : i32
    %c0_i32_1 = arith.constant 0 : i32
    return %c0_i32, %c0_i32_0 : i32, i32
  }
  func.func @transform_13(%arg0: i32) -> (i32, i32) {
    %c0_i32 = arith.constant 0 : i32
    %c0_i32_0 = arith.constant 0 : i32
    %c0_i32_1 = arith.constant 0 : i32
    return %c0_i32, %c0_i32_0 : i32, i32
  }
  func.func @transform_14(%arg0: i32) -> (i32, i32) {
    %c0_i32 = arith.constant 0 : i32
    %c0_i32_0 = arith.constant 0 : i32
    %c0_i32_1 = arith.constant 0 : i32
    return %c0_i32, %c0_i32_0 : i32, i32
  }
  func.func @transform_15(%arg0: i32) -> (i32, i32) {
    %c0_i32 = arith.constant 0 : i32
    %c0_i32_0 = arith.constant 0 : i32
    %c0_i32_1 = arith.constant 0 : i32
    return %c0_i32, %c0_i32_0 : i32, i32
  }
  func.func @transform_16(%arg0: i32) -> (i32, i32) {
    %c0_i32 = arith.constant 0 : i32
    %c0_i32_0 = arith.constant 0 : i32
    %c0_i32_1 = arith.constant 0 : i32
    return %c0_i32, %c0_i32_0 : i32, i32
  }
  func.func @transform_17(%arg0: i32) -> (i32, i32) {
    %c0_i32 = arith.constant 0 : i32
    %c0_i32_0 = arith.constant 0 : i32
    %c0_i32_1 = arith.constant 0 : i32
    return %c0_i32, %c0_i32_0 : i32, i32
  }
  func.func @transform_18(%arg0: i32) -> (i32, i32) {
    %c0_i32 = arith.constant 0 : i32
    %c0_i32_0 = arith.constant 0 : i32
    %c0_i32_1 = arith.constant 0 : i32
    return %c0_i32, %c0_i32_0 : i32, i32
  }
  func.func @transform_19(%arg0: i32) -> (i32, i32) {
    %c0_i32 = arith.constant 0 : i32
    %c0_i32_0 = arith.constant 0 : i32
    %c0_i32_1 = arith.constant 0 : i32
    return %c0_i32, %c0_i32_0 : i32, i32
  }
  func.func @transform_20(%arg0: i32) -> (i32, i32) {
    %c0_i32 = arith.constant 0 : i32
    %c0_i32_0 = arith.constant 0 : i32
    %c0_i32_1 = arith.constant 0 : i32
    return %c0_i32, %c0_i32_0 : i32, i32
  }
  func.func @transform_21(%arg0: i32) -> (i32, i32) {
    %c0_i32 = arith.constant 0 : i32
    %c0_i32_0 = arith.constant 0 : i32
    %c0_i32_1 = arith.constant 0 : i32
    return %c0_i32, %c0_i32_0 : i32, i32
  }
  func.func @transform_22(%arg0: i32) -> (i32, i32) {
    %c0_i32 = arith.constant 0 : i32
    %c0_i32_0 = arith.constant 0 : i32
    %c0_i32_1 = arith.constant 0 : i32
    return %c0_i32, %c0_i32_0 : i32, i32
  }
  func.func @transform_23(%arg0: i32) -> (i32, i32) {
    %c0_i32 = arith.constant 0 : i32
    %c0_i32_0 = arith.constant 0 : i32
    %c0_i32_1 = arith.constant 0 : i32
    return %c0_i32, %c0_i32_0 : i32, i32
  }
  func.func @transform_24(%arg0: i32) -> (i32, i32) {
    %c0_i32 = arith.constant 0 : i32
    %c0_i32_0 = arith.constant 0 : i32
    %c0_i32_1 = arith.constant 0 : i32
    return %c0_i32, %c0_i32_0 : i32, i32
  }
  func.func @transform_25(%arg0: i32) -> (i32, i32) {
    %c0_i32 = arith.constant 0 : i32
    %c0_i32_0 = arith.constant 0 : i32
    %c0_i32_1 = arith.constant 0 : i32
    return %c0_i32, %c0_i32_0 : i32, i32
  }
  func.func @transform_26(%arg0: i32) -> (i32, i32) {
    %c0_i32 = arith.constant 0 : i32
    %c0_i32_0 = arith.constant 0 : i32
    %c0_i32_1 = arith.constant 0 : i32
    return %c0_i32, %c0_i32_0 : i32, i32
  }
  func.func @transform_27(%arg0: i32) -> (i32, i32) {
    %c0_i32 = arith.constant 0 : i32
    %c0_i32_0 = arith.constant 0 : i32
    %c0_i32_1 = arith.constant 0 : i32
    return %c0_i32, %c0_i32_0 : i32, i32
  }
  func.func @transform_28(%arg0: i32) -> (i32, i32) {
    %c0_i32 = arith.constant 0 : i32
    %c0_i32_0 = arith.constant 0 : i32
    %c0_i32_1 = arith.constant 0 : i32
    return %c0_i32, %c0_i32_0 : i32, i32
  }
}

</mosaic_0001>

<bundles_post_ra>
// kernel: mgnn_forward.1
= control target key start
LH: loop header
LB: loop body
LE: loop exit
PB: predicated region body
PF: predicated region fallthrough
CT: control target
= control target key end

     0   :  { %vm4176_vm0 = vcmask 1041408   ;;  %v108_v0 = vlaneseq  ;;  %vm4175_vm1 = vcmask 31744   ;;  %v2917_v19 = vmov 0.0   ;;  %s4143_s2 = inlined_call_operand.vmem [shape: bf16[4,16], index: 2, kind: input, shape index: {}]   ;;  %s4144_s1 = inlined_call_operand.vmem [shape: f32[64,4], index: 1, kind: input, shape index: {}]   ;;  %s4145_s0 = inlined_call_operand.vmem [shape: f32[64,64], index: 0, kind: input, shape index: {}]   ;;  %s4146_s3 = inlined_call_operand.vmem [shape: f32[1,16], index: 3, kind: input, shape index: {}]   ;;  %s4147_s6 = inlined_call_operand.vmem [shape: f32[1,16], index: 6, kind: input, shape index: {}]   ;;  %s4148_s7 = inlined_call_operand.vmem [shape: f32[1,16], index: 7, kind: input, shape index: {}]   ;;  %s4149_s4 = inlined_call_operand.vmem [shape: bf16[16,16], index: 4, kind: input, shape index: {}]   ;;  %s4150_s5 = inlined_call_operand.vmem [shape: f32[1,16], index: 5, kind: input, shape index: {}]   ;;  %s4151_s8 = inlined_call_operand.vmem [shape: f32[1,16], index: 8, kind: input, shape index: {}]   ;;  %s4152_s9 = inlined_call_operand.vmem [shape: f32[1,16], index: 9, kind: input, shape index: {}]   ;;  %s4153_s11 = inlined_call_operand.vmem [shape: f32[1,16], index: 11, kind: input, shape index: {}]   ;;  %s4154_s10 = inlined_call_operand.vmem [shape: bf16[36,16], index: 10, kind: input, shape index: {}]   ;;  %s4155_s13 = inlined_call_operand.vmem [shape: f32[1,16], index: 13, kind: input, shape index: {}]   ;;  %s4156_s12 = inlined_call_operand.vmem [shape: bf16[16,16], index: 12, kind: input, shape index: {}]   ;;  %s4157_s16 = inlined_call_operand.vmem [shape: f32[1,10], index: 16, kind: input, shape index: {}]   ;;  %s4158_s15 = inlined_call_operand.vmem [shape: bf16[16,10], index: 15, kind: input, shape index: {}]   ;;  %s4159_s14 = inlined_call_operand.vmem [shape: f32[64,10], index: 14, kind: input, shape index: {}]   ;;  %s4160_s20 = inlined_call_operand.vmem [shape: bf16[16,5], index: 20, kind: input, shape index: {}]   ;;  %s4161_s17 = inlined_call_operand.vmem [shape: bf16[16,16], index: 17, kind: input, shape index: {}]   ;;  %s4162_s18 = inlined_call_operand.vmem [shape: f32[1,16], index: 18, kind: input, shape index: {}]   ;;  %s4163_s21 = inlined_call_operand.vmem [shape: f32[1,5], index: 21, kind: input, shape index: {}]   ;;  %s4164_s19 = inlined_call_operand.vmem [shape: f32[10,5], index: 19, kind: input, shape index: {}]   ;;  %s4165_s23 = inlined_call_operand.vmem [shape: f32[1,16], index: 23, kind: input, shape index: {}]   ;;  %s4166_s22 = inlined_call_operand.vmem [shape: bf16[16,16], index: 22, kind: input, shape index: {}]   ;;  %s4167_s24 = inlined_call_operand.vmem [shape: bf16[48,512], index: 24, kind: input, shape index: {}]   ;;  %s4168_s26 = inlined_call_operand.vmem [shape: bf16[512,1], index: 26, kind: input, shape index: {}]   ;;  %s4169_s25 = inlined_call_operand.vmem [shape: f32[1,512], index: 25, kind: input, shape index: {}]   ;;  %s4170_s27 = inlined_call_operand.<no memory space> [shape: f32[1,1], index: 27, kind: input, shape index: {}]   ;;  %s4171_s28 = inlined_call_operand.vmem [shape: f32[64,1], index: 28, kind: output, shape index: {}]  }
   0x1   :  { %4177 = sst [smem:[#allocation3_spill]] %s4143_s2  ;;  %vm151_vm6 = vcmask 523264  }
   0x2   :  { %4178 = sst [smem:[#allocation4_spill]] %s4144_s1  ;;  %v109_v6 = vshrl.u32 %v108_v0, 7  ;;  %v3085_v7 = vand.u32 127, %v108_v0 }
   0x3   :  { %4179 = sst [smem:[#allocation5_spill]] %s4145_s0 }
   0x4   :  { %4180 = sst [smem:[#allocation6_spill]] %s4146_s3  ;;  %v115_v9 = vadd.s32 48, %v109_v6  ;;  %v113_v10 = vadd.s32 32, %v109_v6  ;;  %v111_v11 = vadd.s32 16, %v109_v6  ;;  %v116_v13 = vadd.s32 56, %v109_v6 }
   0x5   :  { %4181 = sst [smem:[#allocation7_spill]] %s4147_s6  ;;  %v114_v17 = vadd.s32 40, %v109_v6  ;;  %v112_v18 = vadd.s32 24, %v109_v6  ;;  %v110_v28 = vadd.s32 8, %v109_v6  ;;  %vm119_vm9 = vcmp.eq.s32.totalorder %v109_v6, %v3085_v7 }
   0x6   :  { %4182 = sst [smem:[#allocation8_spill]] %s4148_s7  ;;  %vm125_vm2 = vcmp.eq.s32.totalorder %v115_v9, %v3085_v7  ;;  %vm123_vm3 = vcmp.eq.s32.totalorder %v113_v10, %v3085_v7  ;;  %vm121_vm4 = vcmp.eq.s32.totalorder %v111_v11, %v3085_v7  ;;  %vm126_vm5 = vcmp.eq.s32.totalorder %v116_v13, %v3085_v7 }
   0x7   :  { %4183 = sst [smem:[#allocation9_spill]] %s4149_s4  ;;  %v2421_v20 = vsel %vm125_vm2, 1.0, %v2917_v19  ;;  %v2419_v21 = vsel %vm123_vm3, 1.0, %v2917_v19  ;;  %v2417_v22 = vsel %vm121_vm4, 1.0, %v2917_v19  ;;  %v2422_v26 = vsel %vm126_vm5, 1.0, %v2917_v19 }
   0x8   :  { %4184 = sst [smem:[#allocation10_spill]] %s4150_s5  ;;  %vm124_vm7 = vcmp.eq.s32.totalorder %v114_v17, %v3085_v7  ;;  %vm122_vm8 = vcmp.eq.s32.totalorder %v112_v18, %v3085_v7  ;;  %vm120_vm10 = vcmp.eq.s32.totalorder %v110_v28, %v3085_v7  ;;  %v2415_v37 = vsel %vm119_vm9, 1.0, %v2917_v19 }
   0x9   :  { %4185 = sst [smem:[#allocation11_spill]] %s4151_s8  ;;  %v2420_v35 = vsel %vm124_vm7, 1.0, %v2917_v19  ;;  %v2418_v36 = vsel %vm122_vm8, 1.0, %v2917_v19  ;;  %v2416_v40 = vsel %vm120_vm10, 1.0, %v2917_v19 }
   0xa   :  { %4186 = sst [smem:[#allocation12_spill]] %s4152_s9 }
   0xb   :  { %4187 = sst [smem:[#allocation13_spill]] %s4153_s11 }
   0xc   :  { %4188 = sst [smem:[#allocation14_spill]] %s4154_s10  ;;  %s2918_s10 = smov 4  }
   0xd   :  { %4189 = sst [smem:[#allocation15_spill]] %s4155_s13 }
   0xe   :  { %s4190_s9 = sld [smem:[#allocation3_spill]] }
   0xf   :  { %s4191_s4 = sld [smem:[#allocation4_spill]] }
  0x10   :  { %s4192_s1 = sld [smem:[#allocation5_spill]] }
  0x11   :  { %s4209_s13 = sld [smem:[#allocation9_spill]] }
  0x12   :  { %s4210_s8 = sld [smem:[#allocation6_spill]] }
  0x13   :  { %s4211_s30 = sld [smem:[#allocation7_spill]] }
  0x14   :  { %v280_v1 = vld [vmem:[%s4190_s9] sm:$0x3]  ;;  %s4212_s0 = sld [smem:[#allocation8_spill]] }
  0x15   :  { %v3075_v2 = vld [vmem:[%s4191_s4] sm:$0xff]  ;;  %v3080_v3 = vld [vmem:[%s4191_s4 + $0x8] sm:$0xff]  ;;  %v296_v4 = vsel %vm4176_vm0, %v280_v1, 0  ;;  %v3157_v44 = vld [vmem:[%s4191_s4 + $0x10] sm:$0xff]  ;;  %s4213_s5 = sld [smem:[#allocation10_spill]] }
  0x16   :  { %v276_v5 = vpack.c.bf16 %v3080_v3, %v3075_v2  ;;  %305 = vmatpush.bf16.msra.mxu0 %v296_v4  ;;  %v3090_v8 = vld [vmem:[%s4192_s1 + $0x30] sm:$0xff]  ;;  %v3095_v12 = vld [vmem:[%s4192_s1 + $0x38] sm:$0xff]  ;;  %v96_v14 = vld [vmem:[%s4192_s1 + $0x20] sm:$0xff]  ;;  %s4214_s6 = sld [smem:[#allocation11_spill]] }
  0x17   :  { %v94_v15 = vld [vmem:[%s4192_s1 + $0x10] sm:$0xff]  ;;  %v1169_v16 = vpack.c.bf16 %v3095_v12, %v3090_v8  ;;  %v3114_v23 = vadd.f32 %v2421_v20, %v3090_v8  ;;  %v3116_v24 = vadd.f32 %v2419_v21, %v96_v14  ;;  %v97_v27 = vld [vmem:[%s4192_s1 + $0x28] sm:$0xff]  ;;  %v95_v32 = vld [vmem:[%s4192_s1 + $0x18] sm:$0xff]  ;;  %v3147_v38 = vadd.f32 %v2422_v26, %v3095_v12  ;;  %s4215_s9 = sld [smem:[#allocation12_spill]] }
  0x18   :  { %v3118_v25 = vadd.f32 %v2417_v22, %v94_v15  ;;  %v93_v33 = vld [vmem:[%s4192_s1 + $0x8] sm:$0xff]  ;;  %v92_v34 = vld [vmem:[%s4192_s1] sm:$0xff]  ;;  %v3149_v39 = vadd.f32 %v2420_v35, %v97_v27  ;;  %v3152_v41 = vadd.f32 %v2418_v36, %v95_v32  ;;  %v3162_v45 = vld [vmem:[%s4191_s4 + $0x18] sm:$0xff]  ;;  %s4226_s7 = sld [smem:[#allocation13_spill]] }
  0x19   :  { %2423 = vmatmul.msk.bf16.vlgmr.msra.gmra.mxu0 %vm4175_vm1, %v276_v5  ;;  %v170_v29 = vsel %vm151_vm6, %v3114_v23, 0.0  ;;  %v164_v30 = vsel %vm151_vm6, %v3116_v24, 0.0  ;;  %v144_v42 = vadd.f32 %v2416_v40, %v93_v33  ;;  %v143_v43 = vadd.f32 %v2415_v37, %v92_v34  ;;  %v3180_v53 = vld [vmem:[%s4191_s4 + $0x20] sm:$0xff]  ;;  %v3185_v54 = vld [vmem:[%s4191_s4 + $0x28] sm:$0xff]  ;;  %v3193_v56 = vld [vmem:[%s4191_s4 + $0x30] sm:$0xff]  ;;  %s4227_s11 = sld [smem:[#allocation15_spill]] }
  0x1a   :  { %v158_v31 = vsel %vm151_vm6, %v3118_v25, 0.0  ;;  %171 = vadd.xlane.f32.xlu0 %v170_v29  ;;  %165 = vadd.xlane.f32.xlu1 %v164_v30  ;;  %v173_v47 = vsel %vm151_vm6, %v3147_v38, 0.0  ;;  %v167_v48 = vsel %vm151_vm6, %v3149_v39, 0.0  ;;  %v161_v49 = vsel %vm151_vm6, %v3152_v41, 0.0  ;;  %v3198_v57 = vld [vmem:[%s4191_s4 + $0x38] sm:$0xff]  ;;  %v864_v8 = vld [vmem:[%s4159_s14 + $0x8] sm:$0xff] }
  0x1b   :  { %159 = vadd.xlane.f32.xlu2 %v158_v31  ;;  %v3164_v46 = vpack.c.bf16 %v144_v42, %v143_v43  ;;  %v277_v50 = vpack.c.bf16 %v3162_v45, %v3157_v44  ;;  %v155_v51 = vsel %vm151_vm6, %v144_v42, 0.0  ;;  %v152_v52 = vsel %vm151_vm6, %v143_v43, 0.0 }
  0x1c   :  { %v278_v55 = vpack.c.bf16 %v3185_v54, %v3180_v53  ;;  %v279_v58 = vpack.c.bf16 %v3198_v57, %v3193_v56 }
  0x22   :  { %174 = vadd.xlane.f32.xlu0 %v173_v47  ;;  %168 = vadd.xlane.f32.xlu1 %v167_v48 }
  0x23   :  { %162 = vadd.xlane.f32.xlu2 %v161_v49 }
  0x29   :  { %2424 = vmatmul.msk.bf16.gmra.mxu0 %vm4175_vm1, %v277_v50 }
  0x2a   :  { %156 = vadd.xlane.f32.xlu1 %v155_v51  ;;  %153 = vadd.xlane.f32.xlu0 %v152_v52 }
  0x39   :  { %2425 = vmatmul.msk.bf16.gmra.mxu0 %vm4175_vm1, %v278_v55 }
  0x49   :  { %2426 = vmatmul.msk.bf16.gmra.mxu0 %vm4175_vm1, %v279_v58 }
  0x8d   :  { %v3205_v60 = vpop.xlane.xlu1 %165  ;;  %v3209_v62 = vpop.xlane.xlu0 %171 }
  0x8e   :  { %v3211_v63 = vpop.xlane.xlu2 %159  ;;  %2873 = vrsqrt.f32 %v3209_v62  ;;  %vm250_vm11 = vweird.f32 %v3209_v62  ;;  %vm230_vm4 = vweird.f32 %v3205_v60 }
  0x8f   :  { %vm210_vm8 = vweird.f32 %v3211_v63 }
  0x94   :  { %v3228_v9 = vpop.eup %2873 }
  0x95   :  { %v3215_v1 = vpop.xlane.xlu1 %168  ;;  %v3217_v4 = vpop.xlane.xlu0 %174  ;;  %v245_v17 = vmul.f32 %v3228_v9, %v3209_v62  ;;  %vm251_vm12 = vweird.f32 %v3228_v9 }
  0x96   :  { %v3203_v59 = vpop.f32.mrf.mxu0  ;;  %2875 = vrsqrt.f32 %v3217_v4  ;;  %v3222_v5 = vpop.xlane.xlu2 %162  ;;  %vm260_vm13 = vweird.f32 %v3217_v4  ;;  %vm240_vm15 = vweird.f32 %v3215_v1  ;;  %vm3285_vm3 = vmor %vm250_vm11, %vm251_vm12  ;;  %vm183_vm12 = vcmp.gt.f32.partialorder %v3217_v4, 0.0 }
  0x97   :  { %2877 = vrsqrt.f32 %v3215_v1  ;;  %v246_v28 = vmul.f32 %v3228_v9, %v245_v17  ;;  %vm220_vm10 = vweird.f32 %v3222_v5 }
  0x98   :  { %2879 = vrsqrt.f32 %v3205_v60 }
  0x99   :  { %2881 = vrsqrt.f32 %v3222_v5  ;;  %v247_v36 = vmul.f32 0.5, %v246_v28 }
  0x9a   :  { %2883 = vrsqrt.f32 %v3211_v63 }
  0x9b   :  { %v248_v51 = vsub.f32 1.5, %v247_v36 }
  0x9c   :  { %v3232_v11 = vpop.eup %2875 }
  0x9d   :  { %v3230_v10 = vpop.xlane.xlu1 %156  ;;  %v3234_v13 = vpop.xlane.xlu0 %153  ;;  %v255_v21 = vmul.f32 %v3232_v11, %v3217_v4  ;;  %vm261_vm14 = vweird.f32 %v3232_v11 }
  0x9e   :  { %v3207_v61 = vpop.f32.mrf.mxu0  ;;  %v3236_v14 = vpop.eup %2877  ;;  %2885 = vrsqrt.f32 %v3230_v10  ;;  %vm3293_vm7 = vmor %vm260_vm13, %vm261_vm14  ;;  %vm182_vm13 = vcmp.gt.f32.partialorder %v3209_v62, 0.0 }
  0x9f   :  { %v3240_v15 = vpop.eup %2879  ;;  %2887 = vrsqrt.f32 %v3234_v13  ;;  %v235_v22 = vmul.f32 %v3236_v14, %v3215_v1  ;;  %v256_v31 = vmul.f32 %v3232_v11, %v255_v21  ;;  %vm241_vm2 = vweird.f32 %v3236_v14 }
  0xa0   :  { %v3247_v20 = vpop.eup %2881  ;;  %v225_v26 = vmul.f32 %v3240_v15, %v3205_v60  ;;  %vm231_vm5 = vweird.f32 %v3240_v15  ;;  %vm3299_vm9 = vmor %vm240_vm15, %vm241_vm2  ;;  %vm181_vm2 = vcmp.gt.f32.partialorder %v3215_v1, 0.0 }
  0xa1   :  { %v3255_v27 = vpop.eup %2883  ;;  %v215_v29 = vmul.f32 %v3247_v20, %v3222_v5  ;;  %v236_v32 = vmul.f32 %v3236_v14, %v235_v22  ;;  %v257_v42 = vmul.f32 0.5, %v256_v31  ;;  %v249_v31 = vmul.f32 %v3228_v9, %v248_v51  ;;  %vm3312_vm14 = vmor %vm230_vm4, %vm231_vm5 }
  0xa2   :  { %v226_v34 = vmul.f32 %v3240_v15, %v225_v26  ;;  %v205_v35 = vmul.f32 %v3255_v27, %v3211_v63  ;;  %vm221_vm11 = vweird.f32 %v3247_v20  ;;  %vm211_vm15 = vweird.f32 %v3255_v27 }
  0xa3   :  { %v216_v37 = vmul.f32 %v3247_v20, %v215_v29  ;;  %v237_v43 = vmul.f32 0.5, %v236_v32  ;;  %v258_v55 = vsub.f32 1.5, %v257_v42  ;;  %v253_v51 = vsel %vm3285_vm3, %v3228_v9, %v249_v31  ;;  %vm3322_vm1 = vmor %vm220_vm10, %vm221_vm11 }
  0xa4   :  { %v3260_v30 = vpop.eup %2885  ;;  %v227_v49 = vmul.f32 0.5, %v226_v34  ;;  %v206_v50 = vmul.f32 %v3255_v27, %v205_v35  ;;  %vm179_vm4 = vcmp.gt.f32.partialorder %v3222_v5, 0.0  ;;  %vm200_vm5 = vweird.f32 %v3230_v10 }
  0xa5   :  { %v3264_v33 = vpop.eup %2887  ;;  %v195_v47 = vmul.f32 %v3260_v30, %v3230_v10  ;;  %v217_v52 = vmul.f32 0.5, %v216_v37  ;;  %v238_v58 = vsub.f32 1.5, %v237_v43  ;;  %v259_v34 = vmul.f32 %v3232_v11, %v258_v55 }
  0xa6   :  { %v3213_v0 = vpop.f32.mrf.mxu0  ;;  %v185_v48 = vmul.f32 %v3264_v33, %v3234_v13  ;;  %v228_v22 = vsub.f32 1.5, %v227_v49  ;;  %v207_v26 = vmul.f32 0.5, %v206_v50  ;;  %vm201_vm3 = vweird.f32 %v3260_v30 }
  0xa7   :  { %v196_v17 = vmul.f32 %v3260_v30, %v195_v47  ;;  %v218_v29 = vsub.f32 1.5, %v217_v52  ;;  %v239_v36 = vmul.f32 %v3236_v14, %v238_v58  ;;  %vm180_vm10 = vcmp.gt.f32.partialorder %v3205_v60, 0.0 }
  0xa8   :  { %v186_v21 = vmul.f32 %v3264_v33, %v185_v48  ;;  %v208_v47 = vsub.f32 1.5, %v207_v26  ;;  %v229_v48 = vmul.f32 %v3240_v15, %v228_v22  ;;  %vm190_vm11 = vweird.f32 %v3234_v13 }
  0xa9   :  { %v197_v37 = vmul.f32 0.5, %v196_v17  ;;  %v219_v50 = vmul.f32 %v3247_v20, %v218_v29  ;;  %v243_v17 = vsel %vm3299_vm9, %v3236_v14, %v239_v36  ;;  %vm191_vm0 = vweird.f32 %v3264_v33 }
  0xaa   :  { %v187_v42 = vmul.f32 0.5, %v186_v21  ;;  %v263_v21 = vsel %vm3293_vm7, %v3232_v11, %v259_v34  ;;  %v209_v9 = vmul.f32 %v3255_v27, %v208_v47  ;;  %v233_v14 = vsel %vm3312_vm14, %v3240_v15, %v229_v48  ;;  %vm3346_vm7 = vmor %vm210_vm8, %vm211_vm15 }
  0xab   :  { %v198_v55 = vsub.f32 1.5, %v197_v37  ;;  %v223_v22 = vsel %vm3322_vm1, %v3247_v20, %v219_v50  ;;  %v3355_v26 = vsel %vm181_vm2, %v243_v17, 0.0  ;;  %v3359_v28 = vsel %vm182_vm13, %v253_v51, 0.0  ;;  %vm3366_vm8 = vmor %vm200_vm5, %vm201_vm3 }
  0xac   :  { %v188_v58 = vsub.f32 1.5, %v187_v42  ;;  %v3363_v15 = vsel %vm183_vm12, %v263_v21, 0.0  ;;  %vm3375_vm1 = vmor %vm190_vm11, %vm191_vm0  ;;  %v3381_v4 = vsel %vm180_vm10, %v233_v14, 0.0  ;;  %vm178_vm9 = vcmp.gt.f32.partialorder %v3211_v63, 0.0 }
  0xad   :  { %v199_v31 = vmul.f32 %v3260_v30, %v198_v55  ;;  %v213_v36 = vsel %vm3346_vm7, %v3255_v27, %v209_v9  ;;  %vm177_vm12 = vcmp.gt.f32.partialorder %v3230_v10, 0.0  ;;  %v3392_v42 = vsel %vm179_vm4, %v223_v22, 0.0  ;;  %v2861_v55 = vld [vmem:[%s4211_s30] ss:$0 sm:$0xff]  ;;  %s2919_s30 = smov 20  }
  0xae   :  { %v3224_v6 = vpop.f32.mrf.mxu0  ;;  %v189_v20 = vmul.f32 %v3264_v33, %v188_v58  ;;  %vm176_vm0 = vcmp.gt.f32.partialorder %v3234_v13, 0.0  ;;  %v3403_v10 = vsel %vm178_vm9, %v213_v36, 0.0  ;;  %v3419_v48 = vpack.c.bf16 %v3149_v39, %v3116_v24  ;;  %v2716_v24 = vld [vmem:[%s4209_s13] sm:$0xff] }
  0xaf   :  { %v203_v60 = vsel %vm3366_vm8, %v3260_v30, %v199_v31  ;;  %v330_v5 = vmul.f32 %v3224_v6, %v3392_v42  ;;  %v329_v13 = vmul.f32 %v3213_v0, %v3403_v10  ;;  %464 = vmatpush.bf16.msra.mxu2 %v2716_v24  ;;  %v2862_v31 = vld [vmem:[%s4212_s0] ss:$0 sm:$0xff]  ;;  %vm444_vm13 = vcmask 130048   ;;  %s4216_s0 = sld [smem:[#allocation14_spill]] }
  0xb0   :  { %v193_v63 = vsel %vm3375_vm1, %v3264_v33, %v189_v20  ;;  %v3407_v43 = vsel %vm177_vm12, %v203_v60, 0.0  ;;  %vm4217_vm14 = vcmask 1041408   ;;  %vm4218_vm15 = vcmask 31744  }
  0xb1   :  { %v3409_v30 = vsel %vm176_vm0, %v193_v63, 0.0  ;;  %v336_v33 = vpack.c.bf16 %v330_v5, %v329_v13  ;;  %v328_v47 = vmul.f32 %v3207_v61, %v3407_v43  ;;  %v3431_v61 = vpack.c.bf16 %v3147_v38, %v3114_v23  ;;  %v2860_v23 = vld [vmem:[%s4210_s8] ss:$0 sm:$0xff]  ;;  %vm4219_vm2 = vmmov %vm4218_vm15 }
  0xb2   :  { %vm651_vm4 = vcmask 162816   ;;  %vm688_vm5 = vcmask 293888   ;;  %vm4220_vm3 = vmmov %vm4219_vm2  ;;  %vm879_vm9 = vcmask 80896  }
  0xb3   :  { %vm4221_vm10 = vmmov %vm4219_vm2 }
  0xb4   :  { %vm4222_vm11 = vmmov %vm4219_vm2 }
  0xb5   :  { %vm4223_vm7 = vmmov %vm4219_vm2 }
  0xb6   :  { %v3245_v18 = vpop.f32.mrf.mxu0  ;;  %vm4224_vm8 = vmmov %vm4219_vm2 }
  0xb7   :  { %v331_v27 = vmul.f32 %v3245_v18, %v3381_v4  ;;  %v327_v18 = vmul.f32 %v3203_v59, %v3409_v30  ;;  %v3427_v59 = vpack.c.bf16 %v3152_v41, %v3118_v25  ;;  %vm4225_vm1 = vmmov %vm4219_vm2 }
  0xb9   :  { %v335_v6 = vpack.c.bf16 %v328_v47, %v327_v18 }
  0xbe   :  { %v3270_v40 = vpop.f32.mrf.mxu0 }
  0xc6   :  { %v322_v32 = vpop.f32.mrf.mxu0 }
  0xc7   :  { %v333_v1 = vmul.f32 %v322_v32, %v3359_v28  ;;  %v332_v32 = vmul.f32 %v3270_v40, %v3355_v26 }
  0xc9   :  { %v337_v40 = vpack.c.bf16 %v332_v32, %v331_v27 }
  0xce   :  { %v324_v29 = vpop.f32.mrf.mxu0 }
  0xcf   :  { %v334_v35 = vmul.f32 %v324_v29, %v3363_v15 }
  0xd1   :  { %v338_v37 = vpack.c.bf16 %v334_v35, %v333_v1 }
  0xd3   :  { %355 = vmatpush.bf16.msrb.mxu0 %v338_v37  ;;  %2768 = vmatpush.bf16.msra.mxu1 %v338_v37 }
  0xd7   :  { %356 = vmatpush.bf16.msrb.mxu0 %v337_v40  ;;  %2769 = vmatpush.bf16.msra.mxu1 %v337_v40 }
  0xdb   :  { %357 = vmatpush.bf16.msrb.mxu0 %v336_v33  ;;  %2770 = vmatpush.bf16.msra.mxu1 %v336_v33 }
  0xdf   :  { %358 = vmatpush.bf16.msrb.mxu0 %v335_v6  ;;  %2771 = vmatpush.bf16.msra.mxu1 %v335_v6 }
  0xe2   :  { %2427 = vmatmul.msk.bf16.vlgmr.msrb.gmra.mxu0 %vm151_vm6, %v3164_v46  ;;  %2429 = vmatmul.msk.bf16.vlgmr.msra.gmra.mxu1 %vm151_vm6, %v3419_v48 }
  0xf2   :  { %2428 = vmatmul.msk.bf16.gmra.mxu0 %vm151_vm6, %v3427_v59  ;;  %2430 = vmatmul.msk.bf16.gmra.mxu1 %vm151_vm6, %v3431_v61 }
 0x15f   :  { %v360_v39 = vpop.f32.mrf.mxu0  ;;  %v370_v0 = vpop.f32.mrf.mxu1 }
 0x160   :  { %v380_v25 = vmul.f32 %v360_v39, %v3409_v30  ;;  %v384_v38 = vmul.f32 %v370_v0, %v3381_v4 }
 0x162   :  { %v392_v41 = vadd.f32 %v2860_v23, %v380_v25  ;;  %v396_v49 = vadd.f32 %v2860_v23, %v384_v38 }
 0x164   :  { %v400_v52 = vmax.f32 %v392_v41, 0.0  ;;  %v404_v21 = vmax.f32 %v396_v49, 0.0 }
 0x166   :  { %v412_v11 = vmul.f32 %v2861_v55, %v400_v52  ;;  %v416_v34 = vmul.f32 %v2861_v55, %v404_v21 }
 0x167   :  { %v362_v50 = vpop.f32.mrf.mxu0  ;;  %v372_v51 = vpop.f32.mrf.mxu1 }
 0x168   :  { %v381_v58 = vmul.f32 %v362_v50, %v3407_v43  ;;  %v385_v17 = vmul.f32 %v372_v51, %v3355_v26  ;;  %v424_v32 = vadd.f32 %v2862_v31, %v412_v11  ;;  %v3456_v63 = vadd.f32 %v2862_v31, %v416_v34 }
 0x16a   :  { %v393_v9 = vadd.f32 %v2860_v23, %v381_v58  ;;  %v397_v14 = vadd.f32 %v2860_v23, %v385_v17 }
 0x16c   :  { %v401_v22 = vmax.f32 %v393_v9, 0.0  ;;  %v405_v29 = vmax.f32 %v397_v14, 0.0 }
 0x16e   :  { %v413_v20 = vmul.f32 %v2861_v55, %v401_v22  ;;  %v417_v1 = vmul.f32 %v2861_v55, %v405_v29 }
 0x16f   :  { %v365_v35 = vpop.f32.mrf.mxu0  ;;  %v375_v62 = vpop.f32.mrf.mxu1 }
 0x170   :  { %v382_v36 = vmul.f32 %v365_v35, %v3403_v10  ;;  %v425_v37 = vadd.f32 %v2862_v31, %v413_v20  ;;  %v3454_v60 = vadd.f32 %v2862_v31, %v417_v1  ;;  %v386_v6 = vmul.f32 %v375_v62, %v3359_v28 }
 0x172   :  { %v2780_v27 = vpack.i.bf16 %v425_v37, %v424_v32  ;;  %v432_v5 = vpack.c.bf16 %v425_v37, %v424_v32  ;;  %v2800_v40 = vpack.i.bf16 %v3454_v60, %v3456_v63  ;;  %v394_v13 = vadd.f32 %v2860_v23, %v382_v36 }
 0x173   :  { %v398_v41 = vadd.f32 %v2860_v23, %v386_v6 }
 0x174   :  { %2781 = vrot.lane.b32.xlu2 %v2780_v27, %s2918_s10  ;;  %2435 = vmatmul.msk.bf16.vlgmr.msra.gmra.mxu2 %vm444_vm13, %v432_v5  ;;  %v402_v47 = vmax.f32 %v394_v13, 0.0 }
 0x175   :  { %v406_v52 = vmax.f32 %v398_v41, 0.0 }
 0x176   :  { %v414_v38 = vmul.f32 %v2861_v55, %v402_v47 }
 0x177   :  { %v367_v33 = vpop.f32.mrf.mxu0  ;;  %v377_v18 = vpop.f32.mrf.mxu1  ;;  %v418_v11 = vmul.f32 %v2861_v55, %v406_v52 }
 0x178   :  { %v383_v24 = vmul.f32 %v367_v33, %v3392_v42  ;;  %v387_v39 = vmul.f32 %v377_v18, %v3363_v15  ;;  %v426_v58 = vadd.f32 %v2862_v31, %v414_v38 }
 0x179   :  { %v430_v29 = vadd.f32 %v2862_v31, %v418_v11 }
 0x17a   :  { %v395_v0 = vadd.f32 %v2860_v23, %v383_v24  ;;  %v399_v25 = vadd.f32 %v2860_v23, %v387_v39  ;;  %v434_v23 = vpack.c.bf16 %v3454_v60, %v3456_v63 }
 0x17c   :  { %v403_v49 = vmax.f32 %v395_v0, 0.0  ;;  %v407_v51 = vmax.f32 %v399_v25, 0.0 }
 0x17e   :  { %v415_v50 = vmul.f32 %v2861_v55, %v403_v49  ;;  %v419_v21 = vmul.f32 %v2861_v55, %v407_v51 }
 0x180   :  { %v427_v17 = vadd.f32 %v2862_v31, %v415_v50  ;;  %v431_v22 = vadd.f32 %v2862_v31, %v419_v21  ;;  %v2863_v50 = vld [vmem:[%s4213_s5] ss:$0 sm:$0xff] }
 0x182   :  { %v2790_v9 = vpack.i.bf16 %v427_v17, %v426_v58  ;;  %v433_v14 = vpack.c.bf16 %v427_v17, %v426_v58  ;;  %v2810_v34 = vpack.i.bf16 %v431_v22, %v430_v29  ;;  %v435_v20 = vpack.c.bf16 %v431_v22, %v430_v29 }
 0x184   :  { %2791 = vrot.lane.b32.xlu1 %v2790_v9, %s2918_s10  ;;  %2436 = vmatmul.msk.bf16.gmra.mxu2 %vm444_vm13, %v433_v14 }
 0x18c   :  { %2811 = vrot.lane.b32.xlu1 %v2810_v34, %s2918_s10 }
 0x194   :  { %2437 = vmatmul.msk.bf16.gmra.mxu2 %vm444_vm13, %v434_v23 }
 0x1a4   :  { %2438 = vmatmul.msk.bf16.gmra.mxu2 %vm444_vm13, %v435_v20 }
 0x1f7   :  { %v466_v1 = vpop.f32.mrf.mxu2 }
 0x1f8   :  { %v486_v25 = vmul.f32 %v466_v1, %v3409_v30 }
 0x1ff   :  { %v468_v35 = vpop.f32.mrf.mxu2 }
 0x200   :  { %v487_v39 = vmul.f32 %v468_v35, %v3407_v43 }
 0x202   :  { %v494_v38 = vpack.c.bf16 %v487_v39, %v486_v25 }
 0x207   :  { %v471_v55 = vpop.f32.mrf.mxu2 }
 0x208   :  { %v488_v24 = vmul.f32 %v471_v55, %v3403_v10 }
 0x20f   :  { %v473_v62 = vpop.f32.mrf.mxu2 }
 0x210   :  { %v489_v47 = vmul.f32 %v473_v62, %v3392_v42 }
 0x212   :  { %v495_v0 = vpack.c.bf16 %v489_v47, %v488_v24 }
 0x217   :  { %v476_v36 = vpop.f32.mrf.mxu2 }
 0x218   :  { %v490_v18 = vmul.f32 %v476_v36, %v3381_v4 }
 0x21f   :  { %v478_v32 = vpop.f32.mrf.mxu2 }
 0x220   :  { %v491_v13 = vmul.f32 %v478_v32, %v3355_v26 }
 0x222   :  { %v496_v6 = vpack.c.bf16 %v491_v13, %v490_v18 }
 0x227   :  { %v481_v37 = vpop.f32.mrf.mxu2 }
 0x228   :  { %v492_v31 = vmul.f32 %v481_v37, %v3359_v28 }
 0x22f   :  { %v483_v27 = vpop.f32.mrf.mxu2 }
 0x230   :  { %v493_v5 = vmul.f32 %v483_v27, %v3363_v15 }
 0x232   :  { %v497_v33 = vpack.c.bf16 %v493_v5, %v492_v31 }
 0x234   :  { %502 = vmatpush.bf16.msra.mxu3 %v497_v33 }
 0x238   :  { %503 = vmatpush.bf16.msra.mxu3 %v496_v6 }
 0x23c   :  { %504 = vmatpush.bf16.msra.mxu3 %v495_v0 }
 0x240   :  { %505 = vmatpush.bf16.msra.mxu3 %v494_v38 }
 0x243   :  { %2439 = vmatmul.msk.bf16.vlgmr.msra.gmra.mxu3 %vm151_vm6, %v3164_v46  ;;  %v2864_v46 = vld [vmem:[%s4214_s6] ss:$0 sm:$0xff] }
 0x253   :  { %2440 = vmatmul.msk.bf16.gmra.mxu3 %vm151_vm6, %v3427_v59 }
 0x263   :  { %2441 = vmatmul.msk.bf16.gmra.mxu3 %vm151_vm6, %v3419_v48 }
 0x273   :  { %2442 = vmatmul.msk.bf16.gmra.mxu3 %vm151_vm6, %v3431_v61 }
 0x2c6   :  { %v507_v41 = vpop.f32.mrf.mxu3 }
 0x2c7   :  { %v527_v49 = vmul.f32 %v507_v41, %v3409_v30  ;;  %v2865_v30 = vld [vmem:[%s4215_s9] ss:$0 sm:$0xff] }
 0x2c9   :  { %v539_v51 = vadd.f32 %v2863_v50, %v527_v49 }
 0x2cb   :  { %v547_v58 = vmax.f32 %v539_v51, 0.0 }
 0x2cd   :  { %v559_v17 = vmul.f32 %v2864_v46, %v547_v58 }
 0x2ce   :  { %v509_v52 = vpop.f32.mrf.mxu3 }
 0x2cf   :  { %v528_v59 = vmul.f32 %v509_v52, %v3407_v43  ;;  %v571_v11 = vadd.f32 %v2865_v30, %v559_v17 }
 0x2d1   :  { %v540_v48 = vadd.f32 %v2863_v50, %v528_v59 }
 0x2d3   :  { %v548_v21 = vmax.f32 %v540_v48, 0.0 }
 0x2d5   :  { %v560_v61 = vmul.f32 %v2864_v46, %v548_v21 }
 0x2d6   :  { %v512_v9 = vpop.f32.mrf.mxu3 }
 0x2d7   :  { %v529_v14 = vmul.f32 %v512_v9, %v3403_v10  ;;  %v572_v22 = vadd.f32 %v2865_v30, %v560_v61 }
 0x2d9   :  { %v2785_v29 = vpack.i.bf16 %v572_v22, %v571_v11  ;;  %v541_v34 = vadd.f32 %v2863_v50, %v529_v14 }
 0x2db   :  { %2786 = vrot.lane.b32.xlu0 %v2785_v29, %s2919_s30  ;;  %v549_v43 = vmax.f32 %v541_v34, 0.0 }
 0x2dd   :  { %v561_v35 = vmul.f32 %v2864_v46, %v549_v43 }
 0x2de   :  { %v514_v23 = vpop.f32.mrf.mxu3 }
 0x2df   :  { %v530_v20 = vmul.f32 %v514_v23, %v3392_v42  ;;  %v573_v32 = vadd.f32 %v2865_v30, %v561_v35 }
 0x2e1   :  { %v542_v1 = vadd.f32 %v2863_v50, %v530_v20  ;;  %v2792_v20 = vpop.permute.xlu1 %2791 }
 0x2e2   :  { %v2794_v35 = vunpack.i.h.bf16 %v2792_v20 }
 0x2e3   :  { %v550_v55 = vmax.f32 %v542_v1, 0.0  ;;  %2801 = vrot.lane.b32.xlu0 %v2800_v40, %s2918_s10 }
 0x2e5   :  { %v562_v10 = vmul.f32 %v2864_v46, %v550_v55  ;;  %v2793_v55 = vunpack.i.l.bf16 %v2792_v20 }
 0x2e6   :  { %v517_v62 = vpop.f32.mrf.mxu3 }
 0x2e7   :  { %v531_v36 = vmul.f32 %v517_v62, %v3381_v4  ;;  %v574_v37 = vadd.f32 %v2865_v30, %v562_v10 }
 0x2e9   :  { %v2795_v27 = vpack.i.bf16 %v574_v37, %v573_v32  ;;  %v543_v31 = vadd.f32 %v2863_v50, %v531_v36 }
 0x2eb   :  { %2796 = vrot.lane.b32.xlu2 %v2795_v27, %s2919_s30  ;;  %v551_v42 = vmax.f32 %v543_v31, 0.0 }
 0x2ed   :  { %v563_v18 = vmul.f32 %v2864_v46, %v551_v42 }
 0x2ee   :  { %v519_v5 = vpop.f32.mrf.mxu3 }
 0x2ef   :  { %v532_v13 = vmul.f32 %v519_v5, %v3355_v26  ;;  %v575_v40 = vadd.f32 %v2865_v30, %v563_v18 }
 0x2f1   :  { %v544_v33 = vadd.f32 %v2863_v50, %v532_v13 }
 0x2f3   :  { %v552_v47 = vmax.f32 %v544_v33, 0.0 }
 0x2f5   :  { %v564_v6 = vmul.f32 %v2864_v46, %v552_v47 }
 0x2f6   :  { %v522_v60 = vpop.f32.mrf.mxu3 }
 0x2f7   :  { %v533_v63 = vmul.f32 %v522_v60, %v3359_v28  ;;  %v576_v24 = vadd.f32 %v2865_v30, %v564_v6  ;;  %v668_v28 = vld [vmem:[%s4216_s0 + $0x10] sm:$0x3]  ;;  %v2812_v60 = vpop.permute.xlu1 %2811 }
 0x2f8   :  { %v682_v48 = vunpack.c.l.b16 %v668_v28 }
 0x2f9   :  { %v2805_v4 = vpack.i.bf16 %v576_v24, %v575_v40  ;;  %v545_v39 = vadd.f32 %v2863_v50, %v533_v63  ;;  %v2814_v63 = vunpack.i.h.bf16 %v2812_v60  ;;  %v2813_v40 = vunpack.i.l.bf16 %v2812_v60 }
 0x2fa   :  { %v685_v17 = vpack.c.b16 %v682_v48, %v682_v48 }
 0x2fb   :  { %2806 = vrot.lane.b32.xlu2 %v2805_v4, %s2919_s30  ;;  %v553_v25 = vmax.f32 %v545_v39, 0.0 }
 0x2fc   :  { %v702_v21 = vsel %vm4217_vm14, %v685_v17, 0 }
 0x2fd   :  { %v565_v49 = vmul.f32 %v2864_v46, %v553_v25  ;;  %709 = vmatpush.bf16.msra.mxu0 %v702_v21 }
 0x2fe   :  { %v524_v0 = vpop.f32.mrf.mxu3 }
 0x2ff   :  { %v534_v38 = vmul.f32 %v524_v0, %v3363_v15  ;;  %v577_v52 = vadd.f32 %v2865_v30, %v565_v49  ;;  %v2718_v15 = vld [vmem:[%s4216_s0 + $0x8] sm:$0xff]  ;;  %v650_v0 = vsel %vm4224_vm8, %v3198_v57, %v2814_v63  ;;  %v2866_v57 = vld [vmem:[%s4226_s7] ss:$0 sm:$0xff] }
 0x301   :  { %v546_v41 = vadd.f32 %v2863_v50, %v534_v38  ;;  %710 = vmatpush.bf16.msra.mxu0 %v2718_v15  ;;  %v2717_v50 = vld [vmem:[%s4216_s0] sm:$0xff] }
 0x303   :  { %v554_v26 = vmax.f32 %v546_v41, 0.0  ;;  %v2719_v41 = vld [vmem:[%s4156_s12] sm:$0xff] }
 0x304   :  { %776 = vmatpush.bf16.msrb.mxu2 %v2719_v41 }
 0x305   :  { %v566_v51 = vmul.f32 %v2864_v46, %v554_v26  ;;  %711 = vmatpush.bf16.msra.mxu0 %v2717_v50  ;;  %v2782_v46 = vpop.permute.xlu2 %2781 }
 0x306   :  { %v2783_v61 = vunpack.i.l.bf16 %v2782_v46 }
 0x307   :  { %v578_v58 = vadd.f32 %v2865_v30, %v566_v51  ;;  %v2784_v30 = vunpack.i.h.bf16 %v2782_v46 }
 0x308   :  { %v643_v29 = vsel %vm4219_vm2, %v3075_v2, %v2783_v61  ;;  %v645_v2 = vsel %vm4221_vm10, %v3157_v44, %v2793_v55 }
 0x309   :  { %v2815_v59 = vpack.i.bf16 %v578_v58, %v577_v52  ;;  %v644_v22 = vsel %vm4218_vm15, %v3080_v3, %v2784_v30  ;;  %v646_v3 = vsel %vm4220_vm3, %v3162_v45, %v2794_v35 }
 0x30b   :  { %2816 = vrot.lane.b32.xlu0 %v2815_v59, %s2919_s30 }
 0x345   :  { %v2797_v1 = vpop.permute.xlu2 %2796 }
 0x346   :  { %v2799_v10 = vunpack.i.h.bf16 %v2797_v1  ;;  %v2798_v62 = vunpack.i.l.bf16 %v2797_v1 }
 0x348   :  { %v654_v36 = vsel %vm651_vm4, %v645_v2, %v2798_v62  ;;  %v655_v32 = vsel %vm651_vm4, %v646_v3, %v2799_v10  ;;  %v2720_v10 = vld [vmem:[%s4158_s15] sm:$0xff] }
 0x349   :  { %v661_v37 = vpack.c.bf16 %v655_v32, %v654_v36  ;;  %841 = vmatpush.bf16.msrb.mxu1 %v2720_v10  ;;  %v2867_v3 = vld [vmem:[%s4227_s11] ss:$0 sm:$0xff]  ;;  %v869_v10 = vld [vmem:[%s4159_s14 + $0x30] sm:$0xff] }
 0x34d   :  { %v2787_v9 = vpop.permute.xlu0 %2786 }
 0x34e   :  { %v2789_v14 = vunpack.i.h.bf16 %v2787_v9  ;;  %v2788_v11 = vunpack.i.l.bf16 %v2787_v9 }
 0x350   :  { %v653_v34 = vsel %vm651_vm4, %v644_v22, %v2789_v14  ;;  %v652_v23 = vsel %vm651_vm4, %v643_v29, %v2788_v11 }
 0x351   :  { %v660_v43 = vpack.c.bf16 %v653_v34, %v652_v23 }
 0x353   :  { %2451 = vmatmul.msk.bf16.vlgmr.msra.gmra.mxu0 %vm688_vm5, %v660_v43 }
 0x355   :  { %v2802_v27 = vpop.permute.xlu0 %2801  ;;  %v2807_v42 = vpop.permute.xlu2 %2806 }
 0x356   :  { %v2804_v31 = vunpack.i.h.bf16 %v2802_v27  ;;  %v2803_v5 = vunpack.i.l.bf16 %v2802_v27  ;;  %v2809_v13 = vunpack.i.h.bf16 %v2807_v42  ;;  %v2808_v33 = vunpack.i.l.bf16 %v2807_v42 }
 0x358   :  { %v648_v18 = vsel %vm4222_vm11, %v3185_v54, %v2804_v31  ;;  %v647_v45 = vsel %vm4223_vm7, %v3180_v53, %v2803_v5  ;;  %v649_v54 = vsel %vm4225_vm1, %v3193_v56, %v2813_v40 }
 0x359   :  { %v656_v44 = vsel %vm651_vm4, %v647_v45, %v2808_v33  ;;  %v657_v47 = vsel %vm651_vm4, %v648_v18, %v2809_v13 }
 0x35a   :  { %v662_v6 = vpack.c.bf16 %v657_v47, %v656_v44 }
 0x363   :  { %2452 = vmatmul.msk.bf16.gmra.mxu0 %vm688_vm5, %v661_v37 }
 0x373   :  { %2453 = vmatmul.msk.bf16.gmra.mxu0 %vm688_vm5, %v662_v6 }
 0x37d   :  { %v2817_v24 = vpop.permute.xlu0 %2816 }
 0x37e   :  { %v2819_v4 = vunpack.i.h.bf16 %v2817_v24  ;;  %v2818_v39 = vunpack.i.l.bf16 %v2817_v24 }
 0x380   :  { %v658_v53 = vsel %vm651_vm4, %v649_v54, %v2818_v39  ;;  %v659_v25 = vsel %vm651_vm4, %v650_v0, %v2819_v4 }
 0x381   :  { %v663_v38 = vpack.c.bf16 %v659_v25, %v658_v53 }
 0x383   :  { %2454 = vmatmul.msk.bf16.gmra.mxu0 %vm688_vm5, %v663_v38 }
 0x3d0   :  { %v713_v49 = vpop.f32.mrf.mxu0 }
 0x3d1   :  { %v714_v26 = vadd.f32 %v2866_v57, %v713_v49  ;;  %v2868_v49 = vld [vmem:[%s4157_s16] ss:$0 sm:$0xff] }
 0x3d3   :  { %v733_v52 = vmax.f32 %v714_v26, 0.0  ;;  %v863_v26 = vld [vmem:[%s4159_s14] sm:$0xff] }
 0x3d8   :  { %v715_v51 = vpop.f32.mrf.mxu0 }
 0x3d9   :  { %v716_v56 = vadd.f32 %v2866_v57, %v715_v51 }
 0x3db   :  { %v734_v58 = vmax.f32 %v716_v56, 0.0 }
 0x3dd   :  { %v741_v59 = vpack.c.bf16 %v734_v58, %v733_v52 }
 0x3df   :  { %2459 = vmatmul.msk.bf16.vlgmr.msrb.gmra.mxu2 %vm444_vm13, %v741_v59 }
 0x3e0   :  { %v718_v28 = vpop.f32.mrf.mxu0 }
 0x3e1   :  { %v719_v48 = vadd.f32 %v2866_v57, %v718_v28 }
 0x3e3   :  { %v735_v15 = vmax.f32 %v719_v48, 0.0  ;;  %v865_v48 = vld [vmem:[%s4159_s14 + $0x10] sm:$0xff] }
 0x3e8   :  { %v720_v17 = vpop.f32.mrf.mxu0 }
 0x3e9   :  { %v721_v21 = vadd.f32 %v2866_v57, %v720_v17 }
 0x3eb   :  { %v736_v50 = vmax.f32 %v721_v21, 0.0 }
 0x3ed   :  { %v742_v46 = vpack.c.bf16 %v736_v50, %v735_v15 }
 0x3ef   :  { %2460 = vmatmul.msk.bf16.gmra.mxu2 %vm444_vm13, %v742_v46  ;;  %v866_v46 = vld [vmem:[%s4159_s14 + $0x18] sm:$0xff] }
 0x3f0   :  { %v723_v30 = vpop.f32.mrf.mxu0 }
 0x3f1   :  { %v724_v61 = vadd.f32 %v2866_v57, %v723_v30 }
 0x3f3   :  { %v737_v11 = vmax.f32 %v724_v61, 0.0 }
 0x3f8   :  { %v725_v9 = vpop.f32.mrf.mxu0 }
 0x3f9   :  { %v726_v14 = vadd.f32 %v2866_v57, %v725_v9 }
 0x3fb   :  { %v738_v22 = vmax.f32 %v726_v14, 0.0 }
 0x3fd   :  { %v743_v29 = vpack.c.bf16 %v738_v22, %v737_v11  ;;  %v867_v11 = vld [vmem:[%s4159_s14 + $0x20] sm:$0xff] }
 0x3ff   :  { %2461 = vmatmul.msk.bf16.gmra.mxu2 %vm444_vm13, %v743_v29 }
 0x400   :  { %v728_v34 = vpop.f32.mrf.mxu0 }
 0x401   :  { %v729_v23 = vadd.f32 %v2866_v57, %v728_v34 }
 0x403   :  { %v739_v1 = vmax.f32 %v729_v23, 0.0 }
 0x408   :  { %v730_v43 = vpop.f32.mrf.mxu0 }
 0x409   :  { %v731_v20 = vadd.f32 %v2866_v57, %v730_v43  ;;  %v868_v43 = vld [vmem:[%s4159_s14 + $0x28] sm:$0xff] }
 0x40b   :  { %v740_v35 = vmax.f32 %v731_v20, 0.0 }
 0x40d   :  { %v744_v55 = vpack.c.bf16 %v740_v35, %v739_v1 }
 0x40f   :  { %2462 = vmatmul.msk.bf16.gmra.mxu2 %vm444_vm13, %v744_v55 }
 0x462   :  { %v778_v62 = vpop.f32.mrf.mxu2 }
 0x463   :  { %v3567_v2 = vadd.f32 %v2867_v3, %v778_v62 }
 0x465   :  { %v798_v37 = vmax.f32 %v3567_v2, 0.0 }
 0x46a   :  { %v780_v36 = vpop.f32.mrf.mxu2 }
 0x46b   :  { %v3569_v32 = vadd.f32 %v2867_v3, %v780_v36 }
 0x46d   :  { %v799_v27 = vmax.f32 %v3569_v32, 0.0 }
 0x46f   :  { %v806_v31 = vpack.c.bf16 %v799_v27, %v798_v37 }
 0x471   :  { %2467 = vmatmul.msk.bf16.vlgmr.msrb.gmra.mxu1 %vm444_vm13, %v806_v31 }
 0x472   :  { %v783_v5 = vpop.f32.mrf.mxu2 }
 0x473   :  { %v3578_v42 = vadd.f32 %v2867_v3, %v783_v5  ;;  %v870_v5 = vld [vmem:[%s4159_s14 + $0x38] sm:$0xff] }
 0x475   :  { %v800_v18 = vmax.f32 %v3578_v42, 0.0  ;;  %v2743_v42 = vld [vmem:[%s4168_s26 + $0x38] sm:$0xff] }
 0x47a   :  { %v785_v13 = vpop.f32.mrf.mxu2 }
 0x47b   :  { %v3580_v33 = vadd.f32 %v2867_v3, %v785_v13 }
 0x47d   :  { %v801_v45 = vmax.f32 %v3580_v33, 0.0  ;;  %v2767_v33 = vld [vmem:[%s4168_s26 + $0xf8] sm:$0xff] }
 0x47f   :  { %v807_v44 = vpack.c.bf16 %v801_v45, %v800_v18 }
 0x481   :  { %2468 = vmatmul.msk.bf16.gmra.mxu1 %vm444_vm13, %v807_v44 }
 0x482   :  { %v788_v47 = vpop.f32.mrf.mxu2 }
 0x483   :  { %v3589_v6 = vadd.f32 %v2867_v3, %v788_v47 }
 0x485   :  { %v802_v40 = vmax.f32 %v3589_v6, 0.0 }
 0x48a   :  { %v790_v60 = vpop.f32.mrf.mxu2 }
 0x48b   :  { %v3591_v63 = vadd.f32 %v2867_v3, %v790_v60 }
 0x48d   :  { %v803_v24 = vmax.f32 %v3591_v63, 0.0 }
 0x48f   :  { %v808_v4 = vpack.c.bf16 %v803_v24, %v802_v40 }
 0x491   :  { %2469 = vmatmul.msk.bf16.gmra.mxu1 %vm444_vm13, %v808_v4 }
 0x492   :  { %v793_v39 = vpop.f32.mrf.mxu2 }
 0x493   :  { %v3600_v0 = vadd.f32 %v2867_v3, %v793_v39 }
 0x495   :  { %v804_v25 = vmax.f32 %v3600_v0, 0.0  ;;  %v2763_v0 = vld [vmem:[%s4168_s26 + $0xd8] sm:$0xff] }
 0x49a   :  { %v795_v54 = vpop.f32.mrf.mxu2 }
 0x49b   :  { %v3602_v53 = vadd.f32 %v2867_v3, %v795_v54 }
 0x49d   :  { %v805_v38 = vmax.f32 %v3602_v53, 0.0  ;;  %v2739_v53 = vld [vmem:[%s4168_s26 + $0x18] sm:$0xff] }
 0x49f   :  { %v809_v41 = vpack.c.bf16 %v805_v38, %v804_v25 }
 0x4a1   :  { %2470 = vmatmul.msk.bf16.gmra.mxu1 %vm444_vm13, %v809_v41  ;;  %1091 = vmatpush.bf16.msrb.mxu3 %v809_v41 }
 0x4a5   :  { %1092 = vmatpush.bf16.msrb.mxu3 %v808_v4 }
 0x4a9   :  { %1093 = vmatpush.bf16.msrb.mxu3 %v807_v44 }
 0x4ad   :  { %1094 = vmatpush.bf16.msrb.mxu3 %v806_v31 }
 0x4b1   :  { %1174 = vmatpush.bf16.msra.mxu3 %v1169_v16 }
 0x4ee   :  { %v843_v57 = vpop.f32.mrf.mxu1 }
 0x4ef   :  { %v844_v51 = vadd.f32 %v2868_v49, %v843_v57 }
 0x4f1   :  { %v871_v56 = vadd.f32 %v863_v26, %v844_v51 }
 0x4f3   :  { %v880_v52 = vsel %vm879_vm9, %v871_v56, -inf }
 0x4f4   :  { %881 = vmax.xlane.f32.xlu2 %v880_v52 }
 0x4f6   :  { %v845_v58 = vpop.f32.mrf.mxu1 }
 0x4f7   :  { %v846_v12 = vadd.f32 %v2868_v49, %v845_v58 }
 0x4f9   :  { %v872_v16 = vadd.f32 %v864_v8, %v846_v12 }
 0x4fb   :  { %v883_v59 = vsel %vm879_vm9, %v872_v16, -inf }
 0x4fc   :  { %884 = vmax.xlane.f32.xlu1 %v883_v59 }
 0x4fe   :  { %v848_v28 = vpop.f32.mrf.mxu1 }
 0x4ff   :  { %v849_v17 = vadd.f32 %v2868_v49, %v848_v28 }
 0x501   :  { %v873_v21 = vadd.f32 %v865_v48, %v849_v17 }
 0x503   :  { %v886_v15 = vsel %vm879_vm9, %v873_v21, -inf }
 0x504   :  { %887 = vmax.xlane.f32.xlu0 %v886_v15 }
 0x506   :  { %v850_v50 = vpop.f32.mrf.mxu1 }
 0x507   :  { %v851_v30 = vadd.f32 %v2868_v49, %v850_v50 }
 0x509   :  { %v874_v61 = vadd.f32 %v866_v46, %v851_v30 }
 0x50b   :  { %v889_v9 = vsel %vm879_vm9, %v874_v61, -inf }
 0x50c   :  { %890 = vmax.xlane.f32.xlu2 %v889_v9 }
 0x50e   :  { %v853_v14 = vpop.f32.mrf.mxu1 }
 0x50f   :  { %v854_v22 = vadd.f32 %v2868_v49, %v853_v14 }
 0x511   :  { %v875_v29 = vadd.f32 %v867_v11, %v854_v22 }
 0x513   :  { %v892_v34 = vsel %vm879_vm9, %v875_v29, -inf }
 0x514   :  { %893 = vmax.xlane.f32.xlu1 %v892_v34 }
 0x516   :  { %v855_v23 = vpop.f32.mrf.mxu1 }
 0x517   :  { %v856_v20 = vadd.f32 %v2868_v49, %v855_v23 }
 0x519   :  { %v876_v1 = vadd.f32 %v868_v43, %v856_v20 }
 0x51b   :  { %v895_v35 = vsel %vm879_vm9, %v876_v1, -inf }
 0x51c   :  { %896 = vmax.xlane.f32.xlu0 %v895_v35 }
 0x51e   :  { %v858_v55 = vpop.f32.mrf.mxu1 }
 0x51f   :  { %v859_v62 = vadd.f32 %v2868_v49, %v858_v55 }
 0x521   :  { %v877_v3 = vadd.f32 %v869_v10, %v859_v62 }
 0x523   :  { %v898_v36 = vsel %vm879_vm9, %v877_v3, -inf }
 0x524   :  { %899 = vmax.xlane.f32.xlu2 %v898_v36 }
 0x526   :  { %v860_v31 = vpop.f32.mrf.mxu1 }
 0x527   :  { %v861_v13 = vadd.f32 %v2868_v49, %v860_v31 }
 0x529   :  { %v878_v44 = vadd.f32 %v870_v5, %v861_v13 }
 0x52b   :  { %v901_v47 = vsel %vm879_vm9, %v878_v44, -inf }
 0x52c   :  { %902 = vmax.xlane.f32.xlu1 %v901_v47 }
 0x567   :  { %v882_v60 = vpop.xlane.xlu2 %881 }
 0x568   :  { %vm904_vm12 = vcmp.ge.f32.partialorder %v871_v56, %v882_v60 }
 0x569   :  { %v912_v4 = vsel %vm904_vm12, %v3085_v7, 10 }
 0x56a   :  { %v920_v39 = vsel %vm879_vm9, %v912_v4, 2147483647 }
 0x56b   :  { %v922_v54 = vshra.s32 %v920_v39, 16  ;;  %v921_v31 = vand.u32 65535, %v920_v39 }
 0x56d   :  { %v924_v41 = vcvt.s32.f32 %v922_v54  ;;  %v923_v13 = vcvt.s32.f32 %v921_v31 }
 0x56f   :  { %v885_v57 = vpop.xlane.xlu1 %884  ;;  %925 = vmin.xlane.f32.xlu0 %v924_v41 }
 0x570   :  { %vm905_vm0 = vcmp.ge.f32.partialorder %v872_v16, %v885_v57 }
 0x571   :  { %v913_v26 = vsel %vm905_vm0, %v3085_v7, 10 }
 0x572   :  { %v935_v51 = vsel %vm879_vm9, %v913_v26, 2147483647 }
 0x573   :  { %v937_v49 = vshra.s32 %v935_v51, 16  ;;  %v936_v47 = vand.u32 65535, %v935_v51 }
 0x575   :  { %v939_v52 = vcvt.s32.f32 %v937_v49  ;;  %v938_v4 = vcvt.s32.f32 %v936_v47 }
 0x577   :  { %v888_v58 = vpop.xlane.xlu0 %887  ;;  %940 = vmin.xlane.f32.xlu2 %v939_v52 }
 0x578   :  { %vm906_vm14 = vcmp.ge.f32.partialorder %v873_v21, %v888_v58 }
 0x579   :  { %v914_v56 = vsel %vm906_vm14, %v3085_v7, 10 }
 0x57a   :  { %v950_v8 = vsel %vm879_vm9, %v914_v56, 2147483647 }
 0x57b   :  { %v952_v12 = vshra.s32 %v950_v8, 16 }
 0x57d   :  { %v954_v59 = vcvt.s32.f32 %v952_v12 }
 0x57f   :  { %v891_v28 = vpop.xlane.xlu2 %890  ;;  %955 = vmin.xlane.f32.xlu1 %v954_v59 }
 0x580   :  { %vm907_vm15 = vcmp.ge.f32.partialorder %v874_v61, %v891_v28 }
 0x581   :  { %v915_v16 = vsel %vm907_vm15, %v3085_v7, 10 }
 0x582   :  { %v965_v48 = vsel %vm879_vm9, %v915_v16, 2147483647 }
 0x583   :  { %v967_v17 = vshra.s32 %v965_v48, 16  ;;  %v966_v58 = vand.u32 65535, %v965_v48 }
 0x585   :  { %v969_v15 = vcvt.s32.f32 %v967_v17  ;;  %v968_v39 = vcvt.s32.f32 %v966_v58 }
 0x587   :  { %v894_v50 = vpop.xlane.xlu1 %893  ;;  %970 = vmin.xlane.f32.xlu0 %v969_v15 }
 0x588   :  { %vm908_vm2 = vcmp.ge.f32.partialorder %v875_v29, %v894_v50 }
 0x589   :  { %v916_v21 = vsel %vm908_vm2, %v3085_v7, 10 }
 0x58a   :  { %v980_v46 = vsel %vm879_vm9, %v916_v21, 2147483647 }
 0x58b   :  { %v982_v30 = vshra.s32 %v980_v46, 16 }
 0x58d   :  { %v984_v9 = vcvt.s32.f32 %v982_v30 }
 0x58f   :  { %v897_v14 = vpop.xlane.xlu0 %896  ;;  %985 = vmin.xlane.f32.xlu2 %v984_v9 }
 0x590   :  { %vm909_vm4 = vcmp.ge.f32.partialorder %v876_v1, %v897_v14 }
 0x591   :  { %v917_v61 = vsel %vm909_vm4, %v3085_v7, 10 }
 0x592   :  { %v995_v11 = vsel %vm879_vm9, %v917_v61, 2147483647 }
 0x593   :  { %v997_v22 = vshra.s32 %v995_v11, 16 }
 0x595   :  { %v999_v34 = vcvt.s32.f32 %v997_v22 }
 0x597   :  { %1000 = vmin.xlane.f32.xlu1 %v999_v34  ;;  %v900_v23 = vpop.xlane.xlu2 %899 }
 0x598   :  { %vm910_vm5 = vcmp.ge.f32.partialorder %v877_v3, %v900_v23 }
 0x599   :  { %v918_v29 = vsel %vm910_vm5, %v3085_v7, 10 }
 0x59a   :  { %v1010_v43 = vsel %vm879_vm9, %v918_v29, 2147483647 }
 0x59b   :  { %v1012_v20 = vshra.s32 %v1010_v43, 16  ;;  %v1011_v17 = vand.u32 65535, %v1010_v43 }
 0x59d   :  { %v1014_v35 = vcvt.s32.f32 %v1012_v20  ;;  %v1013_v50 = vcvt.s32.f32 %v1011_v17 }
 0x59f   :  { %v903_v55 = vpop.xlane.xlu1 %902  ;;  %1015 = vmin.xlane.f32.xlu0 %v1014_v35 }
 0x5a0   :  { %vm911_vm3 = vcmp.ge.f32.partialorder %v878_v44, %v903_v55  ;;  %v951_v44 = vand.u32 65535, %v950_v8  ;;  %v996_v8 = vand.u32 65535, %v995_v11 }
 0x5a1   :  { %v919_v1 = vsel %vm911_vm3, %v3085_v7, 10 }
 0x5a2   :  { %v1025_v10 = vsel %vm879_vm9, %v919_v1, 2147483647  ;;  %v953_v26 = vcvt.s32.f32 %v951_v44 }
 0x5a3   :  { %v1027_v62 = vshra.s32 %v1025_v10, 16 }
 0x5a5   :  { %v1029_v36 = vcvt.s32.f32 %v1027_v62 }
 0x5a7   :  { %1030 = vmin.xlane.f32.xlu2 %v1029_v36 }
 0x5e2   :  { %v926_v5 = vpop.xlane.xlu0 %925 }
 0x5e3   :  { %vm927_vm10 = vcmp.eq.f32.partialorder %v924_v41, %v926_v5  ;;  %v981_v41 = vand.u32 65535, %v980_v46  ;;  %v1026_v46 = vand.u32 65535, %v1025_v10  ;;  %v932_v11 = vcvt.f32.s32 %v926_v5 }
 0x5e4   :  { %v928_v3 = vsel %vm927_vm10, %v923_v13, inf }
 0x5e5   :  { %929 = vmin.xlane.f32.xlu1 %v928_v3  ;;  %v983_v51 = vcvt.s32.f32 %v981_v41  ;;  %v2911_v41 = vld [vmem:[%s4192_s1 + $0x20] sm:$0xff] }
 0x5ea   :  { %v941_v60 = vpop.xlane.xlu2 %940 }
 0x5eb   :  { %vm942_vm11 = vcmp.eq.f32.partialorder %v939_v52, %v941_v60  ;;  %v947_v23 = vcvt.f32.s32 %v941_v60 }
 0x5ec   :  { %v943_v54 = vsel %vm942_vm11, %v938_v4, inf }
 0x5ed   :  { %944 = vmin.xlane.f32.xlu0 %v943_v54  ;;  %v948_v20 = vshll.u32 %v947_v23, 16 }
 0x5f2   :  { %v956_v57 = vpop.xlane.xlu1 %955 }
 0x5f3   :  { %vm957_vm7 = vcmp.eq.f32.partialorder %v954_v59, %v956_v57  ;;  %v998_v59 = vcvt.s32.f32 %v996_v8  ;;  %v962_v5 = vcvt.f32.s32 %v956_v57 }
 0x5f4   :  { %v958_v49 = vsel %vm957_vm7, %v953_v26, inf }
 0x5f5   :  { %959 = vmin.xlane.f32.xlu2 %v958_v49  ;;  %v963_v3 = vshll.u32 %v962_v5, 16 }
 0x5fa   :  { %v971_v56 = vpop.xlane.xlu0 %970 }
 0x5fb   :  { %vm972_vm8 = vcmp.eq.f32.partialorder %v969_v15, %v971_v56  ;;  %v977_v47 = vcvt.f32.s32 %v971_v56 }
 0x5fc   :  { %v973_v12 = vsel %vm972_vm8, %v968_v39, inf }
 0x5fd   :  { %974 = vmin.xlane.f32.xlu1 %v973_v12  ;;  %v978_v54 = vshll.u32 %v977_v47, 16 }
 0x602   :  { %v3665_v28 = vpop.xlane.xlu2 %985 }
 0x603   :  { %vm987_vm1 = vcmp.eq.f32.partialorder %v984_v9, %v3665_v28  ;;  %v1028_v9 = vcvt.s32.f32 %v1026_v46  ;;  %v992_v12 = vcvt.f32.s32 %v3665_v28  ;;  %v2914_v28 = vld [vmem:[%s4192_s1 + $0x18] sm:$0xff]  ;;  %v2915_v46 = vld [vmem:[%s4192_s1 + $0x8] sm:$0xff] }
 0x604   :  { %v988_v52 = vsel %vm987_vm1, %v983_v51, inf  ;;  %v2912_v51 = vld [vmem:[%s4192_s1 + $0x28] sm:$0xff] }
 0x605   :  { %989 = vmin.xlane.f32.xlu0 %v988_v52  ;;  %v1168_v52 = vpack.c.bf16 %v2912_v51, %v2911_v41  ;;  %v993_v17 = vshll.u32 %v992_v12, 16 }
 0x607   :  { %1175 = vmatpush.bf16.msra.mxu3 %v1168_v52 }
 0x60a   :  { %v3668_v16 = vpop.xlane.xlu1 %1000 }
 0x60b   :  { %vm1002_vm12 = vcmp.eq.f32.partialorder %v999_v34, %v3668_v16  ;;  %v933_v34 = vshll.u32 %v932_v11, 16 }
 0x60c   :  { %v1003_v48 = vsel %vm1002_vm12, %v998_v59, inf  ;;  %v2913_v59 = vld [vmem:[%s4192_s1 + $0x10] sm:$0xff] }
 0x60d   :  { %1004 = vmin.xlane.f32.xlu2 %v1003_v48  ;;  %v1167_v48 = vpack.c.bf16 %v2914_v28, %v2913_v59 }
 0x60f   :  { %1176 = vmatpush.bf16.msra.mxu3 %v1167_v48 }
 0x612   :  { %v3671_v15 = vpop.xlane.xlu0 %1015 }
 0x613   :  { %vm1017_vm0 = vcmp.eq.f32.partialorder %v1014_v35, %v3671_v15 }
 0x614   :  { %v1018_v21 = vsel %vm1017_vm0, %v1013_v50, inf  ;;  %v1007_v50 = vcvt.f32.s32 %v3668_v16 }
 0x615   :  { %1019 = vmin.xlane.f32.xlu1 %v1018_v21 }
 0x616   :  { %v1008_v11 = vshll.u32 %v1007_v50, 16 }
 0x61a   :  { %v3674_v30 = vpop.xlane.xlu2 %1030 }
 0x61b   :  { %vm1032_vm14 = vcmp.eq.f32.partialorder %v1029_v36, %v3674_v30 }
 0x61c   :  { %v1033_v14 = vsel %vm1032_vm14, %v1028_v9, inf  ;;  %v2916_v9 = vld [vmem:[%s4192_s1] sm:$0xff]  ;;  %vm1106_vm14 = vcmask 123904  }
 0x61d   :  { %1034 = vmin.xlane.f32.xlu0 %v1033_v14  ;;  %v1166_v14 = vpack.c.bf16 %v2915_v46, %v2916_v9 }
 0x61f   :  { %1177 = vmatpush.bf16.msra.mxu3 %v1166_v14 }
 0x658   :  { %v930_v61 = vpop.xlane.xlu1 %929 }
 0x659   :  { %v931_v22 = vcvt.f32.s32 %v930_v61 }
 0x65b   :  { %v934_v29 = vadd.s32 %v933_v34, %v931_v22 }
 0x65d   :  { %vm1040_vm15 = vcmp.eq.s32.totalorder %v3085_v7, %v934_v29 }
 0x65e   :  { %v2471_v1 = vsel %vm1040_vm15, 1.0, %v2917_v19 }
 0x660   :  { %v945_v43 = vpop.xlane.xlu0 %944 }
 0x661   :  { %v946_v55 = vcvt.f32.s32 %v945_v43 }
 0x663   :  { %v949_v35 = vadd.s32 %v948_v20, %v946_v55  ;;  %v1022_v55 = vcvt.f32.s32 %v3671_v15 }
 0x665   :  { %vm1041_vm2 = vcmp.eq.s32.totalorder %v3085_v7, %v949_v35 }
 0x666   :  { %v2472_v10 = vsel %vm1041_vm2, 1.0, %v2917_v19  ;;  %vm3681_vm4 = vmpackc.low %vm1041_vm2, %vm1040_vm15 }
 0x667   :  { %v3685_v36 = vpack.c.bf16 %v2472_v10, %v2471_v1  ;;  %v1023_v1 = vshll.u32 %v1022_v55, 16  ;;  %v1037_v10 = vcvt.f32.s32 %v3674_v30  ;;  %v2920_v30 = vmov 1.0|1.0  }
 0x668   :  { %v960_v31 = vpop.xlane.xlu2 %959 }
 0x669   :  { %1068 = vxpose.xlu2.c.b16.start [1/4] (short) (narrow) %v3685_v36, 16  ;;  %v961_v13 = vcvt.f32.s32 %v960_v31 }
 0x66b   :  { %v964_v60 = vadd.s32 %v963_v3, %v961_v13  ;;  %v1038_v13 = vshll.u32 %v1037_v10, 16 }
 0x66d   :  { %vm1042_vm5 = vcmp.eq.s32.totalorder %v3085_v7, %v964_v60 }
 0x66e   :  { %v2473_v49 = vsel %vm1042_vm5, 1.0, %v2917_v19 }
 0x670   :  { %v975_v4 = vpop.xlane.xlu1 %974 }
 0x671   :  { %v976_v44 = vcvt.f32.s32 %v975_v4 }
 0x673   :  { %v979_v26 = vadd.s32 %v978_v54, %v976_v44 }
 0x675   :  { %vm1043_vm3 = vcmp.eq.s32.totalorder %v3085_v7, %v979_v26 }
 0x676   :  { %v2474_v58 = vsel %vm1043_vm3, 1.0, %v2917_v19  ;;  %vm3692_vm10 = vmpackc.low %vm1043_vm3, %vm1042_vm5 }
 0x677   :  { %v3696_v39 = vpack.c.bf16 %v2474_v58, %v2473_v49 }
 0x678   :  { %v990_v56 = vpop.xlane.xlu0 %989 }
 0x679   :  { %1069 = vxpose.xlu2.c.b16.cont [2/4] (short) (narrow) %v3696_v39, 16  ;;  %v991_v8 = vcvt.f32.s32 %v990_v56 }
 0x67b   :  { %v994_v21 = vadd.s32 %v993_v17, %v991_v8 }
 0x67d   :  { %vm1044_vm11 = vcmp.eq.s32.totalorder %v3085_v7, %v994_v21 }
 0x67e   :  { %v2475_v16 = vsel %vm1044_vm11, 1.0, %v2917_v19 }
 0x680   :  { %v1005_v61 = vpop.xlane.xlu2 %1004 }
 0x681   :  { %v1006_v22 = vcvt.f32.s32 %v1005_v61 }
 0x683   :  { %v1009_v34 = vadd.s32 %v1008_v11, %v1006_v22 }
 0x685   :  { %vm1045_vm7 = vcmp.eq.s32.totalorder %v3085_v7, %v1009_v34 }
 0x686   :  { %v2476_v23 = vsel %vm1045_vm7, 1.0, %v2917_v19  ;;  %vm3723_vm8 = vmpackc.low %vm1045_vm7, %vm1044_vm11  ;;  %vm1205_vm7 = vcmask 74752  }
 0x687   :  { %v3727_v43 = vpack.c.bf16 %v2476_v23, %v2475_v16 }
 0x688   :  { %v1020_v20 = vpop.xlane.xlu1 %1019 }
 0x689   :  { %1070 = vxpose.xlu2.c.b16.cont [3/4] (short) (narrow) %v3727_v43, 16  ;;  %v1021_v35 = vcvt.f32.s32 %v1020_v20 }
 0x68b   :  { %v1024_v31 = vadd.s32 %v1023_v1, %v1021_v35 }
 0x68d   :  { %vm1046_vm1 = vcmp.eq.s32.totalorder %v3085_v7, %v1024_v31 }
 0x68e   :  { %v2477_v60 = vsel %vm1046_vm1, 1.0, %v2917_v19 }
 0x690   :  { %v1035_v5 = vpop.xlane.xlu0 %1034 }
 0x691   :  { %v1036_v3 = vcvt.f32.s32 %v1035_v5 }
 0x693   :  { %v1039_v47 = vadd.s32 %v1038_v13, %v1036_v3 }
 0x695   :  { %vm1047_vm12 = vcmp.eq.s32.totalorder %v3085_v7, %v1039_v47 }
 0x696   :  { %vm2481_vm0 = vmpackc.low %vm1047_vm12, %vm1046_vm1  ;;  %v2478_v15 = vsel %vm1047_vm12, 1.0, %v2917_v19 }
 0x697   :  { %v3736_v4 = vpack.c.bf16 %v2478_v15, %v2477_v60 }
 0x699   :  { %1071 = vxpose.xlu2.c.b16.end [4/4] (short) (narrow) %v3736_v4, 16 }
 0x70a   :  { %v1076_v54 = vpop.trf.xlu2 }
 0x70b   :  { %2479 = vmatmul.msk.bf16.vlgmr.msrb.gmra.mxu3 %vm151_vm6, %v1076_v54 }
 0x70c   :  { %2482 = vmatpush.bf16.msk.msrb.mxu3 %vm2481_vm0, %v2920_v30 }
 0x710   :  { %2484 = vmatpush.bf16.msk.msrb.mxu3 %vm3723_vm8, %v2920_v30 }
 0x714   :  { %2486 = vmatpush.bf16.msk.msrb.mxu3 %vm3692_vm10, %v2920_v30 }
 0x718   :  { %2488 = vmatpush.bf16.msk.msrb.mxu3 %vm3681_vm4, %v2920_v30 }
 0x71b   :  { %2480 = vmatmul.msk.bf16.vlgmr.msra.gmra.mxu3 %vm151_vm6, %v1076_v54 }
 0x78e   :  { %v3747_v44 = vpop.f32.mrf.mxu3 }
 0x78f   :  { %v1101_v26 = vmul.f32 %v3747_v44, %v3747_v44 }
 0x791   :  { %v1103_v49 = vsel %vm444_vm13, %v1101_v26, 0.0 }
 0x792   :  { %1104 = vadd.xlane.f32.xlu1 %v1103_v49 }
 0x796   :  { %v3752_v58 = vpop.f32.mrf.mxu3 }
 0x797   :  { %v1102_v57 = vmul.f32 %v3752_v58, %v3752_v58 }
 0x799   :  { %v1107_v56 = vsel %vm1106_vm14, %v1102_v57, 0.0  ;;  %vm1239_vm14 = vcmask 1044480  }
 0x79a   :  { %1108 = vadd.xlane.f32.xlu0 %v1107_v56 }
 0x79e   :  { %v1179_v62 = vpop.f32.mrf.mxu3 }
 0x7a6   :  { %v1181_v12 = vpop.f32.mrf.mxu3 }
 0x7a7   :  { %v1184_v41 = vpack.c.bf16 %v1181_v12, %v1179_v62 }
 0x7a9   :  { %2489 = vmatmul.msk.bf16.vlgmr.msrb.gmra.mxu3 %vm151_vm6, %v1184_v41 }
 0x805   :  { %v1105_v51 = vpop.xlane.xlu1 %1104 }
 0x806   :  { %2889 = vrsqrt.f32 %v1105_v51  ;;  %vm1117_vm15 = vcmp.eq.f32.partialorder %v1105_v51, inf  ;;  %v1120_v61 = vand.u32 2147483648, %v1105_v51  ;;  %vm1119_vm2 = vcmp.eq.f32.partialorder %v1105_v51, 0.0 }
 0x80c   :  { %v2890_v52 = vpop.eup %2889 }
 0x80d   :  { %v1111_v8 = vmul.f32 %v2890_v52, %v1105_v51  ;;  %v1109_v59 = vpop.xlane.xlu0 %1108 }
 0x80e   :  { %2891 = vrsqrt.f32 %v1109_v59  ;;  %vm1129_vm6 = vcmp.eq.f32.partialorder %v1109_v59, inf  ;;  %v1132_v55 = vand.u32 2147483648, %v1109_v59  ;;  %vm1131_vm4 = vcmp.eq.f32.partialorder %v1109_v59, 0.0 }
 0x80f   :  { %v1112_v28 = vmul.f32 %v2890_v52, %v1111_v8 }
 0x811   :  { %v1113_v48 = vmul.f32 0.5, %v1112_v28 }
 0x813   :  { %v1114_v17 = vsub.f32 1.5, %v1113_v48 }
 0x814   :  { %v2892_v50 = vpop.eup %2891 }
 0x815   :  { %v1115_v21 = vmul.f32 %v2890_v52, %v1114_v17  ;;  %v1123_v46 = vmul.f32 %v2892_v50, %v1109_v59 }
 0x817   :  { %v1116_v9 = vmul.f32 %v1115_v21, %v1105_v51  ;;  %v1124_v14 = vmul.f32 %v2892_v50, %v1123_v46 }
 0x819   :  { %v1118_v11 = vsel %vm1117_vm15, %v1105_v51, %v1116_v9  ;;  %v1125_v22 = vmul.f32 0.5, %v1124_v14  ;;  %vm4234_vm15 = vcmask 1041408  }
 0x81a   :  { %v1121_v34 = vsel %vm1119_vm2, %v1120_v61, %v1118_v11 }
 0x81b   :  { %v1134_v16 = vmax.f32 %v1121_v34, 1e-12  ;;  %v1126_v23 = vsub.f32 1.5, %v1125_v22 }
 0x81d   :  { %2893 = vrcp.f32 %v1134_v16  ;;  %v1127_v29 = vmul.f32 %v2892_v50, %v1126_v23  ;;  %v1147_v26 = vand.u32 2147483648, %v1134_v16  ;;  %vm1141_vm3 = vweird.f32 %v1134_v16 }
 0x81e   :  { %v1145_v49 = vand.u32 2147483647, %v1134_v16 }
 0x81f   :  { %v1128_v20 = vmul.f32 %v1127_v29, %v1109_v59  ;;  %v1148_v51 = vor.u32 1.1754944e-38, %v1147_v26  ;;  %v2722_v29 = vld [vmem:[%s4160_s20] sm:$0xff] }
 0x820   :  { %vm1146_vm8 = vcmp.eq.f32.partialorder %v1145_v49, 8.507059e+37  ;;  %1355 = vmatpush.bf16.msra.mxu1 %v2722_v29 }
 0x821   :  { %v1130_v35 = vsel %vm1129_vm6, %v1109_v59, %v1128_v20 }
 0x822   :  { %v1133_v1 = vsel %vm1131_vm4, %v1132_v55, %v1130_v35 }
 0x823   :  { %v2894_v10 = vpop.eup %2893  ;;  %v1135_v31 = vmax.f32 %v1133_v1, 1e-12 }
 0x824   :  { %v1137_v5 = vmul.f32 %v2894_v10, %v1134_v16  ;;  %vm1142_vm5 = vweird.f32 %v2894_v10 }
 0x825   :  { %2895 = vrcp.f32 %v1135_v31  ;;  %vm1143_vm10 = vmor %vm1141_vm3, %vm1142_vm5  ;;  %v1162_v56 = vand.u32 2147483648, %v1135_v31  ;;  %v1160_v41 = vand.u32 2147483647, %v1135_v31  ;;  %vm1156_vm1 = vweird.f32 %v1135_v31 }
 0x826   :  { %v1138_v13 = vsub.f32 1.0, %v1137_v5  ;;  %vm1366_vm3 = vcmask 39936  }
 0x827   :  { %v1163_v59 = vor.u32 1.1754944e-38, %v1162_v56  ;;  %vm1161_vm0 = vcmp.eq.f32.partialorder %v1160_v41, 8.507059e+37 }
 0x828   :  { %v1139_v3 = vmul.f32 %v2894_v10, %v1138_v13 }
 0x82a   :  { %v1140_v15 = vadd.f32 %v2894_v10, %v1139_v3 }
 0x82b   :  { %v2896_v47 = vpop.eup %2895 }
 0x82c   :  { %v3757_v60 = vpop.f32.mrf.mxu3  ;;  %v1152_v54 = vmul.f32 %v2896_v47, %v1135_v31  ;;  %v1144_v62 = vsel %vm1143_vm10, %v2894_v10, %v1140_v15  ;;  %vm1157_vm11 = vweird.f32 %v2896_v47  ;;  %vm1370_vm10 = vcmask 33792  }
 0x82d   :  { %v1202_v30 = vsel %vm879_vm9, %v3757_v60, 0.0  ;;  %v1149_v8 = vsel %vm1146_vm8, %v1148_v51, %v1144_v62  ;;  %vm1158_vm12 = vmor %vm1156_vm1, %vm1157_vm11 }
 0x82e   :  { %1203 = vadd.xlane.f32.xlu0 %v1202_v30  ;;  %v1153_v57 = vsub.f32 1.0, %v1152_v54  ;;  %v1150_v21 = vmul.f32 %v1149_v8, %v3747_v44  ;;  %v2721_v44 = vld [vmem:[%s4161_s17] sm:$0xff] }
 0x82f   :  { %1280 = vmatpush.bf16.msra.mxu2 %v2721_v44  ;;  %v2869_v8 = vld [vmem:[%s4162_s18] ss:$0 sm:$0xff] }
 0x830   :  { %v1154_v12 = vmul.f32 %v2896_v47, %v1153_v57 }
 0x832   :  { %v1155_v52 = vadd.f32 %v2896_v47, %v1154_v12 }
 0x834   :  { %v1199_v28 = vpop.f32.mrf.mxu3  ;;  %v1159_v48 = vsel %vm1158_vm12, %v2896_v47, %v1155_v52 }
 0x835   :  { %v1206_v17 = vsel %vm1205_vm7, %v1199_v28, 0.0  ;;  %v1164_v50 = vsel %vm1161_vm0, %v1163_v59, %v1159_v48 }
 0x836   :  { %1207 = vadd.xlane.f32.xlu1 %v1206_v17  ;;  %v1165_v46 = vmul.f32 %v1164_v50, %v3752_v58 }
 0x838   :  { %v1235_v9 = vpack.c.bf16 %v1165_v46, %v1150_v21  ;;  %v2870_v46 = vld [vmem:[%s4163_s21] ss:$0 sm:$0xff] }
 0x83a   :  { %v1241_v14 = vsel %vm1239_vm14, %v1235_v9, 0 }
 0x83b   :  { %1250 = vmatpush.bf16.msra.mxu3 %v1241_v14  ;;  %v1362_v14 = vld [vmem:[%s4164_s19] sm:$0xff] }
 0x8a1   :  { %v1204_v22 = vpop.xlane.xlu0 %1203 }
 0x8a9   :  { %v1208_v61 = vpop.xlane.xlu1 %1207 }
 0x8aa   :  { %v1209_v11 = vsel %vm4234_vm15, %v1208_v61, 0.0  ;;  %vm1480_vm15 = vcmask 126976  }
 0x8ab   :  { %v1210_v34 = vadd.f32 %v1209_v11, %v1204_v22 }
 0x8ad   :  { %v1211_v16 = vrot.slane %v1210_v34, 4 }
 0x8af   :  { %v1212_v23 = vadd.f32 %v1211_v16, %v1210_v34  ;;  %v1363_v16 = vld [vmem:[%s4164_s19 + $0x8] sm:$0x3]  ;;  %s2921_s19 = smov 16  }
 0x8b1   :  { %v1213_v20 = vrot.slane %v1212_v23, 2 }
 0x8b3   :  { %v1214_v58 = vadd.f32 %v1213_v20, %v1212_v23 }
 0x8b5   :  { %v1215_v55 = vrot.slane %v1214_v58, 1 }
 0x8b7   :  { %v1216_v35 = vadd.f32 %v1215_v55, %v1214_v58 }
 0x8b9   :  { %v1217_v1 = vmax.f32 %v1216_v35, 1e-12 }
 0x8bb   :  { %2897 = vrcp.f32 %v1217_v1  ;;  %v1229_v13 = vand.u32 2147483648, %v1217_v1  ;;  %v1227_v47 = vand.u32 2147483647, %v1217_v1  ;;  %vm1223_vm6 = vweird.f32 %v1217_v1 }
 0x8bd   :  { %v1230_v54 = vor.u32 1.1754944e-38, %v1229_v13  ;;  %vm1228_vm5 = vcmp.eq.f32.partialorder %v1227_v47, 8.507059e+37 }
 0x8c1   :  { %v2898_v10 = vpop.eup %2897 }
 0x8c2   :  { %v1219_v31 = vmul.f32 %v2898_v10, %v1217_v1  ;;  %vm1224_vm2 = vweird.f32 %v2898_v10 }
 0x8c3   :  { %vm1225_vm4 = vmor %vm1223_vm6, %vm1224_vm2  ;;  %vm1544_vm2 = vcmask 36864  }
 0x8c4   :  { %v1220_v5 = vsub.f32 1.0, %v1219_v31 }
 0x8c6   :  { %v1221_v3 = vmul.f32 %v2898_v10, %v1220_v5 }
 0x8c8   :  { %v1222_v15 = vadd.f32 %v2898_v10, %v1221_v3 }
 0x8ca   :  { %v1226_v30 = vsel %vm1225_vm4, %v2898_v10, %v1222_v15 }
 0x8cb   :  { %v1231_v26 = vsel %vm1228_vm5, %v1230_v54, %v1226_v30 }
 0x8cc   :  { %v1232_v49 = vmul.f32 %v1231_v26, %v3757_v60  ;;  %v1233_v57 = vmul.f32 %v1231_v26, %v1199_v28 }
 0x8ce   :  { %v1234_v56 = vpack.c.bf16 %v1233_v57, %v1232_v49 }
 0x8d0   :  { %2490 = vmatmul.msk.bf16.vlgmr.msra.gmra.mxu3 %vm879_vm9, %v1234_v56  ;;  %v1512_v62 = vsel %vm1239_vm14, %v1234_v56, 0 }
 0x8d1   :  { %1521 = vmatpush.bf16.msrb.mxu1 %v1512_v62 }
 0x953   :  { %v1252_v12 = vpop.f32.mrf.mxu3 }
 0x95b   :  { %v1254_v41 = vpop.f32.mrf.mxu3 }
 0x95c   :  { %v1257_v51 = vpack.c.bf16 %v1254_v41, %v1252_v12 }
 0x95e   :  { %2495 = vmatmul.msk.bf16.vlgmr.msra.gmra.mxu2 %vm444_vm13, %v1257_v51 }
 0x9e1   :  { %v1282_v52 = vpop.f32.mrf.mxu2 }
 0x9e2   :  { %v1283_v59 = vadd.f32 %v2869_v8, %v1282_v52 }
 0x9e4   :  { %2899 = vtanh.f32 %v1283_v59 }
 0x9e9   :  { %v1284_v48 = vpop.f32.mrf.mxu2 }
 0x9ea   :  { %v1285_v60 = vadd.f32 %v2869_v8, %v1284_v48  ;;  %v2900_v28 = vpop.eup %2899 }
 0x9ec   :  { %2901 = vtanh.f32 %v1285_v60 }
 0x9f2   :  { %v2902_v17 = vpop.eup %2901 }
 0x9f3   :  { %v1289_v50 = vpack.c.bf16 %v2902_v17, %v2900_v28 }
 0x9f5   :  { %2504 = vmatmul.msk.bf16.vlgmr.msra.gmra.mxu1 %vm444_vm13, %v1289_v50  ;;  %v1303_v21 = vsel %vm1239_vm14, %v1289_v50, 0 }
 0x9f6   :  { %1312 = vmatpush.bf16.msrb.mxu2 %v1303_v21  ;;  %1473 = vmatpush.bf16.msrb.mxu0 %v1303_v21 }
 0x9f9   :  { %2496 = vmatmul.msk.bf16.vlgmr.msrb.gmra.mxu2 %vm879_vm9, %v3685_v36 }
 0xa09   :  { %2497 = vmatmul.msk.bf16.gmra.mxu2 %vm879_vm9, %v3696_v39 }
 0xa19   :  { %2498 = vmatmul.msk.bf16.gmra.mxu2 %vm879_vm9, %v3727_v43 }
 0xa29   :  { %2499 = vmatmul.msk.bf16.gmra.mxu2 %vm879_vm9, %v3736_v4 }
 0xa72   :  { %v1357_v9 = vpop.f32.mrf.mxu1 }
 0xa73   :  { %v1358_v61 = vadd.f32 %v2870_v46, %v1357_v9 }
 0xa75   :  { %v1364_v11 = vadd.f32 %v1362_v14, %v1358_v61 }
 0xa77   :  { %v1367_v22 = vsel %vm1366_vm3, %v1364_v11, -inf }
 0xa78   :  { %1368 = vmax.xlane.f32.xlu1 %v1367_v22 }
 0xa7a   :  { %v1359_v34 = vpop.f32.mrf.mxu1 }
 0xa7b   :  { %v1360_v23 = vadd.f32 %v2870_v46, %v1359_v34 }
 0xa7d   :  { %v1365_v29 = vadd.f32 %v1363_v16, %v1360_v23 }
 0xa7f   :  { %v1371_v20 = vsel %vm1370_vm10, %v1365_v29, -inf }
 0xa80   :  { %1372 = vmax.xlane.f32.xlu0 %v1371_v20 }
 0xaeb   :  { %v1369_v44 = vpop.xlane.xlu1 %1368 }
 0xaec   :  { %vm1374_vm11 = vcmp.ge.f32.partialorder %v1364_v11, %v1369_v44  ;;  %v1314_v44 = vpop.f32.mrf.mxu2 }
 0xaed   :  { %v1376_v58 = vsel %vm1374_vm11, %v3085_v7, 5  ;;  %vm4235_vm11 = vcmask 1041408  }
 0xaee   :  { %v1378_v55 = vsel %vm1366_vm3, %v1376_v58, 2147483647 }
 0xaef   :  { %v1380_v35 = vshra.s32 %v1378_v55, 16  ;;  %v1379_v47 = vand.u32 65535, %v1378_v55 }
 0xaf1   :  { %v1382_v1 = vcvt.s32.f32 %v1380_v35  ;;  %v1381_v54 = vcvt.s32.f32 %v1379_v47 }
 0xaf3   :  { %v1373_v10 = vpop.xlane.xlu0 %1372  ;;  %1383 = vmin.xlane.f32.xlu1 %v1382_v1 }
 0xaf4   :  { %vm1375_vm7 = vcmp.ge.f32.partialorder %v1365_v29, %v1373_v10 }
 0xaf5   :  { %v1377_v31 = vsel %vm1375_vm7, %v3085_v7, 5 }
 0xaf6   :  { %v1393_v5 = vsel %vm1370_vm10, %v1377_v31, 2147483647 }
 0xaf7   :  { %v1395_v13 = vshra.s32 %v1393_v5, 16  ;;  %v1394_v26 = vand.u32 65535, %v1393_v5 }
 0xaf9   :  { %v1397_v3 = vcvt.s32.f32 %v1395_v13  ;;  %v1396_v57 = vcvt.s32.f32 %v1394_v26  ;;  %v1316_v13 = vpop.f32.mrf.mxu2 }
 0xafb   :  { %1398 = vmin.xlane.f32.xlu0 %v1397_v3 }
 0xb66   :  { %v1384_v15 = vpop.xlane.xlu1 %1383 }
 0xb67   :  { %vm1385_vm8 = vcmp.eq.f32.partialorder %v1382_v1, %v1384_v15  ;;  %v1390_v12 = vcvt.f32.s32 %v1384_v15 }
 0xb68   :  { %v1386_v30 = vsel %vm1385_vm8, %v1381_v54, inf  ;;  %vm1576_vm8 = vcmask 1042432  }
 0xb69   :  { %1387 = vmin.xlane.f32.xlu1 %v1386_v30  ;;  %v1391_v51 = vshll.u32 %v1390_v12, 16 }
 0xb6e   :  { %v1399_v49 = vpop.xlane.xlu0 %1398 }
 0xb6f   :  { %vm1400_vm1 = vcmp.eq.f32.partialorder %v1397_v3, %v1399_v49  ;;  %v1405_v52 = vcvt.f32.s32 %v1399_v49  ;;  %v2820_v3 = vpack.i.bf16 %v1316_v13, %v1314_v44  ;;  %v2723_v44 = vld [vmem:[%s4166_s22] sm:$0xff]  ;;  %s2923_s22 = smov 32  }
 0xb70   :  { %v1401_v56 = vsel %vm1400_vm1, %v1396_v57, inf }
 0xb71   :  { %1402 = vmin.xlane.f32.xlu0 %v1401_v56  ;;  %v1406_v48 = vshll.u32 %v1405_v52, 16 }
 0xbdc   :  { %v1388_v62 = vpop.xlane.xlu1 %1387 }
 0xbdd   :  { %v1389_v41 = vcvt.f32.s32 %v1388_v62  ;;  %v2922_v62 = vmov 65535  }
 0xbde   :  { %v1577_v12 = vsel %vm4235_vm11, 4294967295, %v2922_v62 }
 0xbdf   :  { %v1392_v8 = vadd.s32 %v1391_v51, %v1389_v41 }
 0xbe1   :  { %vm1408_vm12 = vcmp.eq.s32.totalorder %v3085_v7, %v1392_v8  ;;  %v1578_v8 = vsel %vm1576_vm8, %v1577_v12, 0 }
 0xbe2   :  { %v2505_v17 = vsel %vm1408_vm12, 1.0, %v2917_v19 }
 0xbe4   :  { %v1403_v59 = vpop.xlane.xlu0 %1402 }
 0xbe5   :  { %v1404_v60 = vcvt.f32.s32 %v1403_v59 }
 0xbe7   :  { %v1407_v28 = vadd.s32 %v1406_v48, %v1404_v60 }
 0xbe9   :  { %vm1409_vm0 = vcmp.eq.s32.totalorder %v3085_v7, %v1407_v28 }
 0xbea   :  { %v2506_v50 = vsel %vm1409_vm0, 1.0, %v2917_v19 }
 0xbeb   :  { %v1414_v21 = vpack.c.bf16 %v2506_v50, %v2505_v17 }
 0xbed   :  { %1447 = vxpose.xlu1.c.b16.start.end [1/1] (short) (narrow) %v1414_v21, 16  ;;  %v1416_v46 = vsel %vm1239_vm14, %v1414_v21, 0 }
 0xbee   :  { %1425 = vmatpush.bf16.msrb.mxu3 %v1416_v46  ;;  %1538 = vmatpush.bf16.msra.mxu0 %v1416_v46 }
 0xbf1   :  { %2507 = vmatmul.msk.bf16.vlgmr.msrb.gmra.mxu3 %vm879_vm9, %v3685_v36 }
 0xc01   :  { %2508 = vmatmul.msk.bf16.gmra.mxu3 %vm879_vm9, %v3696_v39 }
 0xc11   :  { %2509 = vmatmul.msk.bf16.gmra.mxu3 %vm879_vm9, %v3727_v43 }
 0xc21   :  { %2510 = vmatmul.msk.bf16.gmra.mxu3 %vm879_vm9, %v3736_v4 }
 0xc99   :  { %v1455_v7 = vpop.trf.xlu1 }
 0xc9a   :  { %2511 = vmatmul.msk.bf16.vlgmr.msrb.gmra.mxu0 %vm879_vm9, %v1455_v7  ;;  %2512 = vmatmul.msk.bf16.vlgmr.msrb.gmra.mxu1 %vm879_vm9, %v1455_v7 }
 0xc9b   :  { %1618 = vmatpush.bf16.msrb.mxu0 %v2723_v44  ;;  %v2735_v44 = vld [vmem:[%s4167_s24 + $0x54] sm:$0xf0] }
 0xd17   :  { %v1475_v19 = vpop.f32.mrf.mxu0  ;;  %v1523_v9 = vpop.f32.mrf.mxu1 }
 0xd18   :  { %v1479_v14 = vmul.f32 %v1475_v19, %v1475_v19  ;;  %v1527_v61 = vpack.c.bf16 %v1523_v9, %v1523_v9 }
 0xd1a   :  { %2513 = vmatmul.msk.bf16.vlgmr.msra.gmra.mxu0 %vm879_vm9, %v1527_v61  ;;  %v1481_v36 = vsel %vm1480_vm15, %v1479_v14, 0.0  ;;  %vm1841_vm15 = vcmask 392192  }
 0xd1b   :  { %1482 = vadd.xlane.f32.xlu0 %v1481_v36 }
 0xd1f   :  { %v1477_v39 = vpop.f32.mrf.mxu0  ;;  %v1525_v11 = vpop.f32.mrf.mxu1 }
 0xd8e   :  { %v1483_v43 = vpop.xlane.xlu0 %1482 }
 0xd8f   :  { %2903 = vrsqrt.f32 %v1483_v43  ;;  %vm1491_vm9 = vcmp.eq.f32.partialorder %v1483_v43, inf  ;;  %v1494_v1 = vand.u32 2147483648, %v1483_v43  ;;  %vm1493_vm6 = vcmp.eq.f32.partialorder %v1483_v43, 0.0 }
 0xd95   :  { %v2904_v22 = vpop.eup %2903 }
 0xd96   :  { %v1485_v4 = vmul.f32 %v2904_v22, %v1483_v43 }
 0xd97   :  { %v3817_v34 = vpop.f32.mrf.mxu0 }
 0xd98   :  { %v1486_v16 = vmul.f32 %v2904_v22, %v1485_v4  ;;  %v1545_v23 = vsel %vm1544_vm2, %v3817_v34, 0.0 }
 0xd99   :  { %1546 = vadd.xlane.f32.xlu0 %v1545_v23 }
 0xd9a   :  { %v1487_v29 = vmul.f32 0.5, %v1486_v16 }
 0xd9c   :  { %v1488_v20 = vsub.f32 1.5, %v1487_v29 }
 0xd9e   :  { %v1489_v58 = vmul.f32 %v2904_v22, %v1488_v20 }
 0xd9f   :  { %v1542_v55 = vpop.f32.mrf.mxu0 }
 0xda0   :  { %v1490_v35 = vmul.f32 %v1489_v58, %v1483_v43 }
 0xda2   :  { %v1492_v10 = vsel %vm1491_vm9, %v1483_v43, %v1490_v35 }
 0xda3   :  { %v1495_v31 = vsel %vm1493_vm6, %v1494_v1, %v1492_v10  ;;  %v1427_v1 = vpop.f32.mrf.mxu3  ;;  %v2871_v10 = vld [vmem:[%s4165_s23] ss:$0 sm:$0xff] }
 0xda4   :  { %v1496_v5 = vmax.f32 %v1495_v31, 1e-12 }
 0xda6   :  { %2905 = vrcp.f32 %v1496_v5  ;;  %v1508_v30 = vand.u32 2147483648, %v1496_v5  ;;  %v1506_v49 = vand.u32 2147483647, %v1496_v5  ;;  %vm1502_vm5 = vweird.f32 %v1496_v5 }
 0xda8   :  { %v1509_v56 = vor.u32 1.1754944e-38, %v1508_v30  ;;  %vm1507_vm7 = vcmp.eq.f32.partialorder %v1506_v49, 8.507059e+37 }
 0xdab   :  { %v1429_v31 = vpop.f32.mrf.mxu3 }
 0xdac   :  { %v2906_v47 = vpop.eup %2905  ;;  %v1625_v30 = vpack.c.bf16 %v1429_v31, %v1427_v1  ;;  %v2733_v1 = vld [vmem:[%s4167_s24 + $0x4c] sm:$0xf] }
 0xdad   :  { %2821 = vrot.lane.b32.xlu0 %v2820_v3, %s2921_s19  ;;  %v1498_v15 = vmul.f32 %v2906_v47, %v1496_v5  ;;  %vm1503_vm4 = vweird.f32 %v2906_v47 }
 0xdae   :  { %vm1504_vm10 = vmor %vm1502_vm5, %vm1503_vm4 }
 0xdaf   :  { %v1499_v54 = vsub.f32 1.0, %v1498_v15 }
 0xdb1   :  { %v1500_v26 = vmul.f32 %v2906_v47, %v1499_v54 }
 0xdb3   :  { %v1501_v57 = vadd.f32 %v2906_v47, %v1500_v26 }
 0xdb5   :  { %v1505_v41 = vsel %vm1504_vm10, %v2906_v47, %v1501_v57  ;;  %v1432_v47 = vpop.f32.mrf.mxu3 }
 0xdb6   :  { %v1510_v51 = vsel %vm1507_vm7, %v1509_v56, %v1505_v41 }
 0xdb7   :  { %v1511_v52 = vmul.f32 %v1510_v51, %v1475_v19 }
 0xdb9   :  { %v1572_v59 = vpack.c.bf16 %v1511_v52, %v1511_v52  ;;  %v1319_v52 = vpop.f32.mrf.mxu2 }
 0xdbb   :  { %v1580_v48 = vand.u32 %v1578_v8, %v1572_v59 }
 0xdbd   :  { %1589 = vmatpush.bf16.msra.mxu1 %v1580_v48  ;;  %v1434_v26 = vpop.f32.mrf.mxu3 }
 0xdbe   :  { %v1626_v57 = vpack.c.bf16 %v1434_v26, %v1432_v47  ;;  %v2544_v47 = vld [vmem:[%s4167_s24 + $0x30] sm:$0xf0] }
 0xdc5   :  { %v1437_v49 = vpop.f32.mrf.mxu3 }
 0xdcd   :  { %v1439_v56 = vpop.f32.mrf.mxu3 }
 0xdce   :  { %v1627_v62 = vpack.c.bf16 %v1439_v56, %v1437_v49  ;;  %v2552_v56 = vld [vmem:[%s4167_s24 + $0x38] sm:$0xf0] }
 0xdd5   :  { %v1442_v12 = vpop.f32.mrf.mxu3 }
 0xddd   :  { %v1444_v41 = vpop.f32.mrf.mxu3 }
 0xdde   :  { %v1628_v51 = vpack.c.bf16 %v1444_v41, %v1442_v12  ;;  %v2526_v12 = vld [vmem:[%s4167_s24] sm:$0xf]  ;;  %v2726_v41 = vld [vmem:[%s4167_s24 + $0xc] sm:$0xf0] }
 0xe0c   :  { %v1547_v60 = vpop.xlane.xlu0 %1546 }
 0xe0d   :  { %v1548_v28 = vsel %vm1239_vm14, %v1547_v60, 0.0 }
 0xe0e   :  { %v1549_v17 = vrot.slane %v1548_v28, 4 }
 0xe10   :  { %v1550_v50 = vadd.f32 %v1549_v17, %v1548_v28 }
 0xe12   :  { %v1551_v21 = vrot.slane %v1550_v50, 2 }
 0xe14   :  { %v1552_v46 = vadd.f32 %v1551_v21, %v1550_v50 }
 0xe16   :  { %v1553_v7 = vrot.slane %v1552_v46, 1 }
 0xe18   :  { %v1554_v9 = vadd.f32 %v1553_v7, %v1552_v46 }
 0xe1a   :  { %v1555_v14 = vmax.f32 %v1554_v9, 1e-12 }
 0xe1c   :  { %2907 = vrcp.f32 %v1555_v14  ;;  %v1567_v11 = vand.u32 2147483648, %v1555_v14  ;;  %v1565_v43 = vand.u32 2147483647, %v1555_v14  ;;  %vm1561_vm12 = vweird.f32 %v1555_v14 }
 0xe1e   :  { %v1568_v4 = vor.u32 1.1754944e-38, %v1567_v11  ;;  %vm1566_vm14 = vcmp.eq.f32.partialorder %v1565_v43, 8.507059e+37 }
 0xe22   :  { %v2908_v61 = vpop.eup %2907 }
 0xe23   :  { %v1557_v36 = vmul.f32 %v2908_v61, %v1555_v14  ;;  %vm1562_vm1 = vweird.f32 %v2908_v61 }
 0xe24   :  { %vm1563_vm0 = vmor %vm1561_vm12, %vm1562_vm1 }
 0xe25   :  { %v1558_v39 = vsub.f32 1.0, %v1557_v36  ;;  %v2560_v36 = vld [vmem:[%s4167_s24 + $0x50] sm:$0xf0] }
 0xe27   :  { %v1559_v19 = vmul.f32 %v2908_v61, %v1558_v39 }
 0xe29   :  { %v1560_v22 = vadd.f32 %v2908_v61, %v1559_v19 }
 0xe2b   :  { %v1564_v16 = vsel %vm1563_vm0, %v2908_v61, %v1560_v22  ;;  %v2732_v61 = vld [vmem:[%s4167_s24 + $0x44] sm:$0xf] }
 0xe2c   :  { %v1569_v23 = vsel %vm1566_vm14, %v1568_v4, %v1564_v16  ;;  %v2563_v39 = vor.u32 %v2732_v61, %v2560_v36 }
 0xe2d   :  { %v1570_v29 = vmul.f32 %v1569_v23, %v3817_v34 }
 0xe2e   :  { %1888 = vmatpush.bf16.msra.mxu2 %v2563_v39 }
 0xe2f   :  { %v1571_v20 = vpack.c.bf16 %v1570_v29, %v1570_v29 }
 0xe31   :  { %2514 = vmatmul.msk.bf16.vlgmr.msra.gmra.mxu1 %vm1366_vm3, %v1571_v20  ;;  %v2566_v20 = vld [vmem:[%s4167_s24 + $0x48] sm:$0xf] }
 0xeae   :  { %v1591_v58 = vpop.f32.mrf.mxu1 }
 0xeaf   :  { %v1595_v55 = vpack.c.bf16 %v1591_v58, %v1591_v58  ;;  %v2558_v58 = vld [vmem:[%s4167_s24 + $0x40] sm:$0xf] }
 0xeb1   :  { %2519 = vmatmul.msk.bf16.vlgmr.msrb.gmra.mxu0 %vm444_vm13, %v1595_v55  ;;  %v2567_v55 = vor.u32 %v2735_v44, %v2566_v20 }
 0xeb3   :  { %1917 = vmatpush.bf16.msra.mxu3 %v2567_v55  ;;  %v2742_v55 = vld [vmem:[%s4168_s26 + $0x30] sm:$0xff] }
 0xeb6   :  { %v1593_v35 = vpop.f32.mrf.mxu1 }
 0xeb7   :  { %v2734_v35 = vld [vmem:[%s4167_s24 + $0x4c] sm:$0xf0] }
 0xeb8   :  { %v2559_v31 = vor.u32 %v2734_v35, %v2558_v58  ;;  %v2766_v35 = vld [vmem:[%s4168_s26 + $0xf0] sm:$0xff] }
 0xeba   :  { %1859 = vmatpush.bf16.msra.mxu0 %v2559_v31 }
 0xf2e   :  { %v1620_v34 = vpop.f32.mrf.mxu0 }
 0xf2f   :  { %v1621_v5 = vadd.f32 %v2871_v10, %v1620_v34  ;;  %v2568_v10 = vld [vmem:[%s4167_s24 + $0x58] sm:$0xf0] }
 0xf30   :  { %v2571_v34 = vor.u32 %v2733_v1, %v2568_v10  ;;  %v2750_v1 = vld [vmem:[%s4168_s26 + $0x70] sm:$0xff] }
 0xf31   :  { %2909 = vtanh.f32 %v1621_v5  ;;  %v2542_v5 = vld [vmem:[%s4167_s24 + $0x20] sm:$0xf]  ;;  %v2758_v10 = vld [vmem:[%s4168_s26 + $0xb0] sm:$0xff] }
 0xf36   :  { %v1622_v13 = vpop.f32.mrf.mxu0 }
 0xf37   :  { %v2910_v3 = vpop.eup %2909  ;;  %v2730_v13 = vld [vmem:[%s4167_s24 + $0x2c] sm:$0xf0] }
 0xf38   :  { %v1629_v15 = vpack.c.bf16 %v2910_v3, %v2910_v3  ;;  %v2728_v3 = vld [vmem:[%s4167_s24 + $0x24] sm:$0xf] }
 0xf39   :  { %v2547_v26 = vor.u32 %v2728_v3, %v2544_v47  ;;  %v2749_v47 = vld [vmem:[%s4168_s26 + $0x68] sm:$0xff] }
 0xf3a   :  { %v1643_v54 = vand.u32 %v1629_v15, %v1578_v8  ;;  %v1321_v8 = vpop.f32.mrf.mxu2  ;;  %v2550_v15 = vld [vmem:[%s4167_s24 + $0x28] sm:$0xf] }
 0xf3b   :  { %v2830_v21 = vpack.i.bf16 %v1321_v8, %v1319_v52  ;;  %1889 = vmatpush.bf16.msra.mxu2 %v2547_v26  ;;  %v2527_v52 = vor.u32 %v2726_v41, %v2526_v12  ;;  %v2528_v8 = vld [vmem:[%s4167_s24 + $0x10] sm:$0xf0] }
 0xf3c   :  { %1652 = vmatpush.bf16.msrb.mxu1 %v1643_v54  ;;  %v2731_v54 = vld [vmem:[%s4167_s24 + $0x34] sm:$0xf0] }
 0xf3d   :  { %v2551_v49 = vor.u32 %v2731_v54, %v2550_v15  ;;  %v2757_v15 = vld [vmem:[%s4168_s26 + $0xa8] sm:$0xff] }
 0xf3f   :  { %2520 = vmatmul.msk.bf16.vlgmr.msrb.gmra.mxu1 %vm1366_vm3, %v1625_v30  ;;  %v2543_v30 = vor.u32 %v2730_v13, %v2542_v5  ;;  %1918 = vmatpush.bf16.msra.mxu3 %v2551_v49  ;;  %v2765_v5 = vld [vmem:[%s4168_s26 + $0xe8] sm:$0xff]  ;;  %v2740_v49 = vld [vmem:[%s4168_s26 + $0x20] sm:$0xff] }
 0xf40   :  { %1946 = vmatpush.bf16.msra.mxu1 %v2571_v34  ;;  %v2741_v34 = vld [vmem:[%s4168_s26 + $0x28] sm:$0xff] }
 0xf41   :  { %1860 = vmatpush.bf16.msra.mxu0 %v2543_v30 }
 0xf42   :  { %v1324_v59 = vpop.f32.mrf.mxu2 }
 0xf45   :  { %1861 = vmatpush.bf16.msra.mxu0 %v2527_v52 }
 0xf49   :  { %2278 = vmatpush.bf16.msrb.mxu0 %v2743_v42 }
 0xf4a   :  { %v1326_v17 = vpop.f32.mrf.mxu2 }
 0xf4b   :  { %v2840_v9 = vpack.i.bf16 %v1326_v17, %v1324_v59  ;;  %v2534_v59 = vld [vmem:[%s4167_s24 + $0x8] sm:$0xf]  ;;  %v2725_v17 = vld [vmem:[%s4167_s24 + $0xc] sm:$0xf] }
 0xf4d   :  { %2279 = vmatpush.bf16.msrb.mxu0 %v2742_v55 }
 0xf4f   :  { %2521 = vmatmul.msk.bf16.gmra.mxu1 %vm1366_vm3, %v1626_v57  ;;  %v2729_v57 = vld [vmem:[%s4167_s24 + $0x2c] sm:$0xf] }
 0xf51   :  { %2280 = vmatpush.bf16.msrb.mxu0 %v2741_v34 }
 0xf52   :  { %v1329_v46 = vpop.f32.mrf.mxu2 }
 0xf55   :  { %2281 = vmatpush.bf16.msrb.mxu0 %v2740_v49 }
 0xf59   :  { %2282 = vmatpush.bf16.msrb.mxu0 %v2739_v53 }
 0xf5a   :  { %v1331_v11 = vpop.f32.mrf.mxu2 }
 0xf5b   :  { %v2850_v43 = vpack.i.bf16 %v1331_v11, %v1329_v46  ;;  %v2822_v46 = vpop.permute.xlu0 %2821 }
 0xf5f   :  { %2522 = vmatmul.msk.bf16.gmra.mxu1 %vm1366_vm3, %v1627_v62  ;;  %v2555_v62 = vor.u32 %v2729_v57, %v2552_v56  ;;  %v2764_v57 = vld [vmem:[%s4168_s26 + $0xe0] sm:$0xff] }
 0xf61   :  { %1947 = vmatpush.bf16.msra.mxu1 %v2555_v62 }
 0xf6f   :  { %2523 = vmatmul.msk.bf16.gmra.mxu1 %vm1366_vm3, %v1628_v51  ;;  %v2724_v51 = vld [vmem:[%s4167_s24 + $0x4] sm:$0xf]  ;;  %vm1746_vm3 = vcmask 261120  }
 0xfbc   :  { %v1654_v48 = vpop.f32.mrf.mxu1 }
 0xfc4   :  { %v1656_v60 = vpop.f32.mrf.mxu1 }
 0xfc5   :  { %v2825_v28 = vpack.i.bf16 %v1656_v60, %v1654_v48  ;;  %v2727_v48 = vld [vmem:[%s4167_s24 + $0x14] sm:$0xf0]  ;;  %v2531_v60 = vor.u32 %v2724_v51, %v2528_v8 }
 0xfc7   :  { %2826 = vrot.lane.b32.xlu0 %v2825_v28, %s2923_s22  ;;  %v2535_v28 = vor.u32 %v2727_v48, %v2534_v59  ;;  %1890 = vmatpush.bf16.msra.mxu2 %v2531_v60 }
 0xfc9   :  { %1919 = vmatpush.bf16.msra.mxu3 %v2535_v28 }
 0xfcc   :  { %v1659_v50 = vpop.f32.mrf.mxu1 }
 0xfcf   :  { %2831 = vrot.lane.b32.xlu0 %v2830_v21, %s2921_s19 }
 0xfd4   :  { %v1661_v7 = vpop.f32.mrf.mxu1 }
 0xfd5   :  { %v2835_v14 = vpack.i.bf16 %v1661_v7, %v1659_v50  ;;  %v2536_v50 = vld [vmem:[%s4167_s24 + $0x18] sm:$0xf0]  ;;  %v2824_v7 = vunpack.i.h.bf16 %v2822_v46 }
 0xfd6   :  { %v2539_v21 = vor.u32 %v2725_v17, %v2536_v50  ;;  %v2738_v50 = vld [vmem:[%s4168_s26 + $0x10] sm:$0xff] }
 0xfd7   :  { %2836 = vrot.lane.b32.xlu2 %v2835_v14, %s2923_s22  ;;  %2841 = vrot.lane.b32.xlu0 %v2840_v9, %s2921_s19  ;;  %v2823_v9 = vunpack.i.l.bf16 %v2822_v46  ;;  %v1739_v39 = vsel %vm444_vm13, %v799_v27, %v2824_v7  ;;  %v2747_v46 = vld [vmem:[%s4168_s26 + $0x58] sm:$0xff] }
 0xfd8   :  { %1948 = vmatpush.bf16.msra.mxu1 %v2539_v21  ;;  %v2762_v21 = vld [vmem:[%s4168_s26 + $0xd0] sm:$0xff]  ;;  %2283 = vmatpush.bf16.msrb.mxu0 %v2738_v50  ;;  %v2755_v7 = vld [vmem:[%s4168_s26 + $0x98] sm:$0xff] }
 0xfd9   :  { %v1738_v11 = vsel %vm444_vm13, %v798_v37, %v2823_v9  ;;  %v2737_v9 = vld [vmem:[%s4168_s26 + $0x8] sm:$0xff] }
 0xfdc   :  { %v1664_v19 = vpop.f32.mrf.mxu1  ;;  %2365 = vmatpush.bf16.msrb.mxu1 %v2767_v33  ;;  %2284 = vmatpush.bf16.msrb.mxu0 %v2737_v9 }
 0xfdf   :  { %2851 = vrot.lane.b32.xlu0 %v2850_v43, %s2921_s19 }
 0xfe0   :  { %2366 = vmatpush.bf16.msrb.mxu1 %v2766_v35 }
 0xfe4   :  { %v1666_v22 = vpop.f32.mrf.mxu1  ;;  %2367 = vmatpush.bf16.msrb.mxu1 %v2765_v5 }
 0xfe5   :  { %v2845_v4 = vpack.i.bf16 %v1666_v22, %v1664_v19 }
 0xfe7   :  { %2846 = vrot.lane.b32.xlu1 %v2845_v4, %s2923_s22 }
 0xfe8   :  { %2368 = vmatpush.bf16.msrb.mxu1 %v2764_v57 }
 0xfec   :  { %v1669_v16 = vpop.f32.mrf.mxu1  ;;  %2369 = vmatpush.bf16.msrb.mxu1 %v2763_v0 }
 0xff0   :  { %2370 = vmatpush.bf16.msrb.mxu1 %v2762_v21 }
 0xff4   :  { %v1671_v23 = vpop.f32.mrf.mxu1 }
 0xff5   :  { %v2855_v29 = vpack.i.bf16 %v1671_v23, %v1669_v16 }
 0xff7   :  { %2856 = vrot.lane.b32.xlu0 %v2855_v29, %s2923_s22 }
0x1031   :  { %v2837_v2 = vpop.permute.xlu2 %2836 }
0x1032   :  { %v2839_v23 = vunpack.i.h.bf16 %v2837_v2  ;;  %v2838_v29 = vunpack.i.l.bf16 %v2837_v2 }
0x1039   :  { %v2827_v14 = vpop.permute.xlu0 %2826 }
0x103a   :  { %v2829_v61 = vunpack.i.h.bf16 %v2827_v14  ;;  %v2828_v36 = vunpack.i.l.bf16 %v2827_v14  ;;  %v2761_v14 = vld [vmem:[%s4168_s26 + $0xc8] sm:$0xff] }
0x103b   :  { %2371 = vmatpush.bf16.msrb.mxu1 %v2761_v14 }
0x103c   :  { %v1747_v19 = vsel %vm1746_vm3, %v1738_v11, %v2828_v36  ;;  %v1748_v43 = vsel %vm1746_vm3, %v1739_v39, %v2829_v61  ;;  %v2746_v61 = vld [vmem:[%s4168_s26 + $0x50] sm:$0xff]  ;;  %v2736_v39 = vld [vmem:[%s4168_s26] sm:$0xff] }
0x103d   :  { %v1755_v22 = vpack.c.bf16 %v1748_v43, %v1747_v19  ;;  %v2754_v36 = vld [vmem:[%s4168_s26 + $0x90] sm:$0xff]  ;;  %v2760_v11 = vld [vmem:[%s4168_s26 + $0xc0] sm:$0xff]  ;;  %2285 = vmatpush.bf16.msrb.mxu0 %v2736_v39  ;;  %v2745_v19 = vld [vmem:[%s4168_s26 + $0x48] sm:$0xff] }
0x103e   :  { %v2753_v43 = vld [vmem:[%s4168_s26 + $0x88] sm:$0xff] }
0x103f   :  { %2572 = vmatmul.msk.bf16.vlgmr.msra.gmra.mxu0 %vm1841_vm15, %v1755_v22  ;;  %2576 = vmatmul.msk.bf16.vlgmr.msra.gmra.mxu2 %vm1841_vm15, %v1755_v22 }
0x1040   :  { %2580 = vmatmul.msk.bf16.vlgmr.msra.gmra.mxu3 %vm1841_vm15, %v1755_v22  ;;  %2584 = vmatmul.msk.bf16.vlgmr.msra.gmra.mxu1 %vm1841_vm15, %v1755_v22  ;;  %v2744_v22 = vld [vmem:[%s4168_s26 + $0x40] sm:$0xff] }
0x1041   :  { %v2832_v32 = vpop.permute.xlu0 %2831  ;;  %2372 = vmatpush.bf16.msrb.mxu1 %v2760_v11 }
0x1042   :  { %v2834_v27 = vunpack.i.h.bf16 %v2832_v32  ;;  %v2833_v4 = vunpack.i.l.bf16 %v2832_v32  ;;  %v2752_v32 = vld [vmem:[%s4168_s26 + $0x80] sm:$0xff] }
0x1044   :  { %v1741_v37 = vsel %vm444_vm13, %v801_v45, %v2834_v27  ;;  %v1740_v16 = vsel %vm444_vm13, %v800_v18, %v2833_v4  ;;  %v2751_v18 = vld [vmem:[%s4168_s26 + $0x78] sm:$0xff]  ;;  %v1771_v27 = vld [vmem:[%s4169_s25] sm:$0xf] }
0x1045   :  { %v1749_v20 = vsel %vm1746_vm3, %v1740_v16, %v2838_v29  ;;  %v1750_v44 = vsel %vm1746_vm3, %v1741_v37, %v2839_v23  ;;  %v2759_v45 = vld [vmem:[%s4168_s26 + $0xb8] sm:$0xff]  ;;  %2307 = vmatpush.bf16.msrb.mxu2 %v2751_v18  ;;  %v4058_v37 = vperm.slane %v1771_v27, 0  ;;  %v4060_v16 = vperm.slane %v1771_v27, 3 }
0x1046   :  { %v1756_v58 = vpack.c.bf16 %v1750_v44, %v1749_v20  ;;  %2336 = vmatpush.bf16.msrb.mxu3 %v2759_v45  ;;  %v4064_v42 = vperm.slane %v1771_v27, 1  ;;  %v4067_v45 = vperm.slane %v1771_v27, 2  ;;  %v33_v27 = vstv %s4170_s27 }
0x1047   :  { %34 = vst [vmem:[#allocation2] sm:$0x1] %v33_v27 }
0x1049   :  { %v2842_v31 = vpop.permute.xlu0 %2841  ;;  %2308 = vmatpush.bf16.msrb.mxu2 %v2750_v1 }
0x104a   :  { %v2844_v13 = vunpack.i.h.bf16 %v2842_v31  ;;  %v2843_v3 = vunpack.i.l.bf16 %v2842_v31  ;;  %2337 = vmatpush.bf16.msrb.mxu3 %v2758_v10 }
0x104c   :  { %v1743_v56 = vsel %vm444_vm13, %v803_v24, %v2844_v13  ;;  %v1742_v62 = vsel %vm444_vm13, %v802_v40, %v2843_v3 }
0x104d   :  { %2309 = vmatpush.bf16.msrb.mxu2 %v2749_v47 }
0x104e   :  { %2338 = vmatpush.bf16.msrb.mxu3 %v2757_v15 }
0x104f   :  { %2573 = vmatmul.msk.bf16.gmra.mxu0 %vm1841_vm15, %v1756_v58  ;;  %2577 = vmatmul.msk.bf16.gmra.mxu2 %vm1841_vm15, %v1756_v58 }
0x1050   :  { %2581 = vmatmul.msk.bf16.gmra.mxu3 %vm1841_vm15, %v1756_v58  ;;  %2585 = vmatmul.msk.bf16.gmra.mxu1 %vm1841_vm15, %v1756_v58 }
0x1051   :  { %v2852_v6 = vpop.permute.xlu0 %2851 }
0x1052   :  { %v2854_v63 = vunpack.i.h.bf16 %v2852_v6  ;;  %v2853_v40 = vunpack.i.l.bf16 %v2852_v6 }
0x1054   :  { %v1745_v59 = vsel %vm444_vm13, %v805_v38, %v2854_v63  ;;  %v1744_v48 = vsel %vm444_vm13, %v804_v25, %v2853_v40  ;;  %v2748_v25 = vld [vmem:[%s4168_s26 + $0x60] sm:$0xff]  ;;  %vm2402_vm13 = vcmask 7168  }
0x1055   :  { %v2756_v38 = vld [vmem:[%s4168_s26 + $0xa0] sm:$0xff]  ;;  %2310 = vmatpush.bf16.msrb.mxu2 %v2748_v25 }
0x1056   :  { %2339 = vmatpush.bf16.msrb.mxu3 %v2756_v38 }
0x1059   :  { %v2847_v54 = vpop.permute.xlu1 %2846  ;;  %2311 = vmatpush.bf16.msrb.mxu2 %v2747_v46 }
0x105a   :  { %v2849_v30 = vunpack.i.h.bf16 %v2847_v54  ;;  %v2848_v26 = vunpack.i.l.bf16 %v2847_v54  ;;  %2340 = vmatpush.bf16.msrb.mxu3 %v2755_v7 }
0x105c   :  { %v1751_v12 = vsel %vm1746_vm3, %v1742_v62, %v2848_v26  ;;  %v1752_v41 = vsel %vm1746_vm3, %v1743_v56, %v2849_v30 }
0x105d   :  { %v1757_v51 = vpack.c.bf16 %v1752_v41, %v1751_v12  ;;  %2312 = vmatpush.bf16.msrb.mxu2 %v2746_v61 }
0x105e   :  { %2341 = vmatpush.bf16.msrb.mxu3 %v2754_v36 }
0x105f   :  { %2574 = vmatmul.msk.bf16.gmra.mxu0 %vm1841_vm15, %v1757_v51  ;;  %2578 = vmatmul.msk.bf16.gmra.mxu2 %vm1841_vm15, %v1757_v51 }
0x1060   :  { %2582 = vmatmul.msk.bf16.gmra.mxu3 %vm1841_vm15, %v1757_v51  ;;  %2586 = vmatmul.msk.bf16.gmra.mxu1 %vm1841_vm15, %v1757_v51 }
0x1061   :  { %2313 = vmatpush.bf16.msrb.mxu2 %v2745_v19 }
0x1062   :  { %2342 = vmatpush.bf16.msrb.mxu3 %v2753_v43 }
0x1065   :  { %2314 = vmatpush.bf16.msrb.mxu2 %v2744_v22 }
0x1066   :  { %2343 = vmatpush.bf16.msrb.mxu3 %v2752_v32 }
0x1069   :  { %v2857_v24 = vpop.permute.xlu0 %2856 }
0x106a   :  { %v2859_v52 = vunpack.i.h.bf16 %v2857_v24  ;;  %v2858_v8 = vunpack.i.l.bf16 %v2857_v24 }
0x106c   :  { %v1753_v60 = vsel %vm1746_vm3, %v1744_v48, %v2858_v8  ;;  %v1754_v28 = vsel %vm1746_vm3, %v1745_v59, %v2859_v52 }
0x106d   :  { %v1758_v17 = vpack.c.bf16 %v1754_v28, %v1753_v60 }
0x106f   :  { %2575 = vmatmul.msk.bf16.gmra.mxu0 %vm1841_vm15, %v1758_v17  ;;  %2579 = vmatmul.msk.bf16.gmra.mxu2 %vm1841_vm15, %v1758_v17 }
0x1070   :  { %2583 = vmatmul.msk.bf16.gmra.mxu3 %vm1841_vm15, %v1758_v17  ;;  %2587 = vmatmul.msk.bf16.gmra.mxu1 %vm1841_vm15, %v1758_v17 }
0x10bc   :  { %v1863_v4 = vpop.f32.mrf.mxu0 }
0x10bd   :  { %v1950_v2 = vpop.f32.mrf.mxu1  ;;  %v1864_v29 = vadd.f32 %v1863_v4, %v4058_v37 }
0x10be   :  { %v1951_v44 = vadd.f32 %v1950_v2, %v4060_v16 }
0x10bf   :  { %v1970_v35 = vmax.f32 %v1864_v29, 0.0 }
0x10c0   :  { %v1973_v10 = vmax.f32 %v1951_v44, 0.0 }
0x10c2   :  { %v1892_v23 = vpop.f32.mrf.mxu2 }
0x10c3   :  { %v1921_v20 = vpop.f32.mrf.mxu3  ;;  %v1893_v34 = vadd.f32 %v1892_v23, %v4064_v42 }
0x10c4   :  { %v1865_v58 = vpop.f32.mrf.mxu0  ;;  %v1922_v13 = vadd.f32 %v1921_v20, %v4067_v45 }
0x10c5   :  { %v1866_v33 = vadd.f32 %v1865_v58, %v4058_v37  ;;  %v1952_v18 = vpop.f32.mrf.mxu1  ;;  %v1971_v49 = vmax.f32 %v1893_v34, 0.0 }
0x10c6   :  { %v1953_v55 = vadd.f32 %v1952_v18, %v4060_v16  ;;  %v1972_v62 = vmax.f32 %v1922_v13, 0.0 }
0x10c7   :  { %v1974_v1 = vmax.f32 %v1866_v33, 0.0 }
0x10c8   :  { %v1977_v31 = vmax.f32 %v1953_v55, 0.0 }
0x10c9   :  { %v2002_v5 = vpack.c.bf16 %v1974_v1, %v1970_v35 }
0x10ca   :  { %v2005_v3 = vpack.c.bf16 %v1977_v31, %v1973_v10  ;;  %v1894_v47 = vpop.f32.mrf.mxu2 }
0x10cb   :  { %v1895_v15 = vadd.f32 %v1894_v47, %v4064_v42  ;;  %v1923_v54 = vpop.f32.mrf.mxu3  ;;  %2286 = vmatmul.bf16.vlgmr.msrb.gmra.mxu0 %v2002_v5 }
0x10cc   :  { %v1924_v30 = vadd.f32 %v1923_v54, %v4067_v45  ;;  %2373 = vmatmul.bf16.vlgmr.msrb.gmra.mxu1 %v2005_v3  ;;  %v1868_v26 = vpop.f32.mrf.mxu0 }
0x10cd   :  { %v1975_v57 = vmax.f32 %v1895_v15, 0.0  ;;  %v1955_v56 = vpop.f32.mrf.mxu1  ;;  %v1869_v63 = vadd.f32 %v1868_v26, %v4058_v37 }
0x10ce   :  { %v1976_v12 = vmax.f32 %v1924_v30, 0.0  ;;  %v1956_v24 = vadd.f32 %v1955_v56, %v4060_v16 }
0x10cf   :  { %v2003_v41 = vpack.c.bf16 %v1975_v57, %v1971_v49  ;;  %v1978_v60 = vmax.f32 %v1869_v63, 0.0 }
0x10d0   :  { %v2004_v51 = vpack.c.bf16 %v1976_v12, %v1972_v62  ;;  %v1981_v17 = vmax.f32 %v1956_v24, 0.0 }
0x10d1   :  { %2315 = vmatmul.bf16.vlgmr.msrb.gmra.mxu2 %v2003_v41 }
0x10d2   :  { %2344 = vmatmul.bf16.vlgmr.msrb.gmra.mxu3 %v2004_v51  ;;  %v1897_v6 = vpop.f32.mrf.mxu2 }
0x10d3   :  { %v1926_v40 = vpop.f32.mrf.mxu3  ;;  %v1898_v0 = vadd.f32 %v1897_v6, %v4064_v42 }
0x10d4   :  { %v1870_v52 = vpop.f32.mrf.mxu0  ;;  %v1927_v38 = vadd.f32 %v1926_v40, %v4067_v45 }
0x10d5   :  { %v1871_v8 = vadd.f32 %v1870_v52, %v4058_v37  ;;  %v1957_v59 = vpop.f32.mrf.mxu1  ;;  %v1979_v61 = vmax.f32 %v1898_v0, 0.0 }
0x10d6   :  { %v1958_v48 = vadd.f32 %v1957_v59, %v4060_v16  ;;  %v1980_v11 = vmax.f32 %v1927_v38, 0.0 }
0x10d7   :  { %v1982_v28 = vmax.f32 %v1871_v8, 0.0 }
0x10d8   :  { %v1985_v53 = vmax.f32 %v1958_v48, 0.0 }
0x10d9   :  { %v2006_v25 = vpack.c.bf16 %v1982_v28, %v1978_v60 }
0x10da   :  { %v2009_v50 = vpack.c.bf16 %v1985_v53, %v1981_v17  ;;  %v1899_v21 = vpop.f32.mrf.mxu2 }
0x10db   :  { %v1900_v46 = vadd.f32 %v1899_v21, %v4064_v42  ;;  %v1928_v7 = vpop.f32.mrf.mxu3  ;;  %2291 = vmatmul.bf16.gmra.mxu0 %v2006_v25 }
0x10dc   :  { %v1929_v9 = vadd.f32 %v1928_v7, %v4067_v45  ;;  %2378 = vmatmul.bf16.gmra.mxu1 %v2009_v50  ;;  %v1873_v14 = vpop.f32.mrf.mxu0 }
0x10dd   :  { %v1983_v36 = vmax.f32 %v1900_v46, 0.0  ;;  %v1960_v39 = vpop.f32.mrf.mxu1  ;;  %v1874_v4 = vadd.f32 %v1873_v14, %v4058_v37 }
0x10de   :  { %v1984_v19 = vmax.f32 %v1929_v9, 0.0  ;;  %v1961_v23 = vadd.f32 %v1960_v39, %v4060_v16  ;;  %v4101_v39 = vld [vmem:[#allocation2] ss:$0 sm:$0xff] }
0x10df   :  { %v2007_v43 = vpack.c.bf16 %v1983_v36, %v1979_v61  ;;  %v1986_v33 = vmax.f32 %v1874_v4, 0.0 }
0x10e0   :  { %v2008_v22 = vpack.c.bf16 %v1984_v19, %v1980_v11  ;;  %v1989_v55 = vmax.f32 %v1961_v23, 0.0 }
0x10e1   :  { %2320 = vmatmul.bf16.gmra.mxu2 %v2007_v43 }
0x10e2   :  { %2349 = vmatmul.bf16.gmra.mxu3 %v2008_v22  ;;  %v1902_v32 = vpop.f32.mrf.mxu2 }
0x10e3   :  { %v1931_v2 = vpop.f32.mrf.mxu3  ;;  %v1903_v1 = vadd.f32 %v1902_v32, %v4064_v42 }
0x10e4   :  { %v1875_v29 = vpop.f32.mrf.mxu0  ;;  %v1932_v31 = vadd.f32 %v1931_v2, %v4067_v45 }
0x10e5   :  { %v1876_v20 = vadd.f32 %v1875_v29, %v4058_v37  ;;  %v1962_v44 = vpop.f32.mrf.mxu1  ;;  %v1987_v54 = vmax.f32 %v1903_v1, 0.0 }
0x10e6   :  { %v1963_v58 = vadd.f32 %v1962_v44, %v4060_v16  ;;  %v1988_v49 = vmax.f32 %v1932_v31, 0.0 }
0x10e7   :  { %v1990_v18 = vmax.f32 %v1876_v20, 0.0 }
0x10e8   :  { %v1993_v35 = vmax.f32 %v1963_v58, 0.0 }
0x10e9   :  { %v2010_v10 = vpack.c.bf16 %v1990_v18, %v1986_v33 }
0x10ea   :  { %v2013_v34 = vpack.c.bf16 %v1993_v35, %v1989_v55  ;;  %v1904_v5 = vpop.f32.mrf.mxu2 }
0x10eb   :  { %v1905_v13 = vadd.f32 %v1904_v5, %v4064_v42  ;;  %v1933_v3 = vpop.f32.mrf.mxu3  ;;  %2296 = vmatmul.bf16.gmra.mxu0 %v2010_v10 }
0x10ec   :  { %v1934_v47 = vadd.f32 %v1933_v3, %v4067_v45  ;;  %2383 = vmatmul.bf16.gmra.mxu1 %v2013_v34  ;;  %v1878_v15 = vpop.f32.mrf.mxu0 }
0x10ed   :  { %v1991_v30 = vmax.f32 %v1905_v13, 0.0  ;;  %v1965_v26 = vpop.f32.mrf.mxu1  ;;  %v1879_v41 = vadd.f32 %v1878_v15, %v4058_v37 }
0x10ee   :  { %v1992_v57 = vmax.f32 %v1934_v47, 0.0  ;;  %v1966_v6 = vadd.f32 %v1965_v26, %v4060_v16 }
0x10ef   :  { %v2011_v56 = vpack.c.bf16 %v1991_v30, %v1987_v54  ;;  %v1994_v8 = vmax.f32 %v1879_v41, 0.0 }
0x10f0   :  { %v2012_v62 = vpack.c.bf16 %v1992_v57, %v1988_v49  ;;  %v1997_v48 = vmax.f32 %v1966_v6, 0.0 }
0x10f1   :  { %2325 = vmatmul.bf16.gmra.mxu2 %v2011_v56 }
0x10f2   :  { %2354 = vmatmul.bf16.gmra.mxu3 %v2012_v62  ;;  %v1907_v12 = vpop.f32.mrf.mxu2 }
0x10f3   :  { %v1936_v51 = vpop.f32.mrf.mxu3  ;;  %v1908_v28 = vadd.f32 %v1907_v12, %v4064_v42 }
0x10f4   :  { %v1880_v63 = vpop.f32.mrf.mxu0  ;;  %v1937_v53 = vadd.f32 %v1936_v51, %v4067_v45 }
0x10f5   :  { %v1881_v40 = vadd.f32 %v1880_v63, %v4058_v37  ;;  %v1967_v24 = vpop.f32.mrf.mxu1  ;;  %v1995_v21 = vmax.f32 %v1908_v28, 0.0 }
0x10f6   :  { %v1968_v52 = vadd.f32 %v1967_v24, %v4060_v16  ;;  %v1996_v46 = vmax.f32 %v1937_v53, 0.0 }
0x10f7   :  { %v1998_v59 = vmax.f32 %v1881_v40, 0.0 }
0x10f8   :  { %v2001_v60 = vmax.f32 %v1968_v52, 0.0 }
0x10f9   :  { %v2014_v17 = vpack.c.bf16 %v1998_v59, %v1994_v8 }
0x10fa   :  { %v2017_v0 = vpack.c.bf16 %v2001_v60, %v1997_v48  ;;  %v1909_v25 = vpop.f32.mrf.mxu2 }
0x10fb   :  { %v1910_v38 = vadd.f32 %v1909_v25, %v4064_v42  ;;  %v1938_v50 = vpop.f32.mrf.mxu3  ;;  %2301 = vmatmul.bf16.gmra.mxu0 %v2014_v17 }
0x10fc   :  { %v1939_v37 = vadd.f32 %v1938_v50, %v4067_v45  ;;  %2388 = vmatmul.bf16.gmra.mxu1 %v2017_v0 }
0x10fd   :  { %v1999_v16 = vmax.f32 %v1910_v38, 0.0 }
0x10fe   :  { %v2000_v7 = vmax.f32 %v1939_v37, 0.0 }
0x10ff   :  { %v2015_v9 = vpack.c.bf16 %v1999_v16, %v1995_v21 }
0x1100   :  { %v2016_v14 = vpack.c.bf16 %v2000_v7, %v1996_v46 }
0x1101   :  { %2330 = vmatmul.bf16.gmra.mxu2 %v2015_v9 }
0x1102   :  { %2359 = vmatmul.bf16.gmra.mxu3 %v2016_v14 }
0x1148   :  { %v2287_v61 = vpop.f32.mrf.mxu0 }
0x1149   :  { %v2374_v36 = vpop.f32.mrf.mxu1  ;;  %v2288_v42 = vadd.f32 %v4101_v39, %v2287_v61 }
0x1150   :  { %v2289_v11 = vpop.f32.mrf.mxu0 }
0x1151   :  { %v2376_v19 = vpop.f32.mrf.mxu1  ;;  %v2290_v2 = vadd.f32 %v4101_v39, %v2289_v11 }
0x1154   :  { %v2316_v43 = vpop.f32.mrf.mxu2 }
0x1155   :  { %v2317_v22 = vadd.f32 %v2316_v43, %v2288_v42  ;;  %v2345_v45 = vpop.f32.mrf.mxu3 }
0x1157   :  { %v2346_v32 = vadd.f32 %v2345_v45, %v2317_v22 }
0x1158   :  { %v2292_v27 = vpop.f32.mrf.mxu0 }
0x1159   :  { %v2375_v4 = vadd.f32 %v2374_v36, %v2346_v32  ;;  %v2379_v58 = vpop.f32.mrf.mxu1  ;;  %v2293_v35 = vadd.f32 %v4101_v39, %v2292_v27 }
0x115b   :  { %v2394_v23 = vmax.f32 %v2375_v4, 0.0 }
0x115c   :  { %v2318_v29 = vpop.f32.mrf.mxu2 }
0x115d   :  { %2403 = vst.msk [vmem:[%s4171_s28] sm:$0xff] %vm2402_vm13, %v2394_v23  ;;  %v2319_v20 = vadd.f32 %v2318_v29, %v2290_v2  ;;  %v2347_v44 = vpop.f32.mrf.mxu3 }
0x115f   :  { %v2348_v33 = vadd.f32 %v2347_v44, %v2319_v20 }
0x1160   :  { %v2294_v18 = vpop.f32.mrf.mxu0 }
0x1161   :  { %v2377_v55 = vadd.f32 %v2376_v19, %v2348_v33  ;;  %v2381_v13 = vpop.f32.mrf.mxu1  ;;  %v2295_v15 = vadd.f32 %v4101_v39, %v2294_v18 }
0x1163   :  { %v2395_v1 = vmax.f32 %v2377_v55, 0.0 }
0x1164   :  { %v2321_v10 = vpop.f32.mrf.mxu2 }
0x1165   :  { %2404 = vst.msk [vmem:[%s4171_s28 + $0x8] sm:$0xff] %vm2402_vm13, %v2395_v1  ;;  %v2322_v31 = vadd.f32 %v2321_v10, %v2293_v35  ;;  %v2350_v34 = vpop.f32.mrf.mxu3 }
0x1167   :  { %v2351_v5 = vadd.f32 %v2350_v34, %v2322_v31 }
0x1168   :  { %v2297_v47 = vpop.f32.mrf.mxu0 }
0x1169   :  { %v2380_v3 = vadd.f32 %v2379_v58, %v2351_v5  ;;  %v2384_v62 = vpop.f32.mrf.mxu1  ;;  %v2298_v12 = vadd.f32 %v4101_v39, %v2297_v47 }
0x116b   :  { %v2396_v54 = vmax.f32 %v2380_v3, 0.0 }
0x116c   :  { %v2323_v30 = vpop.f32.mrf.mxu2 }
0x116d   :  { %2405 = vst.msk [vmem:[%s4171_s28 + $0x10] sm:$0xff] %vm2402_vm13, %v2396_v54  ;;  %v2324_v26 = vadd.f32 %v2323_v30, %v2295_v15  ;;  %v2352_v49 = vpop.f32.mrf.mxu3 }
0x116f   :  { %v2353_v57 = vadd.f32 %v2352_v49, %v2324_v26 }
0x1170   :  { %v2299_v51 = vpop.f32.mrf.mxu0 }
0x1171   :  { %v2382_v56 = vadd.f32 %v2381_v13, %v2353_v57  ;;  %v2300_v8 = vadd.f32 %v4101_v39, %v2299_v51  ;;  %v2386_v48 = vpop.f32.mrf.mxu1 }
0x1173   :  { %v2397_v41 = vmax.f32 %v2382_v56, 0.0 }
0x1174   :  { %v2326_v6 = vpop.f32.mrf.mxu2 }
0x1175   :  { %2406 = vst.msk [vmem:[%s4171_s28 + $0x18] sm:$0xff] %vm2402_vm13, %v2397_v41  ;;  %v2327_v63 = vadd.f32 %v2326_v6, %v2298_v12  ;;  %v2355_v40 = vpop.f32.mrf.mxu3 }
0x1177   :  { %v2356_v24 = vadd.f32 %v2355_v40, %v2327_v63 }
0x1178   :  { %v2302_v53 = vpop.f32.mrf.mxu0 }
0x1179   :  { %v2385_v52 = vadd.f32 %v2384_v62, %v2356_v24  ;;  %v2303_v38 = vadd.f32 %v4101_v39, %v2302_v53  ;;  %v2389_v46 = vpop.f32.mrf.mxu1 }
0x117b   :  { %v2398_v59 = vmax.f32 %v2385_v52, 0.0 }
0x117c   :  { %v2328_v60 = vpop.f32.mrf.mxu2 }
0x117d   :  { %2407 = vst.msk [vmem:[%s4171_s28 + $0x20] sm:$0xff] %vm2402_vm13, %v2398_v59  ;;  %v2329_v28 = vadd.f32 %v2328_v60, %v2300_v8  ;;  %v2357_v17 = vpop.f32.mrf.mxu3 }
0x117f   :  { %v2358_v0 = vadd.f32 %v2357_v17, %v2329_v28 }
0x1180   :  { %v2304_v9 = vpop.f32.mrf.mxu0 }
0x1181   :  { %v2387_v25 = vadd.f32 %v2386_v48, %v2358_v0  ;;  %v2305_v61 = vadd.f32 %v4101_v39, %v2304_v9  ;;  %v2391_v22 = vpop.f32.mrf.mxu1 }
0x1183   :  { %v2399_v50 = vmax.f32 %v2387_v25, 0.0 }
0x1184   :  { %v2331_v37 = vpop.f32.mrf.mxu2 }
0x1185   :  { %2408 = vst.msk [vmem:[%s4171_s28 + $0x28] sm:$0xff] %vm2402_vm13, %v2399_v50  ;;  %v2332_v21 = vadd.f32 %v2331_v37, %v2303_v38  ;;  %v2360_v16 = vpop.f32.mrf.mxu3 }
0x1187   :  { %v2361_v7 = vadd.f32 %v2360_v16, %v2332_v21 }
0x1189   :  { %v2390_v14 = vadd.f32 %v2389_v46, %v2361_v7 }
0x118b   :  { %v2400_v36 = vmax.f32 %v2390_v14, 0.0 }
0x118c   :  { %v2333_v11 = vpop.f32.mrf.mxu2 }
0x118d   :  { %2409 = vst.msk [vmem:[%s4171_s28 + $0x30] sm:$0xff] %vm2402_vm13, %v2400_v36  ;;  %v2334_v42 = vadd.f32 %v2333_v11, %v2305_v61  ;;  %v2362_v19 = vpop.f32.mrf.mxu3 }
0x118f   :  { %v2363_v43 = vadd.f32 %v2362_v19, %v2334_v42 }
0x1191   :  { %v2392_v45 = vadd.f32 %v2391_v22, %v2363_v43 }
0x1193   :  { %v2401_v32 = vmax.f32 %v2392_v45, 0.0 }
0x1195   :  { %2410 = vst.msk [vmem:[%s4171_s28 + $0x38] sm:$0xff] %vm2402_vm13, %v2401_v32 }

</bundles_post_ra>
